<compile_context>
chip_gen: v7x
topology: tpu7x:2x2x1
jax: 0.10.0
libtpu: 0.0.40
codegen_flags: <defaults>
</compile_context>

<pallas_src>
import jax
import jax.numpy as jnp
from jax import lax
from jax.experimental import pallas as pl
from jax.experimental.pallas import tpu as pltpu


# ----------------------------- model dims (small) ---------------------------
MER = 1
D_IN = 4 ** MER + 4          # 8
LSTM_DIM = 64                # H   (scaled down from 1024)
DA = 128                     # attention hidden (scaled down from 1024)
FC_DIM = 128                 # fc hidden (scaled down from 1024)
R = 3
R_PAD = 128                  # lane-dense padded column count for attn / out
OUT_DIM = 2
BATCH = 32
BATCH_TILE = 16
SEQ = 8


# --------------------------------- kernel -----------------------------------
def lstm_3attn_kernel(
    # inputs
    x_ref,                                 # (T, BT, Din)  f32, time-major
    win_ref, bg_ref,                       # (Din, 8H) bf16, (1, 8H) f32
    whhf_ref, whhb_ref,                    # (H, 4H) bf16 each, cols [i|f|o|g]
    wa1_ref, ba1_ref,                      # (2H, DA) bf16, (1, DA) f32
    wa2_ref, ba2_ref,                      # (DA, R_PAD) bf16, (1, R_PAD) f32
    wf1_ref, bf1_ref,                      # (6H, FC) bf16, (1, FC) f32
    wf2_ref, bf2_ref,                      # (FC, R_PAD) bf16, (1, R_PAD) f32
    # outputs (lane-dense slabs, sliced in the wrapper)
    out_ref,                               # (BT, R_PAD)  f32
    attn_ref,                              # (T, BT, R_PAD) f32, time-major
    # scratch
    gx_ref,                                # (T, BT, 8H) f32  fused input proj
):
    T, BT, Din = x_ref.shape
    H4 = whhf_ref.shape[1]
    H = H4 // 4
    H2 = 2 * H
    H8 = 2 * H4
    f32 = jnp.float32
    bf16 = jnp.bfloat16

    # ---- fused input projection, both directions, time-aligned -------------
    # gate columns: [ fwd: i|f|o|g  |  bwd: i|f|o|g ]
    x_flat = x_ref[...].reshape(T * BT, Din).astype(bf16)
    gx_ref[...] = (
        jnp.dot(x_flat, win_ref[...], preferred_element_type=f32) + bg_ref[...]
    ).reshape(T, BT, H8)

    # ---- fwd+bwd recurrence, fully unrolled, state & hiddens in registers --
    whhf = whhf_ref[...]
    whhb = whhb_ref[...]
    h_f = jnp.zeros((BT, H), f32)
    c_f = jnp.zeros((BT, H), f32)
    h_b = jnp.zeros((BT, H), f32)
    c_b = jnp.zeros((BT, H), f32)
    hf_steps = []
    hb_steps = []                           # hb_steps[s] = bwd hidden @ time T-1-s
    for s in range(T):
        g_f = gx_ref[s, :, 0:H4] + jnp.dot(
            h_f.astype(bf16), whhf, preferred_element_type=f32)
        g_b = gx_ref[T - 1 - s, :, H4:H8] + jnp.dot(
            h_b.astype(bf16), whhb, preferred_element_type=f32)
        sf = jax.nn.sigmoid(g_f[:, 0:3 * H]); tf = jnp.tanh(g_f[:, 3 * H:])
        sb = jax.nn.sigmoid(g_b[:, 0:3 * H]); tb = jnp.tanh(g_b[:, 3 * H:])
        c_f = sf[:, H:2 * H] * c_f + sf[:, 0:H] * tf
        c_b = sb[:, H:2 * H] * c_b + sb[:, 0:H] * tb
        h_f = sf[:, 2 * H:3 * H] * jnp.tanh(c_f)
        h_b = sb[:, 2 * H:3 * H] * jnp.tanh(c_b)
        hf_steps.append(h_f)
        hb_steps.append(h_b)

    # time-major (T, BT, 2H) hidden sequence assembled from registers
    hsv = jnp.stack(
        [jnp.concatenate([hf_steps[t], hb_steps[T - 1 - t]], axis=-1)
         for t in range(T)], axis=0)

    # ---- attention (softmax over time axis 0, R padded to 128 lanes) -------
    hs_bf = hsv.astype(bf16).reshape(T * BT, H2)
    a1 = jnp.maximum(
        jnp.dot(hs_bf, wa1_ref[...], preferred_element_type=f32)
        + ba1_ref[...], 0.0)
    logits = (jnp.dot(a1.astype(bf16), wa2_ref[...], preferred_element_type=f32)
              + ba2_ref[...]).reshape(T, BT, -1)
    logits = logits - jnp.max(logits, axis=0, keepdims=True)
    e = jnp.exp(logits)
    attn = e / jnp.sum(e, axis=0, keepdims=True)
    attn_ref[...] = attn                                   # lane-dense store

    # ---- attention-weighted sums (leading-axis reductions, no transpose) ---
    m1 = jnp.sum(hsv * attn[:, :, 0:1], axis=0).astype(bf16)   # (BT, 2H)
    m2 = jnp.sum(hsv * attn[:, :, 1:2], axis=0).astype(bf16)
    m3 = jnp.sum(hsv * attn[:, :, 2:3], axis=0).astype(bf16)

    # ---- fc1 on row-blocks of wf1 (no [m1|m2|m3] concat), then fc2 ---------
    h1 = (jnp.dot(m1, wf1_ref[0:H2, :], preferred_element_type=f32)
          + jnp.dot(m2, wf1_ref[H2:2 * H2, :], preferred_element_type=f32)
          + jnp.dot(m3, wf1_ref[2 * H2:3 * H2, :], preferred_element_type=f32)
          + bf1_ref[...])
    out_ref[...] = (jnp.dot(h1.astype(bf16), wf2_ref[...],
                            preferred_element_type=f32) + bf2_ref[...])


# ------------------------- one-time parameter prep ---------------------------
def prepare_params(p):
    """Transpose, reorder gates to [i,f,o,g], fold LSTM biases, pad the tiny
    output dims (R, OUT) to lane-dense 128 columns and cast weights to bf16.
    Done once, outside the forward."""
    H = LSTM_DIM
    f32, bf16 = jnp.float32, jnp.bfloat16

    def reorder_T(w):            # (4H, X) rows [i,f,g,o]  ->  (X, 4H) cols [i,f,o,g]
        wt = w.T
        return jnp.concatenate([wt[:, k * H:(k + 1) * H] for k in (0, 1, 3, 2)],
                               axis=1)

    def reorder_b(b):
        return jnp.concatenate([b[k * H:(k + 1) * H] for k in (0, 1, 3, 2)])

    win = jnp.concatenate([reorder_T(p["wih_f"]), reorder_T(p["wih_b"])],
                          axis=1).astype(bf16)                      # (Din, 8H)
    whh_f = reorder_T(p["whh_f"]).astype(bf16)                      # (H, 4H)
    whh_b = reorder_T(p["whh_b"]).astype(bf16)
    bg = jnp.concatenate([reorder_b(p["bih_f"] + p["bhh_f"]),
                          reorder_b(p["bih_b"] + p["bhh_b"])])[None, :].astype(f32)

    wa1 = p["wa1"].T.astype(bf16)                                   # (2H, DA)
    ba1 = p["ba1"][None, :].astype(f32)
    wa2 = jnp.zeros((DA, R_PAD), bf16).at[:, :R].set(p["wa2"].T.astype(bf16))
    ba2 = jnp.zeros((1, R_PAD), f32).at[0, :R].set(p["ba2"])
    wf1 = p["wf1"].T.astype(bf16)                                   # (6H, FC)
    bf1 = p["bf1"][None, :].astype(f32)
    wf2 = jnp.zeros((FC_DIM, R_PAD), bf16).at[:, :OUT_DIM].set(p["wf2"].T.astype(bf16))
    bf2 = jnp.zeros((1, R_PAD), f32).at[0, :OUT_DIM].set(p["bf2"])

    return (win, bg, whh_f, whh_b, wa1, ba1, wa2, ba2, wf1, bf1, wf2, bf2)


# --------------------------------- wrapper ----------------------------------
def lstm_3attn_forward(x, prepped):
    """x: (B, T, D_IN) float32, batch-first as in the PyTorch module."""
    B, T, Din = x.shape
    H = LSTM_DIM
    BT = BATCH_TILE
    assert B % BT == 0

    x_tm = jnp.transpose(x, (1, 0, 2))                      # (T, B, Din)

    # batch-tile spec for the activation, resident (index-invariant) weights
    in_specs = ([pl.BlockSpec((T, BT, Din), lambda b: (0, b, 0))]
                + [pl.BlockSpec(w.shape, lambda b: (0, 0)) for w in prepped])
    out_specs = (pl.BlockSpec((BT, R_PAD), lambda b: (b, 0)),
                 pl.BlockSpec((T, BT, R_PAD), lambda b: (0, b, 0)))
    out_shape = (jax.ShapeDtypeStruct((B, R_PAD), jnp.float32),
                 jax.ShapeDtypeStruct((T, B, R_PAD), jnp.float32))

    flops = 2 * (T * B * Din * 8 * H          # input projection
                 + 2 * T * B * H * 4 * H      # recurrence (2 dirs)
                 + T * B * 2 * H * DA         # attention hidden
                 + T * B * DA * R_PAD         # attention logits
                 + B * 6 * H * FC_DIM         # fc1
                 + B * FC_DIM * R_PAD)        # fc2
    transcendentals = T * B * (6 * H + 2 * H + 2 * H) + T * B * R_PAD
    bytes_accessed = (x_tm.size * 4
                      + sum(int(w.size) * w.dtype.itemsize for w in prepped)
                      + B * R_PAD * 4 + T * B * R_PAD * 4)

    out_pad, attn_pad = pl.pallas_call(
        lstm_3attn_kernel,
        grid=(B // BT,),
        in_specs=in_specs,
        out_specs=out_specs,
        out_shape=out_shape,
        scratch_shapes=[pltpu.VMEM((T, BT, 8 * H), jnp.float32)],
        compiler_params=pltpu.CompilerParams(
            dimension_semantics=("parallel",),
            vmem_limit_bytes=32 * 1024 * 1024),
        cost_estimate=pl.CostEstimate(flops=flops,
                                      transcendentals=transcendentals,
                                      bytes_accessed=bytes_accessed),
    )(x_tm, *prepped)

    out = out_pad[:, :OUT_DIM]                               # (B, OUT_DIM)
    attn = jnp.transpose(attn_pad[:, :, :R], (1, 0, 2))      # (B, T, R)
    return out, attn


lstm_3attn_forward_jit = jax.jit(lstm_3attn_forward)


# --------------------------- pure-JAX reference ------------------------------
def reference_forward(x, p):
    B, T, Din = x.shape
    H = LSTM_DIM

    def run_dir(wih, whh, bih, bhh, reverse):
        xs = x[:, ::-1, :] if reverse else x
        gx = jnp.einsum("btd,gd->btg", xs, wih) + bih + bhh

        def step(carry, g_t):
            h, c = carry
            g = g_t + h @ whh.T
            i = jax.nn.sigmoid(g[:, 0 * H:1 * H])
            f = jax.nn.sigmoid(g[:, 1 * H:2 * H])
            gg = jnp.tanh(g[:, 2 * H:3 * H])
            o = jax.nn.sigmoid(g[:, 3 * H:4 * H])
            c = f * c + i * gg
            h = o * jnp.tanh(c)
            return (h, c), h

        init = (jnp.zeros((B, H)), jnp.zeros((B, H)))
        _, hs = lax.scan(step, init, jnp.transpose(gx, (1, 0, 2)))
        hs = jnp.transpose(hs, (1, 0, 2))       # (B, T, H)
        return hs[:, ::-1, :] if reverse else hs

    out_f = run_dir(p["wih_f"], p["whh_f"], p["bih_f"], p["bhh_f"], False)
    out_b = run_dir(p["wih_b"], p["whh_b"], p["bih_b"], p["bhh_b"], True)
    out = jnp.concatenate([out_f, out_b], axis=-1)               # (B,T,2H)

    a1 = jnp.maximum(out @ p["wa1"].T + p["ba1"], 0.0)
    logits = a1 @ p["wa2"].T + p["ba2"]                          # (B,T,R)
    attn = jax.nn.softmax(logits, axis=1)

    m1 = jnp.sum(out * attn[:, :, 0:1], axis=1)
    m2 = jnp.sum(out * attn[:, :, 1:2], axis=1)
    m3 = jnp.sum(out * attn[:, :, 2:3], axis=1)
    m = jnp.concatenate([m1, m2, m3], axis=1)

    y = (m @ p["wf1"].T + p["bf1"]) @ p["wf2"].T + p["bf2"]
    return y, attn


# ----------------------------------- main ------------------------------------
def init_params(key):
    H = LSTM_DIM
    shapes = {
        "wih_f": (4 * H, D_IN), "whh_f": (4 * H, H),
        "bih_f": (4 * H,), "bhh_f": (4 * H,),
        "wih_b": (4 * H, D_IN), "whh_b": (4 * H, H),
        "bih_b": (4 * H,), "bhh_b": (4 * H,),
        "wa1": (DA, 2 * H), "ba1": (DA,),
        "wa2": (R, DA), "ba2": (R,),
        "wf1": (FC_DIM, 2 * H * R), "bf1": (FC_DIM,),
        "wf2": (OUT_DIM, FC_DIM), "bf2": (OUT_DIM,),
    }
    keys = jax.random.split(key, len(shapes))
    return {name: 0.1 * jax.random.normal(k, shp, dtype=jnp.float32)
            for k, (name, shp) in zip(keys, shapes.items())}


if __name__ == "__main__":
    key = jax.random.PRNGKey(0)
    k_x, k_p = jax.random.split(key)
    x = jax.random.normal(k_x, (BATCH, SEQ, D_IN), dtype=jnp.float32)
    params = init_params(k_p)

    prepped = jax.block_until_ready(prepare_params(params))     # one-time prep
    out, attn = jax.block_until_ready(lstm_3attn_forward_jit(x, prepped))

    ref_out, ref_attn = reference_forward(x, params)
    assert jnp.allclose(out, ref_out, rtol=2e-2, atol=2e-2), "out mismatch"
    assert jnp.allclose(attn, ref_attn, rtol=2e-2, atol=2e-2), "attn mismatch"

    print("KERNEL_OK")
</pallas_src>

<mosaic_0001>
module attributes {stable_mosaic.version = 11 : i64} {
  func.func @lstm_3attn_kernel(%arg0: i32, %arg1: memref<8x16x8xf32, #tpu.memory_space<vmem>>, %arg2: memref<8x512xbf16, #tpu.memory_space<vmem>>, %arg3: memref<1x512xf32, #tpu.memory_space<vmem>>, %arg4: memref<64x256xbf16, #tpu.memory_space<vmem>>, %arg5: memref<64x256xbf16, #tpu.memory_space<vmem>>, %arg6: memref<128x128xbf16, #tpu.memory_space<vmem>>, %arg7: memref<1x128xf32, #tpu.memory_space<vmem>>, %arg8: memref<128x128xbf16, #tpu.memory_space<vmem>>, %arg9: memref<1x128xf32, #tpu.memory_space<vmem>>, %arg10: memref<384x128xbf16, #tpu.memory_space<vmem>>, %arg11: memref<1x128xf32, #tpu.memory_space<vmem>>, %arg12: memref<128x128xbf16, #tpu.memory_space<vmem>>, %arg13: memref<1x128xf32, #tpu.memory_space<vmem>>, %arg14: memref<16x128xf32, #tpu.memory_space<vmem>>, %arg15: memref<8x16x128xf32, #tpu.memory_space<vmem>>, %arg16: memref<8x16x512xf32, #tpu.memory_space<vmem>>) attributes {dimension_semantics = [#tpu.dimension_semantics<parallel>], iteration_bounds = array<i64: 2>, scalar_prefetch = 0 : i64, scratch_operands = 1 : i64, tpu.core_type = #tpu.core_type<tc>, window_params = [{transform_indices = @transform_0, window_bounds = array<i64: 8, 16, 8>}, {pipeline_mode = #tpu.pipeline_mode<synchronous>, transform_indices = @transform_1, window_bounds = array<i64: 8, 512>}, {pipeline_mode = #tpu.pipeline_mode<synchronous>, transform_indices = @transform_2, window_bounds = array<i64: 1, 512>}, {pipeline_mode = #tpu.pipeline_mode<synchronous>, transform_indices = @transform_3, window_bounds = array<i64: 64, 256>}, {pipeline_mode = #tpu.pipeline_mode<synchronous>, transform_indices = @transform_4, window_bounds = array<i64: 64, 256>}, {pipeline_mode = #tpu.pipeline_mode<synchronous>, transform_indices = @transform_5, window_bounds = array<i64: 128, 128>}, {pipeline_mode = #tpu.pipeline_mode<synchronous>, transform_indices = @transform_6, window_bounds = array<i64: 1, 128>}, {pipeline_mode = #tpu.pipeline_mode<synchronous>, transform_indices = @transform_7, window_bounds = array<i64: 128, 128>}, {pipeline_mode = #tpu.pipeline_mode<synchronous>, transform_indices = @transform_8, window_bounds = array<i64: 1, 128>}, {pipeline_mode = #tpu.pipeline_mode<synchronous>, transform_indices = @transform_9, window_bounds = array<i64: 384, 128>}, {pipeline_mode = #tpu.pipeline_mode<synchronous>, transform_indices = @transform_10, window_bounds = array<i64: 1, 128>}, {pipeline_mode = #tpu.pipeline_mode<synchronous>, transform_indices = @transform_11, window_bounds = array<i64: 128, 128>}, {pipeline_mode = #tpu.pipeline_mode<synchronous>, transform_indices = @transform_12, window_bounds = array<i64: 1, 128>}, {transform_indices = @transform_13, window_bounds = array<i64: 16, 128>}, {transform_indices = @transform_14, window_bounds = array<i64: 8, 16, 128>}]} {
    %c0 = arith.constant 0 : index
    %c0_0 = arith.constant 0 : index
    %c0_1 = arith.constant 0 : index
    %0 = vector.load %arg1[%c0, %c0_0, %c0_1] : memref<8x16x8xf32, #tpu.memory_space<vmem>>, vector<8x16x8xf32>
    %1 = vector.shape_cast %0 : vector<8x16x8xf32> to vector<128x8xf32>
    %2 = arith.truncf %1 : vector<128x8xf32> to vector<128x8xbf16>
    %c0_2 = arith.constant 0 : index
    %c0_3 = arith.constant 0 : index
    %3 = vector.load %arg2[%c0_2, %c0_3] : memref<8x512xbf16, #tpu.memory_space<vmem>>, vector<8x512xbf16>
    %cst = arith.constant dense<0.000000e+00> : vector<128x512xf32>
    %4 = tpu.matmul %2, %3, %cst {dimension_numbers = #tpu.dot_dimension_numbers<[1], [0], [0], [1], [0, 0, 1, 1], [], []>} : vector<128x8xbf16>, vector<8x512xbf16>, vector<128x512xf32> -> vector<128x512xf32>
    %c0_4 = arith.constant 0 : index
    %c0_5 = arith.constant 0 : index
    %5 = vector.load %arg3[%c0_4, %c0_5] : memref<1x512xf32, #tpu.memory_space<vmem>>, vector<1x512xf32>
    %6 = vector.broadcast %5 : vector<1x512xf32> to vector<128x512xf32>
    %7 = arith.addf %4, %6 : vector<128x512xf32>
    %8 = vector.shape_cast %7 : vector<128x512xf32> to vector<8x16x512xf32>
    %c0_6 = arith.constant 0 : index
    %c0_7 = arith.constant 0 : index
    %c0_8 = arith.constant 0 : index
    %9 = vector.load %arg16[%c0_6, %c0_7, %c0_8] : memref<8x16x512xf32, #tpu.memory_space<vmem>>, vector<8x16x512xf32>
    tpu.vector_store %arg16[%c0_6, %c0_7, %c0_8], %8 {strides = array<i32>} : memref<8x16x512xf32, #tpu.memory_space<vmem>>, vector<8x16x512xf32>,
    %c0_9 = arith.constant 0 : index
    %c0_10 = arith.constant 0 : index
    %10 = vector.load %arg4[%c0_9, %c0_10] : memref<64x256xbf16, #tpu.memory_space<vmem>>, vector<64x256xbf16>
    %c0_11 = arith.constant 0 : index
    %c0_12 = arith.constant 0 : index
    %11 = vector.load %arg5[%c0_11, %c0_12] : memref<64x256xbf16, #tpu.memory_space<vmem>>, vector<64x256xbf16>
    %cst_13 = arith.constant 0.000000e+00 : f32
    %12 = vector.broadcast %cst_13 : f32 to vector<16x64xf32>
    %cst_14 = arith.constant 0.000000e+00 : f32
    %13 = vector.broadcast %cst_14 : f32 to vector<16x64xf32>
    %cst_15 = arith.constant 0.000000e+00 : f32
    %14 = vector.broadcast %cst_15 : f32 to vector<16x64xf32>
    %cst_16 = arith.constant 0.000000e+00 : f32
    %15 = vector.broadcast %cst_16 : f32 to vector<16x64xf32>
    %c0_17 = arith.constant 0 : index
    %c0_18 = arith.constant 0 : index
    %c0_19 = arith.constant 0 : index
    %16 = vector.load %arg16[%c0_17, %c0_18, %c0_19] : memref<8x16x512xf32, #tpu.memory_space<vmem>>, vector<1x16x256xf32>
    %17 = vector.shape_cast %16 : vector<1x16x256xf32> to vector<16x256xf32>
    %18 = arith.truncf %12 : vector<16x64xf32> to vector<16x64xbf16>
    %cst_20 = arith.constant dense<0.000000e+00> : vector<16x256xf32>
    %19 = tpu.matmul %18, %10, %cst_20 {dimension_numbers = #tpu.dot_dimension_numbers<[1], [0], [0], [1], [0, 0, 1, 1], [], []>} : vector<16x64xbf16>, vector<64x256xbf16>, vector<16x256xf32> -> vector<16x256xf32>
    %20 = arith.addf %17, %19 : vector<16x256xf32>
    %c7 = arith.constant 7 : index
    %c0_21 = arith.constant 0 : index
    %c256 = arith.constant 256 : index
    %21 = vector.load %arg16[%c7, %c0_21, %c256] : memref<8x16x512xf32, #tpu.memory_space<vmem>>, vector<1x16x256xf32>
    %22 = vector.shape_cast %21 : vector<1x16x256xf32> to vector<16x256xf32>
    %23 = arith.truncf %14 : vector<16x64xf32> to vector<16x64xbf16>
    %cst_22 = arith.constant dense<0.000000e+00> : vector<16x256xf32>
    %24 = tpu.matmul %23, %11, %cst_22 {dimension_numbers = #tpu.dot_dimension_numbers<[1], [0], [0], [1], [0, 0, 1, 1], [], []>} : vector<16x64xbf16>, vector<64x256xbf16>, vector<16x256xf32> -> vector<16x256xf32>
    %25 = arith.addf %22, %24 : vector<16x256xf32>
    %26 = vector.extract_strided_slice %20 {offsets = [0, 0], sizes = [16, 192], strides = [1, 1]} : vector<16x256xf32> to vector<16x192xf32>
    %27 = arith.negf %26 : vector<16x192xf32>
    %28 = math.exp %27 : vector<16x192xf32>
    %cst_23 = arith.constant 1.000000e+00 : f32
    %29 = vector.broadcast %cst_23 : f32 to vector<16x192xf32>
    %30 = arith.addf %29, %28 : vector<16x192xf32>
    %31 = arith.divf %29, %30 : vector<16x192xf32>
    %32 = vector.extract_strided_slice %20 {offsets = [0, 192], sizes = [16, 64], strides = [1, 1]} : vector<16x256xf32> to vector<16x64xf32>
    %33 = math.tanh %32 : vector<16x64xf32>
    %34 = vector.extract_strided_slice %25 {offsets = [0, 0], sizes = [16, 192], strides = [1, 1]} : vector<16x256xf32> to vector<16x192xf32>
    %35 = arith.negf %34 : vector<16x192xf32>
    %36 = math.exp %35 : vector<16x192xf32>
    %cst_24 = arith.constant 1.000000e+00 : f32
    %37 = vector.broadcast %cst_24 : f32 to vector<16x192xf32>
    %38 = arith.addf %37, %36 : vector<16x192xf32>
    %39 = arith.divf %37, %38 : vector<16x192xf32>
    %40 = vector.extract_strided_slice %25 {offsets = [0, 192], sizes = [16, 64], strides = [1, 1]} : vector<16x256xf32> to vector<16x64xf32>
    %41 = math.tanh %40 : vector<16x64xf32>
    %42 = vector.extract_strided_slice %31 {offsets = [0, 64], sizes = [16, 64], strides = [1, 1]} : vector<16x192xf32> to vector<16x64xf32>
    %43 = arith.mulf %42, %13 : vector<16x64xf32>
    %44 = vector.extract_strided_slice %31 {offsets = [0, 0], sizes = [16, 64], strides = [1, 1]} : vector<16x192xf32> to vector<16x64xf32>
    %45 = arith.mulf %44, %33 : vector<16x64xf32>
    %46 = arith.addf %43, %45 : vector<16x64xf32>
    %47 = vector.extract_strided_slice %39 {offsets = [0, 64], sizes = [16, 64], strides = [1, 1]} : vector<16x192xf32> to vector<16x64xf32>
    %48 = arith.mulf %47, %15 : vector<16x64xf32>
    %49 = vector.extract_strided_slice %39 {offsets = [0, 0], sizes = [16, 64], strides = [1, 1]} : vector<16x192xf32> to vector<16x64xf32>
    %50 = arith.mulf %49, %41 : vector<16x64xf32>
    %51 = arith.addf %48, %50 : vector<16x64xf32>
    %52 = vector.extract_strided_slice %31 {offsets = [0, 128], sizes = [16, 64], strides = [1, 1]} : vector<16x192xf32> to vector<16x64xf32>
    %53 = math.tanh %46 : vector<16x64xf32>
    %54 = arith.mulf %52, %53 : vector<16x64xf32>
    %55 = vector.extract_strided_slice %39 {offsets = [0, 128], sizes = [16, 64], strides = [1, 1]} : vector<16x192xf32> to vector<16x64xf32>
    %56 = math.tanh %51 : vector<16x64xf32>
    %57 = arith.mulf %55, %56 : vector<16x64xf32>
    %c1 = arith.constant 1 : index
    %c0_25 = arith.constant 0 : index
    %c0_26 = arith.constant 0 : index
    %58 = vector.load %arg16[%c1, %c0_25, %c0_26] : memref<8x16x512xf32, #tpu.memory_space<vmem>>, vector<1x16x256xf32>
    %59 = vector.shape_cast %58 : vector<1x16x256xf32> to vector<16x256xf32>
    %60 = arith.truncf %54 : vector<16x64xf32> to vector<16x64xbf16>
    %cst_27 = arith.constant dense<0.000000e+00> : vector<16x256xf32>
    %61 = tpu.matmul %60, %10, %cst_27 {dimension_numbers = #tpu.dot_dimension_numbers<[1], [0], [0], [1], [0, 0, 1, 1], [], []>} : vector<16x64xbf16>, vector<64x256xbf16>, vector<16x256xf32> -> vector<16x256xf32>
    %62 = arith.addf %59, %61 : vector<16x256xf32>
    %c6 = arith.constant 6 : index
    %c0_28 = arith.constant 0 : index
    %c256_29 = arith.constant 256 : index
    %63 = vector.load %arg16[%c6, %c0_28, %c256_29] : memref<8x16x512xf32, #tpu.memory_space<vmem>>, vector<1x16x256xf32>
    %64 = vector.shape_cast %63 : vector<1x16x256xf32> to vector<16x256xf32>
    %65 = arith.truncf %57 : vector<16x64xf32> to vector<16x64xbf16>
    %cst_30 = arith.constant dense<0.000000e+00> : vector<16x256xf32>
    %66 = tpu.matmul %65, %11, %cst_30 {dimension_numbers = #tpu.dot_dimension_numbers<[1], [0], [0], [1], [0, 0, 1, 1], [], []>} : vector<16x64xbf16>, vector<64x256xbf16>, vector<16x256xf32> -> vector<16x256xf32>
    %67 = arith.addf %64, %66 : vector<16x256xf32>
    %68 = vector.extract_strided_slice %62 {offsets = [0, 0], sizes = [16, 192], strides = [1, 1]} : vector<16x256xf32> to vector<16x192xf32>
    %69 = arith.negf %68 : vector<16x192xf32>
    %70 = math.exp %69 : vector<16x192xf32>
    %cst_31 = arith.constant 1.000000e+00 : f32
    %71 = vector.broadcast %cst_31 : f32 to vector<16x192xf32>
    %72 = arith.addf %71, %70 : vector<16x192xf32>
    %73 = arith.divf %71, %72 : vector<16x192xf32>
    %74 = vector.extract_strided_slice %62 {offsets = [0, 192], sizes = [16, 64], strides = [1, 1]} : vector<16x256xf32> to vector<16x64xf32>
    %75 = math.tanh %74 : vector<16x64xf32>
    %76 = vector.extract_strided_slice %67 {offsets = [0, 0], sizes = [16, 192], strides = [1, 1]} : vector<16x256xf32> to vector<16x192xf32>
    %77 = arith.negf %76 : vector<16x192xf32>
    %78 = math.exp %77 : vector<16x192xf32>
    %cst_32 = arith.constant 1.000000e+00 : f32
    %79 = vector.broadcast %cst_32 : f32 to vector<16x192xf32>
    %80 = arith.addf %79, %78 : vector<16x192xf32>
    %81 = arith.divf %79, %80 : vector<16x192xf32>
    %82 = vector.extract_strided_slice %67 {offsets = [0, 192], sizes = [16, 64], strides = [1, 1]} : vector<16x256xf32> to vector<16x64xf32>
    %83 = math.tanh %82 : vector<16x64xf32>
    %84 = vector.extract_strided_slice %73 {offsets = [0, 64], sizes = [16, 64], strides = [1, 1]} : vector<16x192xf32> to vector<16x64xf32>
    %85 = arith.mulf %84, %46 : vector<16x64xf32>
    %86 = vector.extract_strided_slice %73 {offsets = [0, 0], sizes = [16, 64], strides = [1, 1]} : vector<16x192xf32> to vector<16x64xf32>
    %87 = arith.mulf %86, %75 : vector<16x64xf32>
    %88 = arith.addf %85, %87 : vector<16x64xf32>
    %89 = vector.extract_strided_slice %81 {offsets = [0, 64], sizes = [16, 64], strides = [1, 1]} : vector<16x192xf32> to vector<16x64xf32>
    %90 = arith.mulf %89, %51 : vector<16x64xf32>
    %91 = vector.extract_strided_slice %81 {offsets = [0, 0], sizes = [16, 64], strides = [1, 1]} : vector<16x192xf32> to vector<16x64xf32>
    %92 = arith.mulf %91, %83 : vector<16x64xf32>
    %93 = arith.addf %90, %92 : vector<16x64xf32>
    %94 = vector.extract_strided_slice %73 {offsets = [0, 128], sizes = [16, 64], strides = [1, 1]} : vector<16x192xf32> to vector<16x64xf32>
    %95 = math.tanh %88 : vector<16x64xf32>
    %96 = arith.mulf %94, %95 : vector<16x64xf32>
    %97 = vector.extract_strided_slice %81 {offsets = [0, 128], sizes = [16, 64], strides = [1, 1]} : vector<16x192xf32> to vector<16x64xf32>
    %98 = math.tanh %93 : vector<16x64xf32>
    %99 = arith.mulf %97, %98 : vector<16x64xf32>
    %c2 = arith.constant 2 : index
    %c0_33 = arith.constant 0 : index
    %c0_34 = arith.constant 0 : index
    %100 = vector.load %arg16[%c2, %c0_33, %c0_34] : memref<8x16x512xf32, #tpu.memory_space<vmem>>, vector<1x16x256xf32>
    %101 = vector.shape_cast %100 : vector<1x16x256xf32> to vector<16x256xf32>
    %102 = arith.truncf %96 : vector<16x64xf32> to vector<16x64xbf16>
    %cst_35 = arith.constant dense<0.000000e+00> : vector<16x256xf32>
    %103 = tpu.matmul %102, %10, %cst_35 {dimension_numbers = #tpu.dot_dimension_numbers<[1], [0], [0], [1], [0, 0, 1, 1], [], []>} : vector<16x64xbf16>, vector<64x256xbf16>, vector<16x256xf32> -> vector<16x256xf32>
    %104 = arith.addf %101, %103 : vector<16x256xf32>
    %c5 = arith.constant 5 : index
    %c0_36 = arith.constant 0 : index
    %c256_37 = arith.constant 256 : index
    %105 = vector.load %arg16[%c5, %c0_36, %c256_37] : memref<8x16x512xf32, #tpu.memory_space<vmem>>, vector<1x16x256xf32>
    %106 = vector.shape_cast %105 : vector<1x16x256xf32> to vector<16x256xf32>
    %107 = arith.truncf %99 : vector<16x64xf32> to vector<16x64xbf16>
    %cst_38 = arith.constant dense<0.000000e+00> : vector<16x256xf32>
    %108 = tpu.matmul %107, %11, %cst_38 {dimension_numbers = #tpu.dot_dimension_numbers<[1], [0], [0], [1], [0, 0, 1, 1], [], []>} : vector<16x64xbf16>, vector<64x256xbf16>, vector<16x256xf32> -> vector<16x256xf32>
    %109 = arith.addf %106, %108 : vector<16x256xf32>
    %110 = vector.extract_strided_slice %104 {offsets = [0, 0], sizes = [16, 192], strides = [1, 1]} : vector<16x256xf32> to vector<16x192xf32>
    %111 = arith.negf %110 : vector<16x192xf32>
    %112 = math.exp %111 : vector<16x192xf32>
    %cst_39 = arith.constant 1.000000e+00 : f32
    %113 = vector.broadcast %cst_39 : f32 to vector<16x192xf32>
    %114 = arith.addf %113, %112 : vector<16x192xf32>
    %115 = arith.divf %113, %114 : vector<16x192xf32>
    %116 = vector.extract_strided_slice %104 {offsets = [0, 192], sizes = [16, 64], strides = [1, 1]} : vector<16x256xf32> to vector<16x64xf32>
    %117 = math.tanh %116 : vector<16x64xf32>
    %118 = vector.extract_strided_slice %109 {offsets = [0, 0], sizes = [16, 192], strides = [1, 1]} : vector<16x256xf32> to vector<16x192xf32>
    %119 = arith.negf %118 : vector<16x192xf32>
    %120 = math.exp %119 : vector<16x192xf32>
    %cst_40 = arith.constant 1.000000e+00 : f32
    %121 = vector.broadcast %cst_40 : f32 to vector<16x192xf32>
    %122 = arith.addf %121, %120 : vector<16x192xf32>
    %123 = arith.divf %121, %122 : vector<16x192xf32>
    %124 = vector.extract_strided_slice %109 {offsets = [0, 192], sizes = [16, 64], strides = [1, 1]} : vector<16x256xf32> to vector<16x64xf32>
    %125 = math.tanh %124 : vector<16x64xf32>
    %126 = vector.extract_strided_slice %115 {offsets = [0, 64], sizes = [16, 64], strides = [1, 1]} : vector<16x192xf32> to vector<16x64xf32>
    %127 = arith.mulf %126, %88 : vector<16x64xf32>
    %128 = vector.extract_strided_slice %115 {offsets = [0, 0], sizes = [16, 64], strides = [1, 1]} : vector<16x192xf32> to vector<16x64xf32>
    %129 = arith.mulf %128, %117 : vector<16x64xf32>
    %130 = arith.addf %127, %129 : vector<16x64xf32>
    %131 = vector.extract_strided_slice %123 {offsets = [0, 64], sizes = [16, 64], strides = [1, 1]} : vector<16x192xf32> to vector<16x64xf32>
    %132 = arith.mulf %131, %93 : vector<16x64xf32>
    %133 = vector.extract_strided_slice %123 {offsets = [0, 0], sizes = [16, 64], strides = [1, 1]} : vector<16x192xf32> to vector<16x64xf32>
    %134 = arith.mulf %133, %125 : vector<16x64xf32>
    %135 = arith.addf %132, %134 : vector<16x64xf32>
    %136 = vector.extract_strided_slice %115 {offsets = [0, 128], sizes = [16, 64], strides = [1, 1]} : vector<16x192xf32> to vector<16x64xf32>
    %137 = math.tanh %130 : vector<16x64xf32>
    %138 = arith.mulf %136, %137 : vector<16x64xf32>
    %139 = vector.extract_strided_slice %123 {offsets = [0, 128], sizes = [16, 64], strides = [1, 1]} : vector<16x192xf32> to vector<16x64xf32>
    %140 = math.tanh %135 : vector<16x64xf32>
    %141 = arith.mulf %139, %140 : vector<16x64xf32>
    %c3 = arith.constant 3 : index
    %c0_41 = arith.constant 0 : index
    %c0_42 = arith.constant 0 : index
    %142 = vector.load %arg16[%c3, %c0_41, %c0_42] : memref<8x16x512xf32, #tpu.memory_space<vmem>>, vector<1x16x256xf32>
    %143 = vector.shape_cast %142 : vector<1x16x256xf32> to vector<16x256xf32>
    %144 = arith.truncf %138 : vector<16x64xf32> to vector<16x64xbf16>
    %cst_43 = arith.constant dense<0.000000e+00> : vector<16x256xf32>
    %145 = tpu.matmul %144, %10, %cst_43 {dimension_numbers = #tpu.dot_dimension_numbers<[1], [0], [0], [1], [0, 0, 1, 1], [], []>} : vector<16x64xbf16>, vector<64x256xbf16>, vector<16x256xf32> -> vector<16x256xf32>
    %146 = arith.addf %143, %145 : vector<16x256xf32>
    %c4 = arith.constant 4 : index
    %c0_44 = arith.constant 0 : index
    %c256_45 = arith.constant 256 : index
    %147 = vector.load %arg16[%c4, %c0_44, %c256_45] : memref<8x16x512xf32, #tpu.memory_space<vmem>>, vector<1x16x256xf32>
    %148 = vector.shape_cast %147 : vector<1x16x256xf32> to vector<16x256xf32>
    %149 = arith.truncf %141 : vector<16x64xf32> to vector<16x64xbf16>
    %cst_46 = arith.constant dense<0.000000e+00> : vector<16x256xf32>
    %150 = tpu.matmul %149, %11, %cst_46 {dimension_numbers = #tpu.dot_dimension_numbers<[1], [0], [0], [1], [0, 0, 1, 1], [], []>} : vector<16x64xbf16>, vector<64x256xbf16>, vector<16x256xf32> -> vector<16x256xf32>
    %151 = arith.addf %148, %150 : vector<16x256xf32>
    %152 = vector.extract_strided_slice %146 {offsets = [0, 0], sizes = [16, 192], strides = [1, 1]} : vector<16x256xf32> to vector<16x192xf32>
    %153 = arith.negf %152 : vector<16x192xf32>
    %154 = math.exp %153 : vector<16x192xf32>
    %cst_47 = arith.constant 1.000000e+00 : f32
    %155 = vector.broadcast %cst_47 : f32 to vector<16x192xf32>
    %156 = arith.addf %155, %154 : vector<16x192xf32>
    %157 = arith.divf %155, %156 : vector<16x192xf32>
    %158 = vector.extract_strided_slice %146 {offsets = [0, 192], sizes = [16, 64], strides = [1, 1]} : vector<16x256xf32> to vector<16x64xf32>
    %159 = math.tanh %158 : vector<16x64xf32>
    %160 = vector.extract_strided_slice %151 {offsets = [0, 0], sizes = [16, 192], strides = [1, 1]} : vector<16x256xf32> to vector<16x192xf32>
    %161 = arith.negf %160 : vector<16x192xf32>
    %162 = math.exp %161 : vector<16x192xf32>
    %cst_48 = arith.constant 1.000000e+00 : f32
    %163 = vector.broadcast %cst_48 : f32 to vector<16x192xf32>
    %164 = arith.addf %163, %162 : vector<16x192xf32>
    %165 = arith.divf %163, %164 : vector<16x192xf32>
    %166 = vector.extract_strided_slice %151 {offsets = [0, 192], sizes = [16, 64], strides = [1, 1]} : vector<16x256xf32> to vector<16x64xf32>
    %167 = math.tanh %166 : vector<16x64xf32>
    %168 = vector.extract_strided_slice %157 {offsets = [0, 64], sizes = [16, 64], strides = [1, 1]} : vector<16x192xf32> to vector<16x64xf32>
    %169 = arith.mulf %168, %130 : vector<16x64xf32>
    %170 = vector.extract_strided_slice %157 {offsets = [0, 0], sizes = [16, 64], strides = [1, 1]} : vector<16x192xf32> to vector<16x64xf32>
    %171 = arith.mulf %170, %159 : vector<16x64xf32>
    %172 = arith.addf %169, %171 : vector<16x64xf32>
    %173 = vector.extract_strided_slice %165 {offsets = [0, 64], sizes = [16, 64], strides = [1, 1]} : vector<16x192xf32> to vector<16x64xf32>
    %174 = arith.mulf %173, %135 : vector<16x64xf32>
    %175 = vector.extract_strided_slice %165 {offsets = [0, 0], sizes = [16, 64], strides = [1, 1]} : vector<16x192xf32> to vector<16x64xf32>
    %176 = arith.mulf %175, %167 : vector<16x64xf32>
    %177 = arith.addf %174, %176 : vector<16x64xf32>
    %178 = vector.extract_strided_slice %157 {offsets = [0, 128], sizes = [16, 64], strides = [1, 1]} : vector<16x192xf32> to vector<16x64xf32>
    %179 = math.tanh %172 : vector<16x64xf32>
    %180 = arith.mulf %178, %179 : vector<16x64xf32>
    %181 = vector.extract_strided_slice %165 {offsets = [0, 128], sizes = [16, 64], strides = [1, 1]} : vector<16x192xf32> to vector<16x64xf32>
    %182 = math.tanh %177 : vector<16x64xf32>
    %183 = arith.mulf %181, %182 : vector<16x64xf32>
    %c4_49 = arith.constant 4 : index
    %c0_50 = arith.constant 0 : index
    %c0_51 = arith.constant 0 : index
    %184 = vector.load %arg16[%c4_49, %c0_50, %c0_51] : memref<8x16x512xf32, #tpu.memory_space<vmem>>, vector<1x16x256xf32>
    %185 = vector.shape_cast %184 : vector<1x16x256xf32> to vector<16x256xf32>
    %186 = arith.truncf %180 : vector<16x64xf32> to vector<16x64xbf16>
    %cst_52 = arith.constant dense<0.000000e+00> : vector<16x256xf32>
    %187 = tpu.matmul %186, %10, %cst_52 {dimension_numbers = #tpu.dot_dimension_numbers<[1], [0], [0], [1], [0, 0, 1, 1], [], []>} : vector<16x64xbf16>, vector<64x256xbf16>, vector<16x256xf32> -> vector<16x256xf32>
    %188 = arith.addf %185, %187 : vector<16x256xf32>
    %c3_53 = arith.constant 3 : index
    %c0_54 = arith.constant 0 : index
    %c256_55 = arith.constant 256 : index
    %189 = vector.load %arg16[%c3_53, %c0_54, %c256_55] : memref<8x16x512xf32, #tpu.memory_space<vmem>>, vector<1x16x256xf32>
    %190 = vector.shape_cast %189 : vector<1x16x256xf32> to vector<16x256xf32>
    %191 = arith.truncf %183 : vector<16x64xf32> to vector<16x64xbf16>
    %cst_56 = arith.constant dense<0.000000e+00> : vector<16x256xf32>
    %192 = tpu.matmul %191, %11, %cst_56 {dimension_numbers = #tpu.dot_dimension_numbers<[1], [0], [0], [1], [0, 0, 1, 1], [], []>} : vector<16x64xbf16>, vector<64x256xbf16>, vector<16x256xf32> -> vector<16x256xf32>
    %193 = arith.addf %190, %192 : vector<16x256xf32>
    %194 = vector.extract_strided_slice %188 {offsets = [0, 0], sizes = [16, 192], strides = [1, 1]} : vector<16x256xf32> to vector<16x192xf32>
    %195 = arith.negf %194 : vector<16x192xf32>
    %196 = math.exp %195 : vector<16x192xf32>
    %cst_57 = arith.constant 1.000000e+00 : f32
    %197 = vector.broadcast %cst_57 : f32 to vector<16x192xf32>
    %198 = arith.addf %197, %196 : vector<16x192xf32>
    %199 = arith.divf %197, %198 : vector<16x192xf32>
    %200 = vector.extract_strided_slice %188 {offsets = [0, 192], sizes = [16, 64], strides = [1, 1]} : vector<16x256xf32> to vector<16x64xf32>
    %201 = math.tanh %200 : vector<16x64xf32>
    %202 = vector.extract_strided_slice %193 {offsets = [0, 0], sizes = [16, 192], strides = [1, 1]} : vector<16x256xf32> to vector<16x192xf32>
    %203 = arith.negf %202 : vector<16x192xf32>
    %204 = math.exp %203 : vector<16x192xf32>
    %cst_58 = arith.constant 1.000000e+00 : f32
    %205 = vector.broadcast %cst_58 : f32 to vector<16x192xf32>
    %206 = arith.addf %205, %204 : vector<16x192xf32>
    %207 = arith.divf %205, %206 : vector<16x192xf32>
    %208 = vector.extract_strided_slice %193 {offsets = [0, 192], sizes = [16, 64], strides = [1, 1]} : vector<16x256xf32> to vector<16x64xf32>
    %209 = math.tanh %208 : vector<16x64xf32>
    %210 = vector.extract_strided_slice %199 {offsets = [0, 64], sizes = [16, 64], strides = [1, 1]} : vector<16x192xf32> to vector<16x64xf32>
    %211 = arith.mulf %210, %172 : vector<16x64xf32>
    %212 = vector.extract_strided_slice %199 {offsets = [0, 0], sizes = [16, 64], strides = [1, 1]} : vector<16x192xf32> to vector<16x64xf32>
    %213 = arith.mulf %212, %201 : vector<16x64xf32>
    %214 = arith.addf %211, %213 : vector<16x64xf32>
    %215 = vector.extract_strided_slice %207 {offsets = [0, 64], sizes = [16, 64], strides = [1, 1]} : vector<16x192xf32> to vector<16x64xf32>
    %216 = arith.mulf %215, %177 : vector<16x64xf32>
    %217 = vector.extract_strided_slice %207 {offsets = [0, 0], sizes = [16, 64], strides = [1, 1]} : vector<16x192xf32> to vector<16x64xf32>
    %218 = arith.mulf %217, %209 : vector<16x64xf32>
    %219 = arith.addf %216, %218 : vector<16x64xf32>
    %220 = vector.extract_strided_slice %199 {offsets = [0, 128], sizes = [16, 64], strides = [1, 1]} : vector<16x192xf32> to vector<16x64xf32>
    %221 = math.tanh %214 : vector<16x64xf32>
    %222 = arith.mulf %220, %221 : vector<16x64xf32>
    %223 = vector.extract_strided_slice %207 {offsets = [0, 128], sizes = [16, 64], strides = [1, 1]} : vector<16x192xf32> to vector<16x64xf32>
    %224 = math.tanh %219 : vector<16x64xf32>
    %225 = arith.mulf %223, %224 : vector<16x64xf32>
    %c5_59 = arith.constant 5 : index
    %c0_60 = arith.constant 0 : index
    %c0_61 = arith.constant 0 : index
    %226 = vector.load %arg16[%c5_59, %c0_60, %c0_61] : memref<8x16x512xf32, #tpu.memory_space<vmem>>, vector<1x16x256xf32>
    %227 = vector.shape_cast %226 : vector<1x16x256xf32> to vector<16x256xf32>
    %228 = arith.truncf %222 : vector<16x64xf32> to vector<16x64xbf16>
    %cst_62 = arith.constant dense<0.000000e+00> : vector<16x256xf32>
    %229 = tpu.matmul %228, %10, %cst_62 {dimension_numbers = #tpu.dot_dimension_numbers<[1], [0], [0], [1], [0, 0, 1, 1], [], []>} : vector<16x64xbf16>, vector<64x256xbf16>, vector<16x256xf32> -> vector<16x256xf32>
    %230 = arith.addf %227, %229 : vector<16x256xf32>
    %c2_63 = arith.constant 2 : index
    %c0_64 = arith.constant 0 : index
    %c256_65 = arith.constant 256 : index
    %231 = vector.load %arg16[%c2_63, %c0_64, %c256_65] : memref<8x16x512xf32, #tpu.memory_space<vmem>>, vector<1x16x256xf32>
    %232 = vector.shape_cast %231 : vector<1x16x256xf32> to vector<16x256xf32>
    %233 = arith.truncf %225 : vector<16x64xf32> to vector<16x64xbf16>
    %cst_66 = arith.constant dense<0.000000e+00> : vector<16x256xf32>
    %234 = tpu.matmul %233, %11, %cst_66 {dimension_numbers = #tpu.dot_dimension_numbers<[1], [0], [0], [1], [0, 0, 1, 1], [], []>} : vector<16x64xbf16>, vector<64x256xbf16>, vector<16x256xf32> -> vector<16x256xf32>
    %235 = arith.addf %232, %234 : vector<16x256xf32>
    %236 = vector.extract_strided_slice %230 {offsets = [0, 0], sizes = [16, 192], strides = [1, 1]} : vector<16x256xf32> to vector<16x192xf32>
    %237 = arith.negf %236 : vector<16x192xf32>
    %238 = math.exp %237 : vector<16x192xf32>
    %cst_67 = arith.constant 1.000000e+00 : f32
    %239 = vector.broadcast %cst_67 : f32 to vector<16x192xf32>
    %240 = arith.addf %239, %238 : vector<16x192xf32>
    %241 = arith.divf %239, %240 : vector<16x192xf32>
    %242 = vector.extract_strided_slice %230 {offsets = [0, 192], sizes = [16, 64], strides = [1, 1]} : vector<16x256xf32> to vector<16x64xf32>
    %243 = math.tanh %242 : vector<16x64xf32>
    %244 = vector.extract_strided_slice %235 {offsets = [0, 0], sizes = [16, 192], strides = [1, 1]} : vector<16x256xf32> to vector<16x192xf32>
    %245 = arith.negf %244 : vector<16x192xf32>
    %246 = math.exp %245 : vector<16x192xf32>
    %cst_68 = arith.constant 1.000000e+00 : f32
    %247 = vector.broadcast %cst_68 : f32 to vector<16x192xf32>
    %248 = arith.addf %247, %246 : vector<16x192xf32>
    %249 = arith.divf %247, %248 : vector<16x192xf32>
    %250 = vector.extract_strided_slice %235 {offsets = [0, 192], sizes = [16, 64], strides = [1, 1]} : vector<16x256xf32> to vector<16x64xf32>
    %251 = math.tanh %250 : vector<16x64xf32>
    %252 = vector.extract_strided_slice %241 {offsets = [0, 64], sizes = [16, 64], strides = [1, 1]} : vector<16x192xf32> to vector<16x64xf32>
    %253 = arith.mulf %252, %214 : vector<16x64xf32>
    %254 = vector.extract_strided_slice %241 {offsets = [0, 0], sizes = [16, 64], strides = [1, 1]} : vector<16x192xf32> to vector<16x64xf32>
    %255 = arith.mulf %254, %243 : vector<16x64xf32>
    %256 = arith.addf %253, %255 : vector<16x64xf32>
    %257 = vector.extract_strided_slice %249 {offsets = [0, 64], sizes = [16, 64], strides = [1, 1]} : vector<16x192xf32> to vector<16x64xf32>
    %258 = arith.mulf %257, %219 : vector<16x64xf32>
    %259 = vector.extract_strided_slice %249 {offsets = [0, 0], sizes = [16, 64], strides = [1, 1]} : vector<16x192xf32> to vector<16x64xf32>
    %260 = arith.mulf %259, %251 : vector<16x64xf32>
    %261 = arith.addf %258, %260 : vector<16x64xf32>
    %262 = vector.extract_strided_slice %241 {offsets = [0, 128], sizes = [16, 64], strides = [1, 1]} : vector<16x192xf32> to vector<16x64xf32>
    %263 = math.tanh %256 : vector<16x64xf32>
    %264 = arith.mulf %262, %263 : vector<16x64xf32>
    %265 = vector.extract_strided_slice %249 {offsets = [0, 128], sizes = [16, 64], strides = [1, 1]} : vector<16x192xf32> to vector<16x64xf32>
    %266 = math.tanh %261 : vector<16x64xf32>
    %267 = arith.mulf %265, %266 : vector<16x64xf32>
    %c6_69 = arith.constant 6 : index
    %c0_70 = arith.constant 0 : index
    %c0_71 = arith.constant 0 : index
    %268 = vector.load %arg16[%c6_69, %c0_70, %c0_71] : memref<8x16x512xf32, #tpu.memory_space<vmem>>, vector<1x16x256xf32>
    %269 = vector.shape_cast %268 : vector<1x16x256xf32> to vector<16x256xf32>
    %270 = arith.truncf %264 : vector<16x64xf32> to vector<16x64xbf16>
    %cst_72 = arith.constant dense<0.000000e+00> : vector<16x256xf32>
    %271 = tpu.matmul %270, %10, %cst_72 {dimension_numbers = #tpu.dot_dimension_numbers<[1], [0], [0], [1], [0, 0, 1, 1], [], []>} : vector<16x64xbf16>, vector<64x256xbf16>, vector<16x256xf32> -> vector<16x256xf32>
    %272 = arith.addf %269, %271 : vector<16x256xf32>
    %c1_73 = arith.constant 1 : index
    %c0_74 = arith.constant 0 : index
    %c256_75 = arith.constant 256 : index
    %273 = vector.load %arg16[%c1_73, %c0_74, %c256_75] : memref<8x16x512xf32, #tpu.memory_space<vmem>>, vector<1x16x256xf32>
    %274 = vector.shape_cast %273 : vector<1x16x256xf32> to vector<16x256xf32>
    %275 = arith.truncf %267 : vector<16x64xf32> to vector<16x64xbf16>
    %cst_76 = arith.constant dense<0.000000e+00> : vector<16x256xf32>
    %276 = tpu.matmul %275, %11, %cst_76 {dimension_numbers = #tpu.dot_dimension_numbers<[1], [0], [0], [1], [0, 0, 1, 1], [], []>} : vector<16x64xbf16>, vector<64x256xbf16>, vector<16x256xf32> -> vector<16x256xf32>
    %277 = arith.addf %274, %276 : vector<16x256xf32>
    %278 = vector.extract_strided_slice %272 {offsets = [0, 0], sizes = [16, 192], strides = [1, 1]} : vector<16x256xf32> to vector<16x192xf32>
    %279 = arith.negf %278 : vector<16x192xf32>
    %280 = math.exp %279 : vector<16x192xf32>
    %cst_77 = arith.constant 1.000000e+00 : f32
    %281 = vector.broadcast %cst_77 : f32 to vector<16x192xf32>
    %282 = arith.addf %281, %280 : vector<16x192xf32>
    %283 = arith.divf %281, %282 : vector<16x192xf32>
    %284 = vector.extract_strided_slice %272 {offsets = [0, 192], sizes = [16, 64], strides = [1, 1]} : vector<16x256xf32> to vector<16x64xf32>
    %285 = math.tanh %284 : vector<16x64xf32>
    %286 = vector.extract_strided_slice %277 {offsets = [0, 0], sizes = [16, 192], strides = [1, 1]} : vector<16x256xf32> to vector<16x192xf32>
    %287 = arith.negf %286 : vector<16x192xf32>
    %288 = math.exp %287 : vector<16x192xf32>
    %cst_78 = arith.constant 1.000000e+00 : f32
    %289 = vector.broadcast %cst_78 : f32 to vector<16x192xf32>
    %290 = arith.addf %289, %288 : vector<16x192xf32>
    %291 = arith.divf %289, %290 : vector<16x192xf32>
    %292 = vector.extract_strided_slice %277 {offsets = [0, 192], sizes = [16, 64], strides = [1, 1]} : vector<16x256xf32> to vector<16x64xf32>
    %293 = math.tanh %292 : vector<16x64xf32>
    %294 = vector.extract_strided_slice %283 {offsets = [0, 64], sizes = [16, 64], strides = [1, 1]} : vector<16x192xf32> to vector<16x64xf32>
    %295 = arith.mulf %294, %256 : vector<16x64xf32>
    %296 = vector.extract_strided_slice %283 {offsets = [0, 0], sizes = [16, 64], strides = [1, 1]} : vector<16x192xf32> to vector<16x64xf32>
    %297 = arith.mulf %296, %285 : vector<16x64xf32>
    %298 = arith.addf %295, %297 : vector<16x64xf32>
    %299 = vector.extract_strided_slice %291 {offsets = [0, 64], sizes = [16, 64], strides = [1, 1]} : vector<16x192xf32> to vector<16x64xf32>
    %300 = arith.mulf %299, %261 : vector<16x64xf32>
    %301 = vector.extract_strided_slice %291 {offsets = [0, 0], sizes = [16, 64], strides = [1, 1]} : vector<16x192xf32> to vector<16x64xf32>
    %302 = arith.mulf %301, %293 : vector<16x64xf32>
    %303 = arith.addf %300, %302 : vector<16x64xf32>
    %304 = vector.extract_strided_slice %283 {offsets = [0, 128], sizes = [16, 64], strides = [1, 1]} : vector<16x192xf32> to vector<16x64xf32>
    %305 = math.tanh %298 : vector<16x64xf32>
    %306 = arith.mulf %304, %305 : vector<16x64xf32>
    %307 = vector.extract_strided_slice %291 {offsets = [0, 128], sizes = [16, 64], strides = [1, 1]} : vector<16x192xf32> to vector<16x64xf32>
    %308 = math.tanh %303 : vector<16x64xf32>
    %309 = arith.mulf %307, %308 : vector<16x64xf32>
    %c7_79 = arith.constant 7 : index
    %c0_80 = arith.constant 0 : index
    %c0_81 = arith.constant 0 : index
    %310 = vector.load %arg16[%c7_79, %c0_80, %c0_81] : memref<8x16x512xf32, #tpu.memory_space<vmem>>, vector<1x16x256xf32>
    %311 = vector.shape_cast %310 : vector<1x16x256xf32> to vector<16x256xf32>
    %312 = arith.truncf %306 : vector<16x64xf32> to vector<16x64xbf16>
    %cst_82 = arith.constant dense<0.000000e+00> : vector<16x256xf32>
    %313 = tpu.matmul %312, %10, %cst_82 {dimension_numbers = #tpu.dot_dimension_numbers<[1], [0], [0], [1], [0, 0, 1, 1], [], []>} : vector<16x64xbf16>, vector<64x256xbf16>, vector<16x256xf32> -> vector<16x256xf32>
    %314 = arith.addf %311, %313 : vector<16x256xf32>
    %c0_83 = arith.constant 0 : index
    %c0_84 = arith.constant 0 : index
    %c256_85 = arith.constant 256 : index
    %315 = vector.load %arg16[%c0_83, %c0_84, %c256_85] : memref<8x16x512xf32, #tpu.memory_space<vmem>>, vector<1x16x256xf32>
    %316 = vector.shape_cast %315 : vector<1x16x256xf32> to vector<16x256xf32>
    %317 = arith.truncf %309 : vector<16x64xf32> to vector<16x64xbf16>
    %cst_86 = arith.constant dense<0.000000e+00> : vector<16x256xf32>
    %318 = tpu.matmul %317, %11, %cst_86 {dimension_numbers = #tpu.dot_dimension_numbers<[1], [0], [0], [1], [0, 0, 1, 1], [], []>} : vector<16x64xbf16>, vector<64x256xbf16>, vector<16x256xf32> -> vector<16x256xf32>
    %319 = arith.addf %316, %318 : vector<16x256xf32>
    %320 = vector.extract_strided_slice %314 {offsets = [0, 0], sizes = [16, 192], strides = [1, 1]} : vector<16x256xf32> to vector<16x192xf32>
    %321 = arith.negf %320 : vector<16x192xf32>
    %322 = math.exp %321 : vector<16x192xf32>
    %cst_87 = arith.constant 1.000000e+00 : f32
    %323 = vector.broadcast %cst_87 : f32 to vector<16x192xf32>
    %324 = arith.addf %323, %322 : vector<16x192xf32>
    %325 = arith.divf %323, %324 : vector<16x192xf32>
    %326 = vector.extract_strided_slice %314 {offsets = [0, 192], sizes = [16, 64], strides = [1, 1]} : vector<16x256xf32> to vector<16x64xf32>
    %327 = math.tanh %326 : vector<16x64xf32>
    %328 = vector.extract_strided_slice %319 {offsets = [0, 0], sizes = [16, 192], strides = [1, 1]} : vector<16x256xf32> to vector<16x192xf32>
    %329 = arith.negf %328 : vector<16x192xf32>
    %330 = math.exp %329 : vector<16x192xf32>
    %cst_88 = arith.constant 1.000000e+00 : f32
    %331 = vector.broadcast %cst_88 : f32 to vector<16x192xf32>
    %332 = arith.addf %331, %330 : vector<16x192xf32>
    %333 = arith.divf %331, %332 : vector<16x192xf32>
    %334 = vector.extract_strided_slice %319 {offsets = [0, 192], sizes = [16, 64], strides = [1, 1]} : vector<16x256xf32> to vector<16x64xf32>
    %335 = math.tanh %334 : vector<16x64xf32>
    %336 = vector.extract_strided_slice %325 {offsets = [0, 64], sizes = [16, 64], strides = [1, 1]} : vector<16x192xf32> to vector<16x64xf32>
    %337 = arith.mulf %336, %298 : vector<16x64xf32>
    %338 = vector.extract_strided_slice %325 {offsets = [0, 0], sizes = [16, 64], strides = [1, 1]} : vector<16x192xf32> to vector<16x64xf32>
    %339 = arith.mulf %338, %327 : vector<16x64xf32>
    %340 = arith.addf %337, %339 : vector<16x64xf32>
    %341 = vector.extract_strided_slice %333 {offsets = [0, 64], sizes = [16, 64], strides = [1, 1]} : vector<16x192xf32> to vector<16x64xf32>
    %342 = arith.mulf %341, %303 : vector<16x64xf32>
    %343 = vector.extract_strided_slice %333 {offsets = [0, 0], sizes = [16, 64], strides = [1, 1]} : vector<16x192xf32> to vector<16x64xf32>
    %344 = arith.mulf %343, %335 : vector<16x64xf32>
    %345 = arith.addf %342, %344 : vector<16x64xf32>
    %346 = vector.extract_strided_slice %325 {offsets = [0, 128], sizes = [16, 64], strides = [1, 1]} : vector<16x192xf32> to vector<16x64xf32>
    %347 = math.tanh %340 : vector<16x64xf32>
    %348 = arith.mulf %346, %347 : vector<16x64xf32>
    %349 = vector.extract_strided_slice %333 {offsets = [0, 128], sizes = [16, 64], strides = [1, 1]} : vector<16x192xf32> to vector<16x64xf32>
    %350 = math.tanh %345 : vector<16x64xf32>
    %351 = arith.mulf %349, %350 : vector<16x64xf32>
    %352 = tpu.concatenate %54, %351 in 1 : vector<16x64xf32>, vector<16x64xf32> -> vector<16x128xf32>
    %353 = tpu.concatenate %96, %309 in 1 : vector<16x64xf32>, vector<16x64xf32> -> vector<16x128xf32>
    %354 = tpu.concatenate %138, %267 in 1 : vector<16x64xf32>, vector<16x64xf32> -> vector<16x128xf32>
    %355 = tpu.concatenate %180, %225 in 1 : vector<16x64xf32>, vector<16x64xf32> -> vector<16x128xf32>
    %356 = tpu.concatenate %222, %183 in 1 : vector<16x64xf32>, vector<16x64xf32> -> vector<16x128xf32>
    %357 = tpu.concatenate %264, %141 in 1 : vector<16x64xf32>, vector<16x64xf32> -> vector<16x128xf32>
    %358 = tpu.concatenate %306, %99 in 1 : vector<16x64xf32>, vector<16x64xf32> -> vector<16x128xf32>
    %359 = tpu.concatenate %348, %57 in 1 : vector<16x64xf32>, vector<16x64xf32> -> vector<16x128xf32>
    %360 = vector.shape_cast %352 : vector<16x128xf32> to vector<1x16x128xf32>
    %361 = vector.shape_cast %353 : vector<16x128xf32> to vector<1x16x128xf32>
    %362 = vector.shape_cast %354 : vector<16x128xf32> to vector<1x16x128xf32>
    %363 = vector.shape_cast %355 : vector<16x128xf32> to vector<1x16x128xf32>
    %364 = vector.shape_cast %356 : vector<16x128xf32> to vector<1x16x128xf32>
    %365 = vector.shape_cast %357 : vector<16x128xf32> to vector<1x16x128xf32>
    %366 = vector.shape_cast %358 : vector<16x128xf32> to vector<1x16x128xf32>
    %367 = vector.shape_cast %359 : vector<16x128xf32> to vector<1x16x128xf32>
    %368 = tpu.concatenate %360, %361, %362, %363, %364, %365, %366, %367 in 0 : vector<1x16x128xf32>, vector<1x16x128xf32>, vector<1x16x128xf32>, vector<1x16x128xf32>, vector<1x16x128xf32>, vector<1x16x128xf32>, vector<1x16x128xf32>, vector<1x16x128xf32> -> vector<8x16x128xf32>
    %369 = arith.truncf %368 : vector<8x16x128xf32> to vector<8x16x128xbf16>
    %370 = vector.shape_cast %369 : vector<8x16x128xbf16> to vector<128x128xbf16>
    %c0_89 = arith.constant 0 : index
    %c0_90 = arith.constant 0 : index
    %371 = vector.load %arg6[%c0_89, %c0_90] : memref<128x128xbf16, #tpu.memory_space<vmem>>, vector<128x128xbf16>
    %cst_91 = arith.constant dense<0.000000e+00> : vector<128x128xf32>
    %372 = tpu.matmul %370, %371, %cst_91 {dimension_numbers = #tpu.dot_dimension_numbers<[1], [0], [0], [1], [0, 0, 1, 1], [], []>} : vector<128x128xbf16>, vector<128x128xbf16>, vector<128x128xf32> -> vector<128x128xf32>
    %c0_92 = arith.constant 0 : index
    %c0_93 = arith.constant 0 : index
    %373 = vector.load %arg7[%c0_92, %c0_93] : memref<1x128xf32, #tpu.memory_space<vmem>>, vector<1x128xf32>
    %374 = vector.broadcast %373 : vector<1x128xf32> to vector<128x128xf32>
    %375 = arith.addf %372, %374 : vector<128x128xf32>
    %cst_94 = arith.constant 0.000000e+00 : f32
    %376 = vector.broadcast %cst_94 : f32 to vector<128x128xf32>
    %377 = arith.maximumf %375, %376 : vector<128x128xf32>
    %378 = arith.truncf %377 : vector<128x128xf32> to vector<128x128xbf16>
    %c0_95 = arith.constant 0 : index
    %c0_96 = arith.constant 0 : index
    %379 = vector.load %arg8[%c0_95, %c0_96] : memref<128x128xbf16, #tpu.memory_space<vmem>>, vector<128x128xbf16>
    %cst_97 = arith.constant dense<0.000000e+00> : vector<128x128xf32>
    %380 = tpu.matmul %378, %379, %cst_97 {dimension_numbers = #tpu.dot_dimension_numbers<[1], [0], [0], [1], [0, 0, 1, 1], [], []>} : vector<128x128xbf16>, vector<128x128xbf16>, vector<128x128xf32> -> vector<128x128xf32>
    %c0_98 = arith.constant 0 : index
    %c0_99 = arith.constant 0 : index
    %381 = vector.load %arg9[%c0_98, %c0_99] : memref<1x128xf32, #tpu.memory_space<vmem>>, vector<1x128xf32>
    %382 = vector.broadcast %381 : vector<1x128xf32> to vector<128x128xf32>
    %383 = arith.addf %380, %382 : vector<128x128xf32>
    %384 = vector.shape_cast %383 : vector<128x128xf32> to vector<8x16x128xf32>
    %cst_100 = arith.constant dense<0xFF800000> : vector<16x128xf32>
    %385 = vector.multi_reduction <maximumf>, %384, %cst_100 [0] : vector<8x16x128xf32> to vector<16x128xf32>
    %386 = vector.shape_cast %385 : vector<16x128xf32> to vector<1x16x128xf32>
    %387 = vector.broadcast %386 : vector<1x16x128xf32> to vector<8x16x128xf32>
    %388 = arith.subf %384, %387 : vector<8x16x128xf32>
    %389 = math.exp %388 : vector<8x16x128xf32>
    %cst_101 = arith.constant dense<0.000000e+00> : vector<16x128xf32>
    %390 = vector.multi_reduction <add>, %389, %cst_101 [0] : vector<8x16x128xf32> to vector<16x128xf32>
    %391 = vector.shape_cast %390 : vector<16x128xf32> to vector<1x16x128xf32>
    %392 = vector.broadcast %391 : vector<1x16x128xf32> to vector<8x16x128xf32>
    %393 = arith.divf %389, %392 : vector<8x16x128xf32>
    %c0_102 = arith.constant 0 : index
    %c0_103 = arith.constant 0 : index
    %c0_104 = arith.constant 0 : index
    %394 = vector.load %arg15[%c0_102, %c0_103, %c0_104] : memref<8x16x128xf32, #tpu.memory_space<vmem>>, vector<8x16x128xf32>
    tpu.vector_store %arg15[%c0_102, %c0_103, %c0_104], %393 {strides = array<i32>} : memref<8x16x128xf32, #tpu.memory_space<vmem>>, vector<8x16x128xf32>,
    %395 = vector.extract_strided_slice %393 {offsets = [0, 0, 0], sizes = [8, 16, 1], strides = [1, 1, 1]} : vector<8x16x128xf32> to vector<8x16x1xf32>
    %396 = vector.broadcast %395 : vector<8x16x1xf32> to vector<8x16x128xf32>
    %397 = arith.mulf %368, %396 : vector<8x16x128xf32>
    %cst_105 = arith.constant dense<0.000000e+00> : vector<16x128xf32>
    %398 = vector.multi_reduction <add>, %397, %cst_105 [0] : vector<8x16x128xf32> to vector<16x128xf32>
    %399 = arith.truncf %398 : vector<16x128xf32> to vector<16x128xbf16>
    %400 = vector.extract_strided_slice %393 {offsets = [0, 0, 1], sizes = [8, 16, 1], strides = [1, 1, 1]} : vector<8x16x128xf32> to vector<8x16x1xf32>
    %401 = vector.broadcast %400 : vector<8x16x1xf32> to vector<8x16x128xf32>
    %402 = arith.mulf %368, %401 : vector<8x16x128xf32>
    %cst_106 = arith.constant dense<0.000000e+00> : vector<16x128xf32>
    %403 = vector.multi_reduction <add>, %402, %cst_106 [0] : vector<8x16x128xf32> to vector<16x128xf32>
    %404 = arith.truncf %403 : vector<16x128xf32> to vector<16x128xbf16>
    %405 = vector.extract_strided_slice %393 {offsets = [0, 0, 2], sizes = [8, 16, 1], strides = [1, 1, 1]} : vector<8x16x128xf32> to vector<8x16x1xf32>
    %406 = vector.broadcast %405 : vector<8x16x1xf32> to vector<8x16x128xf32>
    %407 = arith.mulf %368, %406 : vector<8x16x128xf32>
    %cst_107 = arith.constant dense<0.000000e+00> : vector<16x128xf32>
    %408 = vector.multi_reduction <add>, %407, %cst_107 [0] : vector<8x16x128xf32> to vector<16x128xf32>
    %409 = arith.truncf %408 : vector<16x128xf32> to vector<16x128xbf16>
    %c0_108 = arith.constant 0 : index
    %c0_109 = arith.constant 0 : index
    %410 = vector.load %arg10[%c0_108, %c0_109] : memref<384x128xbf16, #tpu.memory_space<vmem>>, vector<128x128xbf16>
    %cst_110 = arith.constant dense<0.000000e+00> : vector<16x128xf32>
    %411 = tpu.matmul %399, %410, %cst_110 {dimension_numbers = #tpu.dot_dimension_numbers<[1], [0], [0], [1], [0, 0, 1, 1], [], []>} : vector<16x128xbf16>, vector<128x128xbf16>, vector<16x128xf32> -> vector<16x128xf32>
    %c128 = arith.constant 128 : index
    %c0_111 = arith.constant 0 : index
    %412 = vector.load %arg10[%c128, %c0_111] : memref<384x128xbf16, #tpu.memory_space<vmem>>, vector<128x128xbf16>
    %cst_112 = arith.constant dense<0.000000e+00> : vector<16x128xf32>
    %413 = tpu.matmul %404, %412, %cst_112 {dimension_numbers = #tpu.dot_dimension_numbers<[1], [0], [0], [1], [0, 0, 1, 1], [], []>} : vector<16x128xbf16>, vector<128x128xbf16>, vector<16x128xf32> -> vector<16x128xf32>
    %414 = arith.addf %411, %413 : vector<16x128xf32>
    %c256_113 = arith.constant 256 : index
    %c0_114 = arith.constant 0 : index
    %415 = vector.load %arg10[%c256_113, %c0_114] : memref<384x128xbf16, #tpu.memory_space<vmem>>, vector<128x128xbf16>
    %cst_115 = arith.constant dense<0.000000e+00> : vector<16x128xf32>
    %416 = tpu.matmul %409, %415, %cst_115 {dimension_numbers = #tpu.dot_dimension_numbers<[1], [0], [0], [1], [0, 0, 1, 1], [], []>} : vector<16x128xbf16>, vector<128x128xbf16>, vector<16x128xf32> -> vector<16x128xf32>
    %417 = arith.addf %414, %416 : vector<16x128xf32>
    %c0_116 = arith.constant 0 : index
    %c0_117 = arith.constant 0 : index
    %418 = vector.load %arg11[%c0_116, %c0_117] : memref<1x128xf32, #tpu.memory_space<vmem>>, vector<1x128xf32>
    %419 = vector.broadcast %418 : vector<1x128xf32> to vector<16x128xf32>
    %420 = arith.addf %417, %419 : vector<16x128xf32>
    %421 = arith.truncf %420 : vector<16x128xf32> to vector<16x128xbf16>
    %c0_118 = arith.constant 0 : index
    %c0_119 = arith.constant 0 : index
    %422 = vector.load %arg12[%c0_118, %c0_119] : memref<128x128xbf16, #tpu.memory_space<vmem>>, vector<128x128xbf16>
    %cst_120 = arith.constant dense<0.000000e+00> : vector<16x128xf32>
    %423 = tpu.matmul %421, %422, %cst_120 {dimension_numbers = #tpu.dot_dimension_numbers<[1], [0], [0], [1], [0, 0, 1, 1], [], []>} : vector<16x128xbf16>, vector<128x128xbf16>, vector<16x128xf32> -> vector<16x128xf32>
    %c0_121 = arith.constant 0 : index
    %c0_122 = arith.constant 0 : index
    %424 = vector.load %arg13[%c0_121, %c0_122] : memref<1x128xf32, #tpu.memory_space<vmem>>, vector<1x128xf32>
    %425 = vector.broadcast %424 : vector<1x128xf32> to vector<16x128xf32>
    %426 = arith.addf %423, %425 : vector<16x128xf32>
    %c0_123 = arith.constant 0 : index
    %c0_124 = arith.constant 0 : index
    %427 = vector.load %arg14[%c0_123, %c0_124] : memref<16x128xf32, #tpu.memory_space<vmem>>, vector<16x128xf32>
    tpu.vector_store %arg14[%c0_123, %c0_124], %426 {strides = array<i32>} : memref<16x128xf32, #tpu.memory_space<vmem>>, vector<16x128xf32>,
    return
  }
  func.func @transform_0(%arg0: i32) -> (i32, i32, i32) {
    %c0_i32 = arith.constant 0 : i32
    %c0_i32_0 = arith.constant 0 : i32
    %c0_i32_1 = arith.constant 0 : i32
    return %c0_i32, %arg0, %c0_i32_0 : i32, i32, i32
  }
  func.func @transform_1(%arg0: i32) -> (i32, i32) {
    %c0_i32 = arith.constant 0 : i32
    %c0_i32_0 = arith.constant 0 : i32
    %c0_i32_1 = arith.constant 0 : i32
    return %c0_i32, %c0_i32_0 : i32, i32
  }
  func.func @transform_2(%arg0: i32) -> (i32, i32) {
    %c0_i32 = arith.constant 0 : i32
    %c0_i32_0 = arith.constant 0 : i32
    %c0_i32_1 = arith.constant 0 : i32
    return %c0_i32, %c0_i32_0 : i32, i32
  }
  func.func @transform_3(%arg0: i32) -> (i32, i32) {
    %c0_i32 = arith.constant 0 : i32
    %c0_i32_0 = arith.constant 0 : i32
    %c0_i32_1 = arith.constant 0 : i32
    return %c0_i32, %c0_i32_0 : i32, i32
  }
  func.func @transform_4(%arg0: i32) -> (i32, i32) {
    %c0_i32 = arith.constant 0 : i32
    %c0_i32_0 = arith.constant 0 : i32
    %c0_i32_1 = arith.constant 0 : i32
    return %c0_i32, %c0_i32_0 : i32, i32
  }
  func.func @transform_5(%arg0: i32) -> (i32, i32) {
    %c0_i32 = arith.constant 0 : i32
    %c0_i32_0 = arith.constant 0 : i32
    %c0_i32_1 = arith.constant 0 : i32
    return %c0_i32, %c0_i32_0 : i32, i32
  }
  func.func @transform_6(%arg0: i32) -> (i32, i32) {
    %c0_i32 = arith.constant 0 : i32
    %c0_i32_0 = arith.constant 0 : i32
    %c0_i32_1 = arith.constant 0 : i32
    return %c0_i32, %c0_i32_0 : i32, i32
  }
  func.func @transform_7(%arg0: i32) -> (i32, i32) {
    %c0_i32 = arith.constant 0 : i32
    %c0_i32_0 = arith.constant 0 : i32
    %c0_i32_1 = arith.constant 0 : i32
    return %c0_i32, %c0_i32_0 : i32, i32
  }
  func.func @transform_8(%arg0: i32) -> (i32, i32) {
    %c0_i32 = arith.constant 0 : i32
    %c0_i32_0 = arith.constant 0 : i32
    %c0_i32_1 = arith.constant 0 : i32
    return %c0_i32, %c0_i32_0 : i32, i32
  }
  func.func @transform_9(%arg0: i32) -> (i32, i32) {
    %c0_i32 = arith.constant 0 : i32
    %c0_i32_0 = arith.constant 0 : i32
    %c0_i32_1 = arith.constant 0 : i32
    return %c0_i32, %c0_i32_0 : i32, i32
  }
  func.func @transform_10(%arg0: i32) -> (i32, i32) {
    %c0_i32 = arith.constant 0 : i32
    %c0_i32_0 = arith.constant 0 : i32
    %c0_i32_1 = arith.constant 0 : i32
    return %c0_i32, %c0_i32_0 : i32, i32
  }
  func.func @transform_11(%arg0: i32) -> (i32, i32) {
    %c0_i32 = arith.constant 0 : i32
    %c0_i32_0 = arith.constant 0 : i32
    %c0_i32_1 = arith.constant 0 : i32
    return %c0_i32, %c0_i32_0 : i32, i32
  }
  func.func @transform_12(%arg0: i32) -> (i32, i32) {
    %c0_i32 = arith.constant 0 : i32
    %c0_i32_0 = arith.constant 0 : i32
    %c0_i32_1 = arith.constant 0 : i32
    return %c0_i32, %c0_i32_0 : i32, i32
  }
  func.func @transform_13(%arg0: i32) -> (i32, i32) {
    %c0_i32 = arith.constant 0 : i32
    %c0_i32_0 = arith.constant 0 : i32
    return %arg0, %c0_i32 : i32, i32
  }
  func.func @transform_14(%arg0: i32) -> (i32, i32, i32) {
    %c0_i32 = arith.constant 0 : i32
    %c0_i32_0 = arith.constant 0 : i32
    %c0_i32_1 = arith.constant 0 : i32
    return %c0_i32, %arg0, %c0_i32_0 : i32, i32, i32
  }
}

</mosaic_0001>

<bundles_post_ra>
// kernel: lstm_3attn_forward.1
= control target key start
LH: loop header
LB: loop body
LE: loop exit
PB: predicated region body
PF: predicated region fallthrough
CT: control target
= control target key end

     0   :  { %s7344_s0 = inlined_call_operand.vmem [shape: f32[8,32,8], index: 0, kind: input, shape index: {}]   ;;  %s7345_s1 = inlined_call_operand.vmem [shape: bf16[8,512], index: 1, kind: input, shape index: {}]   ;;  %s7346_s2 = inlined_call_operand.vmem [shape: f32[1,512], index: 2, kind: input, shape index: {}]   ;;  %s7347_s3 = inlined_call_operand.vmem [shape: bf16[64,256], index: 3, kind: input, shape index: {}]   ;;  %s7348_s4 = inlined_call_operand.vmem [shape: bf16[64,256], index: 4, kind: input, shape index: {}]   ;;  %s7349_s5 = inlined_call_operand.hbm [shape: bf16[128,128], index: 5, kind: input, shape index: {}]   ;;  %s7350_s6 = inlined_call_operand.vmem [shape: f32[1,128], index: 6, kind: input, shape index: {}]   ;;  %s7351_s7 = inlined_call_operand.hbm [shape: bf16[128,128], index: 7, kind: input, shape index: {}]   ;;  %s7352_s8 = inlined_call_operand.vmem [shape: f32[1,128], index: 8, kind: input, shape index: {}]   ;;  %s7353_s9 = inlined_call_operand.vmem [shape: bf16[384,128], index: 9, kind: input, shape index: {}]   ;;  %s7354_s10 = inlined_call_operand.vmem [shape: f32[1,128], index: 10, kind: input, shape index: {}]   ;;  %s7355_s11 = inlined_call_operand.hbm [shape: bf16[128,128], index: 11, kind: input, shape index: {}]   ;;  %s7356_s12 = inlined_call_operand.vmem [shape: f32[1,128], index: 12, kind: input, shape index: {}]   ;;  %s7357_s13 = inlined_call_operand.vmem [shape: f32[32,128], index: 13, kind: output, shape index: {0}]   ;;  %s7358_s14 = inlined_call_operand.vmem [shape: f32[8,32,128], index: 14, kind: output, shape index: {1}]  }
   0x1   :  { %7365 = sst [smem:[#allocation15_spill]] %s7352_s8 }
   0x2   :  { %7366 = sst [smem:[#allocation16_spill]] %s7353_s9 }
   0x3   :  { %7367 = sst [smem:[#allocation17_spill]] %s7354_s10 }
   0x4   :  { %7368 = sst [smem:[#allocation18_spill]] %s7356_s12 }
   0x5   :  { %7369 = sst [smem:[#allocation19_spill]] %s7357_s13 }
   0x6   :  { %7370 = sst [smem:[#allocation20_spill]] %s7358_s14 }
   0x7   :  { %20 = vsyncpa [#allocation5], 0 }
   0x8   :  { %21 = vsyncpa [#allocation7], 0  ;;  %s5804_s29 = smov 0   ;;  %s5806_s30 = smov 0  }
   0x9   :  { %s5808_s15 = smov 0  }
   0xa LB: > { %s5820_s16 = sadd.s32 4294967295, %s5716_s15   ;;  %s5823_s17 = sadd.s32 1, %s5716_s15   ;;  %s5716_s15 = sphi %s5808_s15, %s7393_s15   ;;  %s5712_s30 = sphi %s5806_s30, %s7396_s30   ;;  %s5708_s29 = sphi %s5804_s29, %s7395_s29  }
   0xb   : > { %7371 = sst [smem:[#allocation12_spill]] %s5823_s17  ;;  %s31_s18 = ssub.s32 %s5716_s15, %s5823_s17 }
   0xc   : > { %s34_s19 = sadd.s32 1, %s5712_s30  ;;  %p32_p0 = scmp.eq.s32.totalorder %s31_s18, 0 }
   0xd   : > { %p41_p1 = scmp.ne.s32.totalorder %s5712_s30, %s5708_s29  ;;  %p42_p2 = scmp.eq.s32.totalorder %s5716_s15, 0 }
   0xe   : > { %p349_p3 = scmp.eq.s32.totalorder %s5820_s16, 1  ;;  %p4468_p6 = scmp.ge.s32.totalorder %s5716_s15, 1 }
   0xf   : > { %s5833_s20 = scalar_select %p32_p0, %s5712_s30, %s34_s19  }
  0x10   : > { %p5835_p4 = por %p42_p2, %p41_p1  ;;  %p5839_p5 = por %p349_p3, %p41_p1 }
  0x11   : > { %7372 = sst [smem:[#allocation13_spill]] %s5833_s20  ;;  %p362_p7 = scmp.lt.s32.totalorder %s5716_s15, 3 }
  0x12   : > { %s7373_s21 = scalar_select %p5835_p4, 1, 0 }
  0x13   : > { %s7374_s22 = scalar_select %p5839_p5, 1, 0 }
  0x14   : > { %p7362_p8 = scmp.eq.s32.totalorder %s5820_s16, 0  ;;  %p5846_p9 = pnand %p4468_p6, %p362_p7 }
  0x15   : > { %7375 = sst [smem:[#allocation14_spill]] %s7374_s22  ;;  %s5718_s24 = smov [#allocation6]  }
  0x16   : > { %s7376_s23 = scalar_select %p5846_p9, 1, 0 }
  0x17   : > { %p5011_p10 = pneg %p5846_p9  ;;  %s402_s25 = sshll.u32 %s5718_s24, 4  ;;  %s5852_s25 = int_to_ptr.vmem [resolvable:$true] %s402_s25 }
  0x18   : > { %s5719_s27 = smov [#allocation4]   ;;  %s5720_s18 = smov [#allocation8]  }
  0x19   : > { %p5856_p11 = pnand %p7362_p8, %p5011_p10  ;;  %s386_s28 = sshll.u32 %s5719_s27, 4  ;;  %s5860_s28 = int_to_ptr.vmem [resolvable:$true] %s386_s28 }
  0x1a   : > { %s5862_s19 = sshll.u32 %s5720_s18, 4  ;;  %s5602_s14 = scalar_lea.hbm %s7351_s7, 1024  ;;  %s425_s19 = int_to_ptr.vmem [resolvable:$true] %s5862_s19 }
  0x1b   : > { %p5603_p12 = scmp.ne.s32.totalorder %s7351_s7, %s5602_s14  ;;  %p5872_p13 = pneg %p5856_p11 }
  0x1c   : > { %p5609_p2 = scmp.lt.u32.totalorder %s5602_s14, %s7351_s7 }
  0x1d   : > { %p5605_p0 = pnand %p5872_p13, %p5603_p12 }
  0x1f   : > { %p5606_p1 = pneg %p5605_p0 }
  0x21   : > { %p5611_p3 = pnand %p5609_p2, %p5606_p1 }
  0x23   : > { %5614 = shalt.err (!%p5611_p3)
}
  0x24   : > { %s5615_s17 = scalar_lea.vmem %s5852_s25, 1024  ;;  %p5623_p8 = scmp.lt.s32.totalorder %s5852_s25, %s5852_s25 }
  0x25   : > { %p5616_p6 = scmp.ne.s32.totalorder %s5852_s25, %s5615_s17  ;;  %p5624_p5 = scmp.lt.s32.totalorder %s5615_s17, %s5615_s17 }
  0x27   : > { %p5618_p7 = pnand %p5616_p6, %p5872_p13  ;;  %p5625_p12 = por %p5624_p5, %p5623_p8 }
  0x29   : > { %p5619_p10 = pneg %p5618_p7 }
  0x2b   : > { %p5626_p0 = pnand %p5625_p12, %p5619_p10 }
  0x2d   : > { %5629 = shalt.err (!%p5626_p0)
}
  0x2e   : > { %s5721_s20 = smov 64   ;;  %s5722_s14 = smov 4  }
  0x2f   : > { %5017 = dma.hbm_to_vmem [thread:$0]  (!%p5856_p11), %s7351_s7, 1024, %s5852_s25, [#allocation7], %s5721_s20, %s5721_s20, %s5722_s14  }
  0x30   : > { %s5630_s17 = scalar_lea.hbm %s7349_s5, 1024 }
  0x31   : > { %p5631_p5 = scmp.ne.s32.totalorder %s7349_s5, %s5630_s17  ;;  %p5637_p2 = scmp.lt.u32.totalorder %s5630_s17, %s7349_s5 }
  0x33   : > { %p5633_p8 = pnand %p5631_p5, %p5872_p13 }
  0x35   : > { %p5634_p1 = pneg %p5633_p8 }
  0x37   : > { %p5639_p3 = pnand %p5637_p2, %p5634_p1 }
  0x39   : > { %5642 = shalt.err (!%p5639_p3)
}
  0x3a   : > { %s5643_s25 = scalar_lea.vmem %s5860_s28, 1024  ;;  %p5651_p12 = scmp.lt.s32.totalorder %s5860_s28, %s5860_s28 }
  0x3b   : > { %p5644_p6 = scmp.ne.s32.totalorder %s5860_s28, %s5643_s25  ;;  %p5652_p0 = scmp.lt.s32.totalorder %s5643_s25, %s5643_s25 }
  0x3d   : > { %p5646_p7 = pnand %p5644_p6, %p5872_p13  ;;  %p5653_p5 = por %p5652_p0, %p5651_p12 }
  0x3f   : > { %p5647_p10 = pneg %p5646_p7 }
  0x41   : > { %p5654_p8 = pnand %p5653_p5, %p5647_p10 }
  0x43   : > { %5657 = shalt.err (!%p5654_p8)
}
  0x44   : > { %5014 = dma.hbm_to_vmem [thread:$0]  (!%p5856_p11), %s7349_s5, 1024, %s5860_s28, [#allocation5], %s5721_s20, %s5721_s20, %s5722_s14  }
  0x45   : > { %s5658_s22 = scalar_lea.hbm %s7355_s11, 1024 }
  0x46   : > { %p5659_p1 = scmp.ne.s32.totalorder %s7355_s11, %s5658_s22  ;;  %p5665_p6 = scmp.lt.u32.totalorder %s5658_s22, %s7355_s11 }
  0x48   : > { %p5661_p2 = pnand %p5659_p1, %p5872_p13 }
  0x4a   : > { %p5662_p3 = pneg %p5661_p2 }
  0x4c   : > { %p5667_p7 = pnand %p5665_p6, %p5662_p3 }
  0x4e   : > { %5670 = shalt.err (!%p5667_p7)
}
  0x4f   : > { %s5671_s25 = scalar_lea.vmem %s425_s19, 1024  ;;  %p5679_p5 = scmp.lt.s32.totalorder %s425_s19, %s425_s19 }
  0x50   : > { %p5672_p10 = scmp.ne.s32.totalorder %s425_s19, %s5671_s25  ;;  %p5680_p8 = scmp.lt.s32.totalorder %s5671_s25, %s5671_s25 }
  0x52   : > { %p5674_p12 = pnand %p5672_p10, %p5872_p13  ;;  %p5681_p9 = por %p5680_p8, %p5679_p5 }
  0x54   : > { %p5675_p0 = pneg %p5674_p12 }
  0x56   : > { %p5682_p4 = pnand %p5681_p9, %p5675_p0 }
  0x58   : > { %5685 = shalt.err (!%p5682_p4)
}
  0x59   : > { %5020 = dma.hbm_to_vmem [thread:$0]  (!%p5856_p11), %s7355_s11, 1024, %s425_s19, [#allocation7], %s5721_s20, %s5721_s20, %s5722_s14  }
  0x5a   : > { %p4472_p1 = scmp.ge.s32.totalorder %s5716_s15, 2 }
  0x5b   : > { %p7379_p13 = scmp.ne.s32.totalorder (!%p4472_p1), %s7373_s21, 0 }
  0x5c   : > { %437 = sbr.rel (%p4472_p1) target bundleno = 111 (0x6f), region = 64 }
  0x63   : > { %440 = sbr.rel (!%p7379_p13) target bundleno = 111 (0x6f), region = 68  ;;  %s442_s13 = sand.u32 (%p7379_p13), 1, %s5712_s30  }
  0x64   : > { %s4657_s9 = sshll.u32 (%p7379_p13), %s5716_s15, 4  ;;  %s4473_s10 = sshll.u32 (%p7379_p13), %s442_s13, 7 }
  0x65   : > { %s5952_s22 = scalar_lea.vmem (%p7379_p13), %s7344_s0, %s4657_s9  ;;  %s444_s21 = scalar_lea.vmem (%p7379_p13), [#allocation3], %s4473_s10 }
  0x66   : > { %v505_v0 = vld [vmem:[%s5952_s22] sm:$0xff] (%p7379_p13)  ;;  %v507_v1 = vld [vmem:[%s5952_s22 + $0x8] sm:$0xff] (%p7379_p13) }
  0x67   : > { %v509_v2 = vld [vmem:[%s5952_s22 + $0x20] sm:$0xff] (%p7379_p13)  ;;  %506 = vst [vmem:[%s444_s21] sm:$0xff] (%p7379_p13), %v505_v0  ;;  %508 = vst [vmem:[%s444_s21 + $0x8] sm:$0xff] (%p7379_p13), %v507_v1  ;;  %v511_v3 = vld [vmem:[%s5952_s22 + $0x28] sm:$0xff] (%p7379_p13) }
  0x68   : > { %510 = vst [vmem:[%s444_s21 + $0x10] sm:$0xff] (%p7379_p13), %v509_v2  ;;  %v513_v4 = vld [vmem:[%s5952_s22 + $0x40] sm:$0xff] (%p7379_p13)  ;;  %v515_v5 = vld [vmem:[%s5952_s22 + $0x48] sm:$0xff] (%p7379_p13)  ;;  %512 = vst [vmem:[%s444_s21 + $0x18] sm:$0xff] (%p7379_p13), %v511_v3 }
  0x69   : > { %514 = vst [vmem:[%s444_s21 + $0x20] sm:$0xff] (%p7379_p13), %v513_v4  ;;  %516 = vst [vmem:[%s444_s21 + $0x28] sm:$0xff] (%p7379_p13), %v515_v5  ;;  %v517_v6 = vld [vmem:[%s5952_s22 + $0x60] sm:$0xff] (%p7379_p13)  ;;  %v519_v7 = vld [vmem:[%s5952_s22 + $0x68] sm:$0xff] (%p7379_p13) }
  0x6a   : > { %v521_v8 = vld [vmem:[%s5952_s22 + $0x80] sm:$0xff]  ;;  %518 = vst [vmem:[%s444_s21 + $0x30] sm:$0xff] %v517_v6  ;;  %520 = vst [vmem:[%s444_s21 + $0x38] sm:$0xff] %v519_v7  ;;  %v523_v9 = vld [vmem:[%s5952_s22 + $0x88] sm:$0xff] }
  0x6b   : > { %522 = vst [vmem:[%s444_s21 + $0x40] sm:$0xff] %v521_v8  ;;  %v525_v10 = vld [vmem:[%s5952_s22 + $0xa0] sm:$0xff]  ;;  %v527_v11 = vld [vmem:[%s5952_s22 + $0xa8] sm:$0xff]  ;;  %524 = vst [vmem:[%s444_s21 + $0x48] sm:$0xff] %v523_v9 }
  0x6c   : > { %526 = vst [vmem:[%s444_s21 + $0x50] sm:$0xff] %v525_v10  ;;  %528 = vst [vmem:[%s444_s21 + $0x58] sm:$0xff] %v527_v11  ;;  %v529_v12 = vld [vmem:[%s5952_s22 + $0xc0] sm:$0xff]  ;;  %v531_v13 = vld [vmem:[%s5952_s22 + $0xc8] sm:$0xff] }
  0x6d   : > { %v533_v14 = vld [vmem:[%s5952_s22 + $0xe0] sm:$0xff]  ;;  %530 = vst [vmem:[%s444_s21 + $0x60] sm:$0xff] %v529_v12  ;;  %532 = vst [vmem:[%s444_s21 + $0x68] sm:$0xff] %v531_v13  ;;  %v535_v15 = vld [vmem:[%s5952_s22 + $0xe8] sm:$0xff] }
  0x6e   : > { %534 = vst [vmem:[%s444_s21 + $0x70] sm:$0xff] %v533_v14  ;;  %536 = vst [vmem:[%s444_s21 + $0x78] sm:$0xff] %v535_v15 }
  0x6f PF: > { %p7380_p4 = scmp.ne.s32.totalorder %s7376_s23, 0 }
  0x70   : > { %s548_s15 = sand.u32 (!%p7380_p4), 1, %s5708_s29   ;;  %p7381_p9 = scmp.eq.s32.totalorder (!%p7380_p4), %s5820_s16, 0 }
  0x71   : > { %545 = sbr.rel (%p7380_p4) target bundleno = 6259 (0x1873), region = 106  ;;  %s5973_s19 = sshll.u32 (!%p7380_p4), %s548_s15, 7 }
  0x72   : > { %s5976_s20 = scalar_lea.vmem (!%p7380_p4), [#allocation3], %s5973_s19 }
  0x78   : > { %5699 = dma.done.wait (%p7381_p9), [#allocation5], 1024   ;;  %p7382_p11 = pmov %p7381_p9 }
  0x79   : > { %p7383_p2 = pmov %p7381_p9 }
  0x7a   : > { %5701 = vsyncadd (%p7382_p11), [#allocation5], 4294966272 }
  0x7b   : > { %5703 = dma.done.wait (%p7383_p2), [#allocation7], 2048   ;;  %p7384_p3 = pmov %p7383_p2 }
  0x7c   : > { %v5723_v16 = vmov 0   ;;  %v643_v17 = vld [vmem:[%s7345_s1 + $0x8] sm:$0xff]  ;;  %vm701_vm0 = vcmask 1043456   ;;  %v618_v18 = vld [vmem:[%s5976_s20] sm:$0xff]  ;;  %vm676_vm1 = vcmask 64512   ;;  %v620_v31 = vld [vmem:[%s5976_s20 + $0x10] sm:$0xff]  ;;  %v646_v1 = vlaneseq }
  0x7d   : > { %5705 = vsyncadd (%p7384_p3), [#allocation7], 4294965248  ;;  %859 = vmatprep.mubr.bf16.mxu1 %v5723_v16  ;;  %746 = vmatprep.mubr.bf16.mxu0 %v5723_v16  ;;  %v619_v19 = vld [vmem:[%s5976_s20 + $0x8] sm:$0xff]  ;;  %v4487_v20 = vcombine.high %v643_v17, %v643_v17  ;;  %v4486_v21 = vcombine.low %v643_v17, %v643_v17  ;;  %v642_v23 = vld [vmem:[%s7345_s1] sm:$0xff]  ;;  %s5724_s23 = smov 64   ;;  %vm1064_vm2 = vcmask 523264  }
  0x7e   : > { %v5996_v22 = vld [vmem:[%s7348_s4 + $0x4] ss:$8 sps:$4 sm:$0xff]   ;;  %v634_v25 = vpack.c.bf16 %v619_v19, %v618_v18  ;;  %v4485_v26 = vcombine.high %v642_v23, %v642_v23  ;;  %v4484_v27 = vcombine.low %v642_v23, %v642_v23  ;;  %v6006_v28 = vld [vmem:[%s7348_s4] ss:$8 sps:$4 sm:$0xff]   ;;  %v6014_v30 = vld [vmem:[%s7348_s4 + $0x14] ss:$8 sps:$4 sm:$0xff]  }
  0x7f   : > { %4497 = vmatprep.subr.msk.bf16.mxu1 %vm701_vm0, %v4487_v20  ;;  %v709_v24 = vsel %vm701_vm0, %v4486_v21, 0  ;;  %v621_v32 = vld [vmem:[%s5976_s20 + $0x18] sm:$0xff]  ;;  %v6031_v34 = vld [vmem:[%s7348_s4 + $0x24] ss:$8 sps:$4 sm:$0xff]   ;;  %v6037_v36 = vld [vmem:[%s7348_s4 + $0x20] ss:$8 sps:$4 sm:$0xff]  }
  0x80   : > { %828 = vmatpush1.bf16.msra.mxu1 %v709_v24  ;;  %4488 = vmatprep.subr.msk.bf16.mxu0 %vm701_vm0, %v4485_v26  ;;  %v703_v29 = vsel %vm701_vm0, %v4484_v27, 0  ;;  %v6024_v33 = vld [vmem:[%s7348_s4 + $0x10] ss:$8 sps:$4 sm:$0xff]   ;;  %v635_v35 = vpack.c.bf16 %v621_v32, %v620_v31  ;;  %v6043_v37 = vld [vmem:[%s7347_s3 + $0x4] ss:$8 sps:$4 sm:$0xff]   ;;  %v647_v2 = vshrl.u32 %v646_v1, 7 }
  0x81   : > { %1160 = vmatprep.subr.bf16.mxu1 %v5996_v22  ;;  %715 = vmatpush1.bf16.msra.mxu0 %v703_v29  ;;  %v6048_v38 = vld [vmem:[%s7347_s3] ss:$8 sps:$4 sm:$0xff]   ;;  %v6054_v39 = vld [vmem:[%s7348_s4 + $0x34] ss:$8 sps:$4 sm:$0xff]   ;;  %v6068_v42 = vld [vmem:[%s7347_s3 + $0x10] ss:$8 sps:$4 sm:$0xff]  }
  0x82   : > { %v622_v40 = vld [vmem:[%s5976_s20 + $0x20] sm:$0xff]  ;;  %1068 = vmatprep.subr.bf16.mxu0 %v6043_v37  ;;  %v6061_v41 = vld [vmem:[%s7347_s3 + $0x14] ss:$8 sps:$4 sm:$0xff]   ;;  %v623_v43 = vld [vmem:[%s5976_s20 + $0x28] sm:$0xff]  ;;  %v660_v3 = vsub.s32 3, %v647_v2  ;;  %v652_v7 = vsub.s32 1, %v647_v2 }
  0x83   : > { %4498 = vmatmul.mubr.msk.bf16.vlgmr.msra.gmra.mrb[0].mxu1 %vm676_vm1, %v634_v25  ;;  %v6076_v44 = vld [vmem:[%s7348_s4 + $0x30] ss:$8 sps:$4 sm:$0xff]   ;;  %v6081_v45 = vld [vmem:[%s7347_s3 + $0x24] ss:$8 sps:$4 sm:$0xff]   ;;  %v6088_v46 = vld [vmem:[%s7347_s3 + $0x20] ss:$8 sps:$4 sm:$0xff]   ;;  %v636_v48 = vpack.c.bf16 %v623_v43, %v622_v40 }
  0x84   : > { %1161 = vmatpush1.bf16.msra.mxu1 %v6006_v28  ;;  %869 = vmatprep.mubr.bf16.mxu1 %v5723_v16  ;;  %v6095_v47 = vld [vmem:[%s7347_s3 + $0x34] ss:$8 sps:$4 sm:$0xff]   ;;  %v6103_v49 = vld [vmem:[%s7347_s3 + $0x30] ss:$8 sps:$4 sm:$0xff]   ;;  %v626_v53 = vld [vmem:[%s5976_s20 + $0x40] sm:$0xff]  ;;  %v656_v24 = vsub.s32 2, %v647_v2 }
  0x85   : > { %4489 = vmatmul.mubr.msk.bf16.vlgmr.msra.gmra.mrb[0].mxu0 %vm676_vm1, %v634_v25  ;;  %1162 = vmatprep.subr.bf16.mxu1 %v6014_v30  ;;  %v624_v50 = vld [vmem:[%s5976_s20 + $0x30] sm:$0xff]  ;;  %v625_v51 = vld [vmem:[%s5976_s20 + $0x38] sm:$0xff]  ;;  %v627_v54 = vld [vmem:[%s5976_s20 + $0x48] sm:$0xff]  ;;  %s7385_s29 = sld [smem:[#allocation15_spill]]  ;;  %s6994_s14 = scalar_lea.vmem [#allocation9], %s5973_s19  ;;  %vm5728_vm3 = vmmov 0  }
  0x86   : > { %756 = vmatprep.mubr.bf16.mxu0 %v5723_v16  ;;  %1069 = vmatpush1.bf16.msra.mxu0 %v6048_v38  ;;  %v637_v52 = vpack.c.bf16 %v625_v51, %v624_v50  ;;  %v638_v55 = vpack.c.bf16 %v627_v54, %v626_v53  ;;  %v628_v56 = vld [vmem:[%s5976_s20 + $0x50] sm:$0xff]  ;;  %v629_v57 = vld [vmem:[%s5976_s20 + $0x58] sm:$0xff]  ;;  %v630_v59 = vld [vmem:[%s5976_s20 + $0x60] sm:$0xff]  ;;  %s7386_s27 = sld [smem:[#allocation16_spill]]  ;;  %s7387_s21 = sld [smem:[#allocation17_spill]] }
  0x87   : > { %1070 = vmatprep.subr.bf16.mxu0 %v6061_v41  ;;  %v639_v58 = vpack.c.bf16 %v629_v57, %v628_v56  ;;  %v631_v60 = vld [vmem:[%s5976_s20 + $0x68] sm:$0xff]  ;;  %v632_v62 = vld [vmem:[%s5976_s20 + $0x70] sm:$0xff]  ;;  %v633_v63 = vld [vmem:[%s5976_s20 + $0x78] sm:$0xff]  ;;  %v648_v57 = vsub.s32 0, %v647_v2  ;;  %s4482_s15 = sshll.u32 %s5820_s16, 1  ;;  %s7388_s24 = sld [smem:[#allocation18_spill]] }
  0x88   : > { %1163 = vmatpush1.bf16.msra.mxu1 %v6024_v33  ;;  %v640_v61 = vpack.c.bf16 %v631_v60, %v630_v59  ;;  %v641_v0 = vpack.c.bf16 %v633_v63, %v632_v62  ;;  %v644_v4 = vld [vmem:[%s7346_s2] sm:$0xf]  ;;  %p611_p6 = scmp.lt.s32.totalorder %s4482_s15, 3  ;;  %s7389_s25 = sld [smem:[#allocation19_spill]] }
  0x89   : > { %1164 = vmatprep.subr.bf16.mxu1 %v6031_v34  ;;  %v6167_v5 = vrot.slane %v644_v4, %v660_v3  ;;  %v6172_v17 = vrot.slane %v644_v4, %v652_v7  ;;  %v6186_v25 = vrot.slane %v644_v4, %v656_v24  ;;  %s7390_s8 = sld [smem:[#allocation14_spill]] }
  0x8a   : > { %1071 = vmatpush1.bf16.msra.mxu0 %v6068_v42  ;;  %s7398_s15 = smov (!%p611_p6, %s4482_s15), 3 }
  0x8b   : > { %4499 = vmatmul.mubr.msk.bf16.gmra.mrb[4].mxu1 %vm676_vm1, %v635_v35  ;;  %1072 = vmatprep.subr.bf16.mxu0 %v6081_v45  ;;  %s4483_s20 = sshll.u32 %s7398_s15, 3 }
  0x8c   : > { %879 = vmatprep.mubr.bf16.mxu1 %v5723_v16  ;;  %1165 = vmatpush1.bf16.msra.mxu1 %v6037_v36 }
  0x8d   : > { %4490 = vmatmul.mubr.msk.bf16.gmra.mrb[4].mxu0 %vm676_vm1, %v635_v35  ;;  %1166 = vmatprep.subr.bf16.mxu1 %v6054_v39 }
  0x8e   : > { %766 = vmatprep.mubr.bf16.mxu0 %v5723_v16  ;;  %1073 = vmatpush1.bf16.msra.mxu0 %v6088_v46  ;;  %s614_s28 = scalar_lea.vmem %s7389_s25, %s4483_s20 }
  0x8f   : > { %1074 = vmatprep.subr.bf16.mxu0 %v6095_v47  ;;  %p7391_p7 = scmp.ne.s32.totalorder %s7390_s8, 0 }
  0x90   : > { %1167 = vmatpush1.bf16.msra.mxu1 %v6076_v44  ;;  %s4658_s13 = sshll.u32 (%p7391_p7), %s5820_s16, 4  ;;  %s7392_s12 = sld [smem:[#allocation20_spill]] (%p7391_p7) }
  0x91   : > { %1392 = vmatprep.subr.bf16.mxu1 %v5996_v22 }
  0x92   : > { %1075 = vmatpush1.bf16.msra.mxu0 %v6103_v49 }
  0x93   : > { %4500 = vmatmul.mubr.msk.bf16.gmra.mrb[8].mxu1 %vm676_vm1, %v636_v48  ;;  %1336 = vmatprep.subr.bf16.mxu0 %v6043_v37 }
  0x94   : > { %889 = vmatprep.mubr.bf16.mxu1 %v5723_v16 }
  0x95   : > { %4491 = vmatmul.mubr.msk.bf16.gmra.mrb[8].mxu0 %vm676_vm1, %v636_v48 }
  0x96   : > { %776 = vmatprep.mubr.bf16.mxu0 %v5723_v16  ;;  %s4261_s26 = scalar_lea.vmem (%p7391_p7), %s7392_s12, %s4658_s13 }
  0x9b   : > { %4501 = vmatmul.mubr.msk.bf16.gmra.mrb[12].mxu1 %vm676_vm1, %v637_v52 }
  0x9c   : > { %899 = vmatprep.mubr.bf16.mxu1 %v5723_v16 }
  0x9d   : > { %4492 = vmatmul.mubr.msk.bf16.gmra.mrb[12].mxu0 %vm676_vm1, %v637_v52 }
  0x9e   : > { %786 = vmatprep.mubr.bf16.mxu0 %v5723_v16 }
  0xa3   : > { %4502 = vmatmul.mubr.msk.bf16.gmra.mrb[16].mxu1 %vm676_vm1, %v638_v55 }
  0xa4   : > { %909 = vmatprep.mubr.bf16.mxu1 %v5723_v16 }
  0xa5   : > { %4493 = vmatmul.mubr.msk.bf16.gmra.mrb[16].mxu0 %vm676_vm1, %v638_v55 }
  0xa6   : > { %796 = vmatprep.mubr.bf16.mxu0 %v5723_v16 }
  0xab   : > { %4503 = vmatmul.mubr.msk.bf16.gmra.mrb[20].mxu1 %vm676_vm1, %v639_v58 }
  0xac   : > { %919 = vmatprep.mubr.bf16.mxu1 %v5723_v16 }
  0xad   : > { %4494 = vmatmul.mubr.msk.bf16.gmra.mrb[20].mxu0 %vm676_vm1, %v639_v58  ;;  %v6197_v58 = vrot.slane %v644_v4, %v648_v57 }
  0xae   : > { %806 = vmatprep.mubr.bf16.mxu0 %v5723_v16 }
  0xb3   : > { %4504 = vmatmul.mubr.msk.bf16.gmra.mrb[24].mxu1 %vm676_vm1, %v640_v61 }
  0xb4   : > { %929 = vmatprep.mubr.bf16.mxu1 %v5723_v16 }
  0xb5   : > { %4495 = vmatmul.mubr.msk.bf16.gmra.mrb[24].mxu0 %vm676_vm1, %v640_v61 }
  0xb6   : > { %816 = vmatprep.mubr.bf16.mxu0 %v5723_v16 }
  0xbb   : > { %4505 = vmatmul.mubr.msk.bf16.gmra.mrb[28].mxu1 %vm676_vm1, %v641_v0 }
  0xbc   : > { %1192 = vmatprep.mubr.bf16.mxu1 %v5723_v16 }
  0xbd   : > { %4496 = vmatmul.mubr.msk.bf16.gmra.mrb[28].mxu0 %vm676_vm1, %v641_v0 }
  0xbe   : > { %1100 = vmatprep.mubr.bf16.mxu0 %v5723_v16 }
  0xc5   : > { %1101 = vmatmul.mubr.bf16.vlgmr.msra.gmra.mrb[0].mxu0 %v5723_v16 }
  0xc6   : > { %1337 = vmatpush1.bf16.msra.mxu0 %v6048_v38  ;;  %1368 = vmatprep.mubr.bf16.mxu0 %v5723_v16 }
  0xc7   : > { %1193 = vmatmul.mubr.bf16.vlgmr.msra.gmra.mrb[28].mxu1 %v5723_v16  ;;  %1338 = vmatprep.subr.bf16.mxu0 %v6061_v41 }
  0xc8   : > { %1393 = vmatpush1.bf16.msra.mxu1 %v6006_v28  ;;  %1424 = vmatprep.mubr.bf16.mxu1 %v5723_v16 }
  0xc9   : > { %1394 = vmatprep.subr.bf16.mxu1 %v6014_v30 }
  0xca   : > { %1339 = vmatpush1.bf16.msra.mxu0 %v6068_v42 }
  0xcb   : > { %1340 = vmatprep.subr.bf16.mxu0 %v6081_v45 }
  0xcc   : > { %1395 = vmatpush1.bf16.msra.mxu1 %v6024_v33 }
  0xcd   : > { %1396 = vmatprep.subr.bf16.mxu1 %v6031_v34 }
  0xce   : > { %1341 = vmatpush1.bf16.msra.mxu0 %v6088_v46 }
  0xcf   : > { %1342 = vmatprep.subr.bf16.mxu0 %v6095_v47 }
  0xd0   : > { %1397 = vmatpush1.bf16.msra.mxu1 %v6037_v36 }
  0xd1   : > { %1398 = vmatprep.subr.bf16.mxu1 %v6054_v39 }
  0xd2   : > { %1343 = vmatpush1.bf16.msra.mxu0 %v6103_v49 }
  0xd3   : > { %1568 = vmatprep.subr.bf16.mxu0 %v6043_v37 }
  0xd4   : > { %1399 = vmatpush1.bf16.msra.mxu1 %v6076_v44 }
  0xd5   : > { %1624 = vmatprep.subr.bf16.mxu1 %v5996_v22 }
 0x198   : > { %v1102_v6 = vpop.f32.mrb[0].mxu0 }
 0x199   : > { %v1104_v8 = vpop.f32.mrb[1].mxu0  ;;  %v4871_v59 = vadd.f32 %v1102_v6, %v6197_v58 }
 0x19a   : > { %v1194_v9 = vpop.f32.mrb[28].mxu1  ;;  %v1106_v10 = vpop.f32.mrb[2].mxu0  ;;  %v6179_v19 = vadd.f32 %v1104_v8, %v6172_v17 }
 0x19b   : > { %v1196_v11 = vpop.f32.mrb[29].mxu1  ;;  %v1108_v12 = vpop.f32.mrb[3].mxu0  ;;  %v4931_v26 = vadd.f32 %v1194_v9, %v6186_v25  ;;  %v4522_v60 = vmul.f32 -1.442695, %v4871_v59  ;;  %v4873_v61 = vadd.f32 %v1106_v10, %v6197_v58 }
 0x19c   : > { %v6170_v13 = vadd.f32 %v1196_v11, %v6167_v5  ;;  %v1198_v14 = vpop.f32.mrb[30].mxu1  ;;  %v6191_v48 = vadd.f32 %v1108_v12, %v6172_v17 }
 0x19d   : > { %v1200_v15 = vpop.f32.mrb[31].mxu1  ;;  %v4526_v27 = vmul.f32 -1.442695, %v4931_v26  ;;  %v4933_v29 = vadd.f32 %v1198_v14, %v6186_v25  ;;  %v4524_v62 = vmul.f32 -1.442695, %v4873_v61 }
 0x19e   : > { %5166 = vtanh.f32 %v6170_v13  ;;  %v6176_v18 = vadd.f32 %v1200_v15, %v6167_v5  ;;  %v4527_v24 = vmul.f32 -1.442695, %v6170_v13  ;;  %v4523_v61 = vmul.f32 -1.442695, %v6179_v19 }
 0x19f   : > { %v4528_v31 = vmul.f32 -1.442695, %v4933_v29 }
 0x1a0   : > { %5168 = vtanh.f32 %v6176_v18  ;;  %v4529_v26 = vmul.f32 -1.442695, %v6176_v18 }
 0x1a1   : > { %5170 = vtanh.f32 %v6179_v19 }
 0x1a2   : > { %5172 = vpow2.f32 %v4526_v27 }
 0x1a3   : > { %5174 = vpow2.f32 %v4528_v31 }
 0x1a8   : > { %v5167_v20 = vpop.eup %5166 }
 0x1a9   : > { %1285 = vrot.lane.b32.xlu0 %v5167_v20, %s5724_s23 }
 0x1aa   : > { %v5169_v21 = vpop.eup %5168 }
 0x1ab   : > { %v5171_v23 = vpop.eup %5170 }
 0x1ac   : > { %v5173_v32 = vpop.eup %5172 }
 0x1ad   : > { %1287 = vrot.lane.b32.xlu0 %v5169_v21, %s5724_s23  ;;  %v1245_v35 = vadd.f32 1.0, %v5173_v32  ;;  %v5175_v40 = vpop.eup %5174 }
 0x1ae   : > { %v1247_v43 = vadd.f32 1.0, %v5175_v40 }
 0x1af   : > { %5176 = vrcp.f32 %v1245_v35 }
 0x1b0   : > { %5178 = vrcp.f32 %v1247_v43 }
 0x1b1   : > { %1263 = vrot.lane.b32.xlu0 %v5171_v23, %s5724_s23  ;;  %5180 = vtanh.f32 %v6191_v48 }
 0x1b2   : > { %5182 = vpow2.f32 %v4522_v60 }
 0x1b3   : > { %5184 = vpow2.f32 %v4524_v62  ;;  %v4525_v62 = vmul.f32 -1.442695, %v6191_v48 }
 0x1b9   : > { %v5177_v50 = vpop.eup %5176 }
 0x1ba   : > { %v5179_v53 = vpop.eup %5178  ;;  %v1281_v0 = vmul.f32 0.0, %v5177_v50 }
 0x1bb   : > { %v5181_v56 = vpop.eup %5180  ;;  %v1282_v2 = vmul.f32 0.0, %v5179_v53 }
 0x1bc   : > { %v5183_v63 = vpop.eup %5182 }
 0x1bd   : > { %v1219_v3 = vadd.f32 1.0, %v5183_v63  ;;  %v5185_v8 = vpop.eup %5184 }
 0x1be   : > { %v1221_v9 = vadd.f32 1.0, %v5185_v8 }
 0x21b   : > { %v1286_v51 = vpop.permute.xlu0 %1285 }
 0x21c   : > { %v1291_v52 = vmul.f32 %v5177_v50, %v1286_v51 }
 0x21e   : > { %1295 = vrot.lane.b32.xlu1 %v1291_v52, %s5724_s23 }
 0x21f   : > { %v1288_v54 = vpop.permute.xlu0 %1287 }
 0x220   : > { %v1292_v55 = vmul.f32 %v5179_v53, %v1288_v54 }
 0x222   : > { %1297 = vrot.lane.b32.xlu1 %v1292_v55, %s5724_s23 }
 0x223   : > { %v1264_v11 = vpop.permute.xlu0 %1263 }
 0x226   : > { %1265 = vrot.lane.b32.xlu1 %v5181_v56, %s5724_s23 }
 0x290   : > { %v1296_v1 = vpop.permute.xlu1 %1295 }
 0x291   : > { %v6201_v7 = vadd.f32 %v1296_v1, %v1281_v0 }
 0x293   : > { %5186 = vtanh.f32 %v6201_v7 }
 0x294   : > { %5188 = vrcp.f32 %v1219_v3  ;;  %v1298_v4 = vpop.permute.xlu1 %1297 }
 0x295   : > { %v6204_v6 = vadd.f32 %v1298_v4, %v1282_v2 }
 0x297   : > { %5190 = vtanh.f32 %v6204_v6 }
 0x298   : > { %5192 = vrcp.f32 %v1221_v9  ;;  %v1266_v20 = vpop.permute.xlu1 %1265 }
 0x299   : > { %5194 = vpow2.f32 %v4527_v24 }
 0x29a   : > { %5196 = vpow2.f32 %v4529_v26 }
 0x29d   : > { %v5187_v10 = vpop.eup %5186 }
 0x29e   : > { %1319 = vrot.lane.b32.xlu0 %v5187_v10, %s5724_s23  ;;  %v5189_v12 = vpop.eup %5188 }
 0x29f   : > { %v1269_v14 = vmul.f32 %v5189_v12, %v1264_v11  ;;  %v1259_v40 = vmul.f32 0.0, %v5189_v12 }
 0x2a1   : > { %v5191_v15 = vpop.eup %5190 }
 0x2a2   : > { %1273 = vrot.lane.b32.xlu0 %v1269_v14, %s5724_s23  ;;  %1321 = vrot.lane.b32.xlu1 %v5191_v15, %s5724_s23  ;;  %v5193_v21 = vpop.eup %5192 }
 0x2a3   : > { %v1270_v23 = vmul.f32 %v5193_v21, %v1266_v20  ;;  %v5195_v27 = vpop.eup %5194  ;;  %v1260_v55 = vmul.f32 0.0, %v5193_v21 }
 0x2a4   : > { %v5197_v29 = vpop.eup %5196  ;;  %v1246_v31 = vadd.f32 1.0, %v5195_v27 }
 0x2a5   : > { %v1248_v32 = vadd.f32 1.0, %v5197_v29 }
 0x2a6   : > { %1275 = vrot.lane.b32.xlu1 %v1270_v23, %s5724_s23  ;;  %5198 = vrcp.f32 %v1246_v31 }
 0x2a7   : > { %5200 = vrcp.f32 %v1248_v32 }
 0x2b0   : > { %v5199_v43 = vpop.eup %5198 }
 0x2b1   : > { %v5201_v51 = vpop.eup %5200 }
 0x310   : > { %v1320_v35 = vpop.permute.xlu0 %1319 }
 0x311   : > { %v6215_v54 = vmul.f32 %v5199_v43, %v1320_v35 }
 0x314   : > { %v1274_v50 = vpop.permute.xlu0 %1273  ;;  %v1322_v53 = vpop.permute.xlu1 %1321 }
 0x315   : > { %v6213_v52 = vadd.f32 %v1274_v50, %v1259_v40  ;;  %v6217_v13 = vmul.f32 %v5201_v51, %v1322_v53 }
 0x317   : > { %5202 = vtanh.f32 %v6213_v52  ;;  %v1388_v18 = vpack.c.bf16 %v6217_v13, %v6215_v54 }
 0x318   : > { %v1276_v56 = vpop.permute.xlu1 %1275 }
 0x319   : > { %v6222_v57 = vadd.f32 %v1276_v56, %v1260_v55  ;;  %4531 = vmatmul.mubr.msk.bf16.vlgmr.msra.gmra.mrb[24].mxu1 %vm1064_vm2, %v1388_v18 }
 0x31a   : > { %1625 = vmatpush1.bf16.msra.mxu1 %v6006_v28  ;;  %1656 = vmatprep.mubr.bf16.mxu1 %v5723_v16 }
 0x31b   : > { %5204 = vtanh.f32 %v6222_v57  ;;  %1626 = vmatprep.subr.bf16.mxu1 %v6014_v30 }
 0x31c   : > { %5206 = vpow2.f32 %v4523_v61 }
 0x31d   : > { %5208 = vpow2.f32 %v4525_v62 }
 0x31e   : > { %1627 = vmatpush1.bf16.msra.mxu1 %v6024_v33 }
 0x31f   : > { %1628 = vmatprep.subr.bf16.mxu1 %v6031_v34 }
 0x321   : > { %v5203_v59 = vpop.eup %5202 }
 0x322   : > { %1307 = vrot.lane.b32.xlu0 %v5203_v59, %s5724_s23  ;;  %1629 = vmatpush1.bf16.msra.mxu1 %v6037_v36 }
 0x323   : > { %1630 = vmatprep.subr.bf16.mxu1 %v6054_v39 }
 0x325   : > { %v5205_v60 = vpop.eup %5204 }
 0x326   : > { %1309 = vrot.lane.b32.xlu1 %v5205_v60, %s5724_s23  ;;  %1631 = vmatpush1.bf16.msra.mxu1 %v6076_v44  ;;  %v5207_v63 = vpop.eup %5206 }
 0x327   : > { %1856 = vmatprep.subr.bf16.mxu1 %v5996_v22  ;;  %v5209_v0 = vpop.eup %5208  ;;  %v1220_v1 = vadd.f32 1.0, %v5207_v63 }
 0x328   : > { %v1222_v3 = vadd.f32 1.0, %v5209_v0 }
 0x329   : > { %5210 = vrcp.f32 %v1220_v1 }
 0x32a   : > { %5212 = vrcp.f32 %v1222_v3 }
 0x333   : > { %v5211_v2 = vpop.eup %5210 }
 0x334   : > { %v5213_v4 = vpop.eup %5212 }
 0x394   : > { %v1308_v8 = vpop.permute.xlu0 %1307 }
 0x395   : > { %v6239_v10 = vmul.f32 %v5211_v2, %v1308_v8 }
 0x398   : > { %v1310_v9 = vpop.permute.xlu1 %1309 }
 0x399   : > { %v6241_v11 = vmul.f32 %v5213_v4, %v1310_v9 }
 0x39b   : > { %v1332_v19 = vpack.c.bf16 %v6241_v11, %v6239_v10 }
 0x39d   : > { %4530 = vmatmul.mubr.msk.bf16.vlgmr.msra.gmra.mrb[4].mxu0 %vm1064_vm2, %v1332_v19 }
 0x39e   : > { %1569 = vmatpush1.bf16.msra.mxu0 %v6048_v38  ;;  %1600 = vmatprep.mubr.bf16.mxu0 %v5723_v16 }
 0x39f   : > { %1570 = vmatprep.subr.bf16.mxu0 %v6061_v41 }
 0x3a2   : > { %1571 = vmatpush1.bf16.msra.mxu0 %v6068_v42 }
 0x3a3   : > { %1572 = vmatprep.subr.bf16.mxu0 %v6081_v45 }
 0x3a6   : > { %1573 = vmatpush1.bf16.msra.mxu0 %v6088_v46 }
 0x3a7   : > { %1574 = vmatprep.subr.bf16.mxu0 %v6095_v47 }
 0x3aa   : > { %1575 = vmatpush1.bf16.msra.mxu0 %v6103_v49 }
 0x3ab   : > { %1800 = vmatprep.subr.bf16.mxu0 %v6043_v37 }
 0x3ec   : > { %v1426_v48 = vpop.f32.mrb[24].mxu1 }
 0x3ed   : > { %v1428_v12 = vpop.f32.mrb[25].mxu1  ;;  %v4927_v26 = vadd.f32 %v1426_v48, %v6186_v25 }
 0x3ee   : > { %v6256_v14 = vadd.f32 %v1428_v12, %v6167_v5  ;;  %v1430_v15 = vpop.f32.mrb[26].mxu1 }
 0x3ef   : > { %v1432_v20 = vpop.f32.mrb[27].mxu1  ;;  %v4536_v27 = vmul.f32 -1.442695, %v4927_v26  ;;  %v4929_v29 = vadd.f32 %v1430_v15, %v6186_v25 }
 0x3f0   : > { %5214 = vtanh.f32 %v6256_v14  ;;  %v6260_v21 = vadd.f32 %v1432_v20, %v6167_v5 }
 0x3f1   : > { %v4538_v31 = vmul.f32 -1.442695, %v4929_v29 }
 0x3f2   : > { %5216 = vtanh.f32 %v6260_v21 }
 0x3f3   : > { %5218 = vpow2.f32 %v4536_v27 }
 0x3f4   : > { %5220 = vpow2.f32 %v4538_v31 }
 0x3fa   : > { %v5215_v23 = vpop.eup %5214 }
 0x3fb   : > { %1517 = vrot.lane.b32.xlu0 %v5215_v23, %s5724_s23 }
 0x3fc   : > { %v5217_v24 = vpop.eup %5216 }
 0x3fd   : > { %1519 = vrot.lane.b32.xlu1 %v5217_v24, %s5724_s23  ;;  %v5219_v32 = vpop.eup %5218 }
 0x3fe   : > { %v1477_v35 = vadd.f32 1.0, %v5219_v32  ;;  %v5221_v40 = vpop.eup %5220 }
 0x3ff   : > { %v1479_v43 = vadd.f32 1.0, %v5221_v40 }
 0x400   : > { %5222 = vrcp.f32 %v1477_v35 }
 0x401   : > { %5224 = vrcp.f32 %v1479_v43 }
 0x40a   : > { %v5223_v50 = vpop.eup %5222 }
 0x40b   : > { %v5225_v56 = vpop.eup %5224  ;;  %v1513_v48 = vmul.f32 %v5223_v50, %v6201_v7 }
 0x40c   : > { %v1514_v24 = vmul.f32 %v5225_v56, %v6204_v6 }
 0x46d   : > { %v1518_v51 = vpop.permute.xlu0 %1517 }
 0x46e   : > { %v1523_v53 = vmul.f32 %v5223_v50, %v1518_v51  ;;  %v4537_v51 = vmul.f32 -1.442695, %v6256_v14 }
 0x46f   : > { %v1520_v59 = vpop.permute.xlu1 %1519 }
 0x470   : > { %1527 = vrot.lane.b32.xlu0 %v1523_v53, %s5724_s23  ;;  %v1370_v18 = vpop.f32.mrb[4].mxu0  ;;  %v1524_v62 = vmul.f32 %v5225_v56, %v1520_v59  ;;  %v4539_v53 = vmul.f32 -1.442695, %v6260_v21 }
 0x471   : > { %v1372_v55 = vpop.f32.mrb[5].mxu0  ;;  %v4875_v8 = vadd.f32 %v1370_v18, %v6197_v58 }
 0x472   : > { %v6269_v60 = vadd.f32 %v1372_v55, %v6172_v17  ;;  %v1374_v61 = vpop.f32.mrb[6].mxu0  ;;  %1529 = vrot.lane.b32.xlu1 %v1524_v62, %s5724_s23 }
 0x473   : > { %v1376_v63 = vpop.f32.mrb[7].mxu0  ;;  %v4532_v2 = vmul.f32 -1.442695, %v4875_v8  ;;  %v4877_v4 = vadd.f32 %v1374_v61, %v6197_v58 }
 0x474   : > { %5226 = vtanh.f32 %v6269_v60  ;;  %v6274_v0 = vadd.f32 %v1376_v63, %v6172_v17 }
 0x475   : > { %v4534_v9 = vmul.f32 -1.442695, %v4877_v4 }
 0x476   : > { %5228 = vtanh.f32 %v6274_v0 }
 0x477   : > { %5230 = vpow2.f32 %v4532_v2 }
 0x478   : > { %5232 = vpow2.f32 %v4534_v9 }
 0x47e   : > { %v5227_v1 = vpop.eup %5226 }
 0x47f   : > { %1495 = vrot.lane.b32.xlu0 %v5227_v1, %s5724_s23 }
 0x480   : > { %v5229_v3 = vpop.eup %5228 }
 0x481   : > { %1497 = vrot.lane.b32.xlu1 %v5229_v3, %s5724_s23  ;;  %v5231_v19 = vpop.eup %5230 }
 0x482   : > { %v1451_v15 = vadd.f32 1.0, %v5231_v19  ;;  %v5233_v23 = vpop.eup %5232 }
 0x483   : > { %v1453_v27 = vadd.f32 1.0, %v5233_v23 }
 0x4e2   : > { %v1528_v12 = vpop.permute.xlu0 %1527 }
 0x4e3   : > { %v6282_v20 = vadd.f32 %v1528_v12, %v1513_v48 }
 0x4e4   : > { %v1530_v26 = vpop.permute.xlu1 %1529 }
 0x4e5   : > { %5234 = vtanh.f32 %v6282_v20  ;;  %v6286_v29 = vadd.f32 %v1530_v26, %v1514_v24 }
 0x4e6   : > { %5236 = vrcp.f32 %v1451_v15 }
 0x4e7   : > { %5238 = vtanh.f32 %v6286_v29 }
 0x4e8   : > { %5240 = vrcp.f32 %v1453_v27 }
 0x4e9   : > { %5242 = vpow2.f32 %v4537_v51 }
 0x4ea   : > { %5244 = vpow2.f32 %v4539_v53 }
 0x4ef   : > { %v5235_v31 = vpop.eup %5234 }
 0x4f0   : > { %1551 = vrot.lane.b32.xlu0 %v5235_v31, %s5724_s23  ;;  %v5237_v7 = vpop.eup %5236 }
 0x4f1   : > { %v1496_v32 = vpop.permute.xlu0 %1495  ;;  %v5239_v40 = vpop.eup %5238  ;;  %v1491_v62 = vmul.f32 %v5237_v7, %v6213_v52 }
 0x4f2   : > { %v1501_v35 = vmul.f32 %v5237_v7, %v1496_v32  ;;  %1553 = vrot.lane.b32.xlu1 %v5239_v40, %s5724_s23  ;;  %v5241_v6 = vpop.eup %5240 }
 0x4f3   : > { %v1498_v43 = vpop.permute.xlu1 %1497  ;;  %v5243_v18 = vpop.eup %5242  ;;  %v1492_v9 = vmul.f32 %v5241_v6, %v6222_v57 }
 0x4f4   : > { %1505 = vrot.lane.b32.xlu0 %v1501_v35, %s5724_s23  ;;  %v1502_v50 = vmul.f32 %v5241_v6, %v1498_v43  ;;  %v5245_v55 = vpop.eup %5244  ;;  %v1478_v56 = vadd.f32 1.0, %v5243_v18 }
 0x4f5   : > { %v1480_v59 = vadd.f32 1.0, %v5245_v55 }
 0x4f6   : > { %1507 = vrot.lane.b32.xlu1 %v1502_v50, %s5724_s23  ;;  %5246 = vrcp.f32 %v1478_v56 }
 0x4f7   : > { %5248 = vrcp.f32 %v1480_v59 }
 0x500   : > { %v5247_v63 = vpop.eup %5246 }
 0x501   : > { %v5249_v3 = vpop.eup %5248 }
 0x562   : > { %v1552_v61 = vpop.permute.xlu0 %1551 }
 0x563   : > { %v6298_v14 = vmul.f32 %v5247_v63, %v1552_v61 }
 0x564   : > { %v1554_v8 = vpop.permute.xlu1 %1553 }
 0x565   : > { %v6300_v21 = vmul.f32 %v5249_v3, %v1554_v8 }
 0x566   : > { %v1506_v1 = vpop.permute.xlu0 %1505 }
 0x567   : > { %v6296_v2 = vadd.f32 %v1506_v1, %v1491_v62  ;;  %v1620_v4 = vpack.c.bf16 %v6300_v21, %v6298_v14 }
 0x568   : > { %v1508_v19 = vpop.permute.xlu1 %1507 }
 0x569   : > { %5250 = vtanh.f32 %v6296_v2  ;;  %v6306_v48 = vadd.f32 %v1508_v19, %v1492_v9  ;;  %4541 = vmatmul.mubr.msk.bf16.vlgmr.msra.gmra.mrb[20].mxu1 %vm1064_vm2, %v1620_v4 }
 0x56a   : > { %1857 = vmatpush1.bf16.msra.mxu1 %v6006_v28  ;;  %1888 = vmatprep.mubr.bf16.mxu1 %v5723_v16  ;;  %v4533_v28 = vmul.f32 -1.442695, %v6269_v60 }
 0x56b   : > { %5252 = vtanh.f32 %v6306_v48  ;;  %1858 = vmatprep.subr.bf16.mxu1 %v6014_v30  ;;  %v4535_v30 = vmul.f32 -1.442695, %v6274_v0 }
 0x56c   : > { %5254 = vpow2.f32 %v4533_v28 }
 0x56d   : > { %5256 = vpow2.f32 %v4535_v30 }
 0x56e   : > { %1859 = vmatpush1.bf16.msra.mxu1 %v6024_v33 }
 0x56f   : > { %1860 = vmatprep.subr.bf16.mxu1 %v6031_v34 }
 0x572   : > { %1861 = vmatpush1.bf16.msra.mxu1 %v6037_v36 }
 0x573   : > { %v5251_v52 = vpop.eup %5250  ;;  %1862 = vmatprep.subr.bf16.mxu1 %v6054_v39 }
 0x574   : > { %1539 = vrot.lane.b32.xlu0 %v5251_v52, %s5724_s23 }
 0x575   : > { %v5253_v57 = vpop.eup %5252 }
 0x576   : > { %1541 = vrot.lane.b32.xlu1 %v5253_v57, %s5724_s23  ;;  %1863 = vmatpush1.bf16.msra.mxu1 %v6076_v44  ;;  %v5255_v33 = vpop.eup %5254 }
 0x577   : > { %2086 = vmatprep.subr.bf16.mxu1 %v5996_v22  ;;  %v5257_v34 = vpop.eup %5256  ;;  %v1452_v12 = vadd.f32 1.0, %v5255_v33 }
 0x578   : > { %v1454_v15 = vadd.f32 1.0, %v5257_v34 }
 0x579   : > { %5258 = vrcp.f32 %v1452_v12 }
 0x57a   : > { %5260 = vrcp.f32 %v1454_v15 }
 0x583   : > { %v5259_v39 = vpop.eup %5258 }
 0x584   : > { %v5261_v23 = vpop.eup %5260 }
 0x5e6   : > { %v1540_v36 = vpop.permute.xlu0 %1539 }
 0x5e7   : > { %v6323_v26 = vmul.f32 %v5259_v39, %v1540_v36 }
 0x5e8   : > { %v1542_v24 = vpop.permute.xlu1 %1541 }
 0x5e9   : > { %v6325_v44 = vmul.f32 %v5261_v23, %v1542_v24 }
 0x5eb   : > { %v1564_v22 = vpack.c.bf16 %v6325_v44, %v6323_v26 }
 0x5ed   : > { %4540 = vmatmul.mubr.msk.bf16.vlgmr.msra.gmra.mrb[8].mxu0 %vm1064_vm2, %v1564_v22 }
 0x5ee   : > { %1801 = vmatpush1.bf16.msra.mxu0 %v6048_v38  ;;  %1832 = vmatprep.mubr.bf16.mxu0 %v5723_v16 }
 0x5ef   : > { %1802 = vmatprep.subr.bf16.mxu0 %v6061_v41 }
 0x5f2   : > { %1803 = vmatpush1.bf16.msra.mxu0 %v6068_v42 }
 0x5f3   : > { %1804 = vmatprep.subr.bf16.mxu0 %v6081_v45 }
 0x5f6   : > { %1805 = vmatpush1.bf16.msra.mxu0 %v6088_v46 }
 0x5f7   : > { %1806 = vmatprep.subr.bf16.mxu0 %v6095_v47 }
 0x5fa   : > { %1807 = vmatpush1.bf16.msra.mxu0 %v6103_v49 }
 0x5fb   : > { %2031 = vmatprep.subr.bf16.mxu0 %v6043_v37 }
 0x63c   : > { %v1658_v60 = vpop.f32.mrb[20].mxu1 }
 0x63d   : > { %v1660_v0 = vpop.f32.mrb[21].mxu1  ;;  %v4923_v37 = vadd.f32 %v1658_v60, %v6186_v25 }
 0x63e   : > { %v6340_v38 = vadd.f32 %v1660_v0, %v6167_v5  ;;  %v1662_v27 = vpop.f32.mrb[22].mxu1 }
 0x63f   : > { %v1664_v31 = vpop.f32.mrb[23].mxu1  ;;  %v4546_v46 = vmul.f32 -1.442695, %v4923_v37  ;;  %v4925_v47 = vadd.f32 %v1662_v27, %v6186_v25 }
 0x640   : > { %5262 = vtanh.f32 %v6340_v38  ;;  %v6344_v41 = vadd.f32 %v1664_v31, %v6167_v5  ;;  %v4547_v31 = vmul.f32 -1.442695, %v6340_v38 }
 0x641   : > { %v4548_v49 = vmul.f32 -1.442695, %v4925_v47 }
 0x642   : > { %5264 = vtanh.f32 %v6344_v41 }
 0x643   : > { %5266 = vpow2.f32 %v4546_v46 }
 0x644   : > { %5268 = vpow2.f32 %v4548_v49 }
 0x64a   : > { %v5263_v42 = vpop.eup %5262 }
 0x64b   : > { %1749 = vrot.lane.b32.xlu0 %v5263_v42, %s5724_s23  ;;  %v4549_v42 = vmul.f32 -1.442695, %v6344_v41 }
 0x64c   : > { %v5265_v45 = vpop.eup %5264 }
 0x64d   : > { %1751 = vrot.lane.b32.xlu1 %v5265_v45, %s5724_s23  ;;  %v5267_v7 = vpop.eup %5266 }
 0x64e   : > { %v1709_v32 = vadd.f32 1.0, %v5267_v7  ;;  %v5269_v35 = vpop.eup %5268 }
 0x64f   : > { %v1711_v40 = vadd.f32 1.0, %v5269_v35 }
 0x650   : > { %5270 = vrcp.f32 %v1709_v32 }
 0x651   : > { %5272 = vrcp.f32 %v1711_v40 }
 0x65a   : > { %v5271_v6 = vpop.eup %5270 }
 0x65b   : > { %v5273_v18 = vpop.eup %5272  ;;  %v1745_v57 = vmul.f32 %v5271_v6, %v6282_v20 }
 0x65c   : > { %v1746_v12 = vmul.f32 %v5273_v18, %v6286_v29 }
 0x6bd   : > { %v1750_v43 = vpop.permute.xlu0 %1749 }
 0x6be   : > { %v1755_v50 = vmul.f32 %v5271_v6, %v1750_v43 }
 0x6bf   : > { %v1752_v55 = vpop.permute.xlu1 %1751 }
 0x6c0   : > { %1759 = vrot.lane.b32.xlu0 %v1755_v50, %s5724_s23  ;;  %v1602_v51 = vpop.f32.mrb[8].mxu0  ;;  %v1756_v61 = vmul.f32 %v5273_v18, %v1752_v55  ;;  %v6410_v55 = vld [vmem:[%s7348_s4 + $0x10] ss:$8 sps:$4 sm:$0xff]  }
 0x6c1   : > { %v1604_v53 = vpop.f32.mrb[9].mxu0  ;;  %v4879_v8 = vadd.f32 %v1602_v51, %v6197_v58 }
 0x6c2   : > { %v6353_v56 = vadd.f32 %v1604_v53, %v6172_v17  ;;  %v1606_v59 = vpop.f32.mrb[10].mxu0  ;;  %1761 = vrot.lane.b32.xlu1 %v1756_v61, %s5724_s23 }
 0x6c3   : > { %v1608_v62 = vpop.f32.mrb[11].mxu0  ;;  %v4542_v4 = vmul.f32 -1.442695, %v4879_v8  ;;  %v4881_v9 = vadd.f32 %v1606_v59, %v6197_v58  ;;  %v6416_v59 = vld [vmem:[%s7348_s4 + $0x24] ss:$8 sps:$4 sm:$0xff]  }
 0x6c4   : > { %5274 = vtanh.f32 %v6353_v56  ;;  %v6358_v63 = vadd.f32 %v1608_v62, %v6172_v17  ;;  %v6423_v62 = vld [vmem:[%s7348_s4 + $0x20] ss:$8 sps:$4 sm:$0xff]   ;;  %v6436_v8 = vld [vmem:[%s7348_s4 + $0x30] ss:$8 sps:$4 sm:$0xff]  }
 0x6c5   : > { %v4544_v19 = vmul.f32 -1.442695, %v4881_v9  ;;  %v4543_v9 = vmul.f32 -1.442695, %v6353_v56 }
 0x6c6   : > { %5276 = vtanh.f32 %v6358_v63 }
 0x6c7   : > { %5278 = vpow2.f32 %v4542_v4  ;;  %v6442_v4 = vld [vmem:[%s7348_s4 + $0x4] ss:$8 sps:$4 sm:$0xff]  }
 0x6c8   : > { %5280 = vpow2.f32 %v4544_v19  ;;  %v4545_v19 = vmul.f32 -1.442695, %v6358_v63  ;;  %v6457_v63 = vld [vmem:[%s7347_s3] ss:$8 sps:$4 sm:$0xff]  }
 0x6ce   : > { %v5275_v1 = vpop.eup %5274 }
 0x6cf   : > { %1727 = vrot.lane.b32.xlu0 %v5275_v1, %s5724_s23  ;;  %v6429_v1 = vld [vmem:[%s7348_s4 + $0x34] ss:$8 sps:$4 sm:$0xff]  }
 0x6d0   : > { %v5277_v3 = vpop.eup %5276 }
 0x6d1   : > { %1729 = vrot.lane.b32.xlu1 %v5277_v3, %s5724_s23  ;;  %v5279_v52 = vpop.eup %5278 }
 0x6d2   : > { %v1683_v30 = vadd.f32 1.0, %v5279_v52  ;;  %v5281_v34 = vpop.eup %5280 }
 0x6d3   : > { %v1685_v36 = vadd.f32 1.0, %v5281_v34 }
 0x732   : > { %v1760_v28 = vpop.permute.xlu0 %1759 }
 0x733   : > { %v6366_v33 = vadd.f32 %v1760_v28, %v1745_v57 }
 0x734   : > { %v1762_v15 = vpop.permute.xlu1 %1761 }
 0x735   : > { %5282 = vtanh.f32 %v6366_v33  ;;  %v6370_v39 = vadd.f32 %v1762_v15, %v1746_v12 }
 0x736   : > { %5284 = vrcp.f32 %v1683_v30 }
 0x737   : > { %5286 = vtanh.f32 %v6370_v39 }
 0x738   : > { %5288 = vrcp.f32 %v1685_v36 }
 0x739   : > { %5290 = vpow2.f32 %v4547_v31  ;;  %v6500_v31 = vld [vmem:[%s7347_s3 + $0x4] ss:$8 sps:$4 sm:$0xff]  }
 0x73a   : > { %5292 = vpow2.f32 %v4549_v42 }
 0x73f   : > { %v5283_v23 = vpop.eup %5282 }
 0x740   : > { %1783 = vrot.lane.b32.xlu0 %v5283_v23, %s5724_s23  ;;  %v5285_v20 = vpop.eup %5284 }
 0x741   : > { %v1728_v24 = vpop.permute.xlu0 %1727  ;;  %v5287_v60 = vpop.eup %5286  ;;  %v1723_v7 = vmul.f32 %v5285_v20, %v6296_v2  ;;  %v6396_v2 = vld [vmem:[%s7348_s4] ss:$8 sps:$4 sm:$0xff]  }
 0x742   : > { %v1733_v22 = vmul.f32 %v5285_v20, %v1728_v24  ;;  %1785 = vrot.lane.b32.xlu1 %v5287_v60, %s5724_s23  ;;  %v5289_v29 = vpop.eup %5288  ;;  %v6464_v24 = vld [vmem:[%s7347_s3 + $0x14] ss:$8 sps:$4 sm:$0xff]   ;;  %v6476_v60 = vld [vmem:[%s7347_s3 + $0x24] ss:$8 sps:$4 sm:$0xff]  }
 0x743   : > { %v1730_v0 = vpop.permute.xlu1 %1729  ;;  %v5291_v45 = vpop.eup %5290  ;;  %v1724_v51 = vmul.f32 %v5289_v29, %v6306_v48  ;;  %v6404_v48 = vld [vmem:[%s7348_s4 + $0x14] ss:$8 sps:$4 sm:$0xff]  }
 0x744   : > { %1737 = vrot.lane.b32.xlu0 %v1733_v22, %s5724_s23  ;;  %v1734_v27 = vmul.f32 %v5289_v29, %v1730_v0  ;;  %v5293_v37 = vpop.eup %5292  ;;  %v1710_v46 = vadd.f32 1.0, %v5291_v45  ;;  %v6470_v22 = vld [vmem:[%s7347_s3 + $0x10] ss:$8 sps:$4 sm:$0xff]   ;;  %v6482_v29 = vld [vmem:[%s7347_s3 + $0x20] ss:$8 sps:$4 sm:$0xff]  }
 0x745   : > { %v1712_v47 = vadd.f32 1.0, %v5293_v37  ;;  %v6488_v0 = vld [vmem:[%s7347_s3 + $0x34] ss:$8 sps:$4 sm:$0xff]  }
 0x746   : > { %1739 = vrot.lane.b32.xlu1 %v1734_v27, %s5724_s23  ;;  %5294 = vrcp.f32 %v1710_v46  ;;  %v6494_v27 = vld [vmem:[%s7347_s3 + $0x30] ss:$8 sps:$4 sm:$0xff]  }
 0x747   : > { %5296 = vrcp.f32 %v1712_v47 }
 0x750   : > { %v5295_v32 = vpop.eup %5294 }
 0x751   : > { %v5297_v40 = vpop.eup %5296 }
 0x7b2   : > { %v1784_v49 = vpop.permute.xlu0 %1783 }
 0x7b3   : > { %v6382_v38 = vmul.f32 %v5295_v32, %v1784_v49 }
 0x7b4   : > { %v1786_v6 = vpop.permute.xlu1 %1785 }
 0x7b5   : > { %v6384_v41 = vmul.f32 %v5297_v40, %v1786_v6 }
 0x7b6   : > { %v1738_v35 = vpop.permute.xlu0 %1737 }
 0x7b7   : > { %v6380_v43 = vadd.f32 %v1738_v35, %v1723_v7  ;;  %v1852_v50 = vpack.c.bf16 %v6384_v41, %v6382_v38 }
 0x7b8   : > { %v1740_v53 = vpop.permute.xlu1 %1739 }
 0x7b9   : > { %5298 = vtanh.f32 %v6380_v43  ;;  %v6390_v18 = vadd.f32 %v1740_v53, %v1724_v51  ;;  %4551 = vmatmul.mubr.msk.bf16.vlgmr.msra.gmra.mrb[16].mxu1 %vm1064_vm2, %v1852_v50 }
 0x7ba   : > { %2087 = vmatpush1.bf16.msra.mxu1 %v6396_v2  ;;  %2118 = vmatprep.mubr.bf16.mxu1 %v5723_v16 }
 0x7bb   : > { %5300 = vtanh.f32 %v6390_v18  ;;  %2088 = vmatprep.subr.bf16.mxu1 %v6404_v48 }
 0x7bc   : > { %5302 = vpow2.f32 %v4543_v9 }
 0x7bd   : > { %5304 = vpow2.f32 %v4545_v19 }
 0x7be   : > { %2089 = vmatpush1.bf16.msra.mxu1 %v6410_v55 }
 0x7bf   : > { %2090 = vmatprep.subr.bf16.mxu1 %v6416_v59 }
 0x7c2   : > { %2091 = vmatpush1.bf16.msra.mxu1 %v6423_v62 }
 0x7c3   : > { %v5299_v61 = vpop.eup %5298  ;;  %2092 = vmatprep.subr.bf16.mxu1 %v6429_v1 }
 0x7c4   : > { %1771 = vrot.lane.b32.xlu0 %v5299_v61, %s5724_s23 }
 0x7c5   : > { %v5301_v3 = vpop.eup %5300 }
 0x7c6   : > { %1773 = vrot.lane.b32.xlu1 %v5301_v3, %s5724_s23  ;;  %2093 = vmatpush1.bf16.msra.mxu1 %v6436_v8  ;;  %v5303_v52 = vpop.eup %5302 }
 0x7c7   : > { %2316 = vmatprep.subr.bf16.mxu1 %v6442_v4  ;;  %v5305_v57 = vpop.eup %5304  ;;  %v1684_v28 = vadd.f32 1.0, %v5303_v52 }
 0x7c8   : > { %v1686_v30 = vadd.f32 1.0, %v5305_v57 }
 0x7c9   : > { %5306 = vrcp.f32 %v1684_v28 }
 0x7ca   : > { %5308 = vrcp.f32 %v1686_v30 }
 0x7d3   : > { %v5307_v12 = vpop.eup %5306 }
 0x7d4   : > { %v5309_v15 = vpop.eup %5308 }
 0x836   : > { %v1772_v34 = vpop.permute.xlu0 %1771 }
 0x837   : > { %v6447_v23 = vmul.f32 %v5307_v12, %v1772_v34 }
 0x838   : > { %v1774_v36 = vpop.permute.xlu1 %1773 }
 0x839   : > { %v6449_v20 = vmul.f32 %v5309_v15, %v1774_v36 }
 0x83b   : > { %v1796_v56 = vpack.c.bf16 %v6449_v20, %v6447_v23 }
 0x83d   : > { %4550 = vmatmul.mubr.msk.bf16.vlgmr.msra.gmra.mrb[12].mxu0 %vm1064_vm2, %v1796_v56 }
 0x83e   : > { %2032 = vmatpush1.bf16.msra.mxu0 %v6457_v63  ;;  %2063 = vmatprep.mubr.bf16.mxu0 %v5723_v16 }
 0x83f   : > { %2033 = vmatprep.subr.bf16.mxu0 %v6464_v24 }
 0x842   : > { %2034 = vmatpush1.bf16.msra.mxu0 %v6470_v22 }
 0x843   : > { %2035 = vmatprep.subr.bf16.mxu0 %v6476_v60 }
 0x846   : > { %2036 = vmatpush1.bf16.msra.mxu0 %v6482_v29 }
 0x847   : > { %2037 = vmatprep.subr.bf16.mxu0 %v6488_v0 }
 0x84a   : > { %2038 = vmatpush1.bf16.msra.mxu0 %v6494_v27 }
 0x84b   : > { %2261 = vmatprep.subr.bf16.mxu0 %v6500_v31 }
 0x88c   : > { %v1890_v42 = vpop.f32.mrb[16].mxu1 }
 0x88d   : > { %v1892_v45 = vpop.f32.mrb[17].mxu1  ;;  %v4919_v35 = vadd.f32 %v1890_v42, %v6186_v25 }
 0x88e   : > { %v6504_v37 = vadd.f32 %v1892_v45, %v6167_v5  ;;  %v1894_v46 = vpop.f32.mrb[18].mxu1 }
 0x88f   : > { %v1896_v47 = vpop.f32.mrb[19].mxu1  ;;  %v4556_v40 = vmul.f32 -1.442695, %v4919_v35  ;;  %v4921_v6 = vadd.f32 %v1894_v46, %v6186_v25 }
 0x890   : > { %5310 = vtanh.f32 %v6504_v37  ;;  %v6508_v49 = vadd.f32 %v1896_v47, %v6167_v5 }
 0x891   : > { %v4558_v50 = vmul.f32 -1.442695, %v4921_v6 }
 0x892   : > { %5312 = vtanh.f32 %v6508_v49 }
 0x893   : > { %5314 = vpow2.f32 %v4556_v40 }
 0x894   : > { %5316 = vpow2.f32 %v4558_v50 }
 0x89a   : > { %v5311_v7 = vpop.eup %5310 }
 0x89b   : > { %1981 = vrot.lane.b32.xlu0 %v5311_v7, %s5724_s23 }
 0x89c   : > { %v5313_v32 = vpop.eup %5312 }
 0x89d   : > { %1983 = vrot.lane.b32.xlu1 %v5313_v32, %s5724_s23  ;;  %v5315_v51 = vpop.eup %5314 }
 0x89e   : > { %v1941_v53 = vadd.f32 1.0, %v5315_v51  ;;  %v5317_v61 = vpop.eup %5316 }
 0x89f   : > { %v1943_v3 = vadd.f32 1.0, %v5317_v61 }
 0x8a0   : > { %5318 = vrcp.f32 %v1941_v53 }
 0x8a1   : > { %5320 = vrcp.f32 %v1943_v3 }
 0x8aa   : > { %v5319_v9 = vpop.eup %5318 }
 0x8ab   : > { %v5321_v30 = vpop.eup %5320  ;;  %v1977_v6 = vmul.f32 %v5319_v9, %v6366_v33 }
 0x8ac   : > { %v1978_v3 = vmul.f32 %v5321_v30, %v6370_v39 }
 0x90d   : > { %v1982_v19 = vpop.permute.xlu0 %1981 }
 0x90e   : > { %v1987_v52 = vmul.f32 %v5319_v9, %v1982_v19 }
 0x90f   : > { %v1984_v34 = vpop.permute.xlu1 %1983 }
 0x910   : > { %1991 = vrot.lane.b32.xlu0 %v1987_v52, %s5724_s23  ;;  %v1834_v57 = vpop.f32.mrb[12].mxu0  ;;  %v1988_v36 = vmul.f32 %v5321_v30, %v1984_v34 }
 0x911   : > { %v1836_v28 = vpop.f32.mrb[13].mxu0  ;;  %v4883_v47 = vadd.f32 %v1834_v57, %v6197_v58 }
 0x912   : > { %v6517_v12 = vadd.f32 %v1836_v28, %v6172_v17  ;;  %v1838_v15 = vpop.f32.mrb[14].mxu0  ;;  %1993 = vrot.lane.b32.xlu1 %v1988_v36, %s5724_s23 }
 0x913   : > { %v1840_v56 = vpop.f32.mrb[15].mxu0  ;;  %v4552_v7 = vmul.f32 -1.442695, %v4883_v47  ;;  %v4885_v32 = vadd.f32 %v1838_v15, %v6197_v58 }
 0x914   : > { %5322 = vtanh.f32 %v6517_v12  ;;  %v6522_v42 = vadd.f32 %v1840_v56, %v6172_v17  ;;  %v4557_v56 = vmul.f32 -1.442695, %v6504_v37 }
 0x915   : > { %v4554_v35 = vmul.f32 -1.442695, %v4885_v32 }
 0x916   : > { %5324 = vtanh.f32 %v6522_v42 }
 0x917   : > { %5326 = vpow2.f32 %v4552_v7 }
 0x918   : > { %5328 = vpow2.f32 %v4554_v35 }
 0x91e   : > { %v5323_v45 = vpop.eup %5322 }
 0x91f   : > { %1959 = vrot.lane.b32.xlu0 %v5323_v45, %s5724_s23  ;;  %v4559_v45 = vmul.f32 -1.442695, %v6508_v49 }
 0x920   : > { %v5325_v46 = vpop.eup %5324 }
 0x921   : > { %1961 = vrot.lane.b32.xlu1 %v5325_v46, %s5724_s23  ;;  %v5327_v40 = vpop.eup %5326 }
 0x922   : > { %v1915_v51 = vadd.f32 1.0, %v5327_v40  ;;  %v5329_v61 = vpop.eup %5328 }
 0x923   : > { %v1917_v52 = vadd.f32 1.0, %v5329_v61 }
 0x982   : > { %v1992_v50 = vpop.permute.xlu0 %1991 }
 0x983   : > { %v6530_v53 = vadd.f32 %v1992_v50, %v1977_v6 }
 0x984   : > { %v1994_v19 = vpop.permute.xlu1 %1993 }
 0x985   : > { %5330 = vtanh.f32 %v6530_v53  ;;  %v6534_v57 = vadd.f32 %v1994_v19, %v1978_v3 }
 0x986   : > { %5332 = vrcp.f32 %v1915_v51 }
 0x987   : > { %5334 = vtanh.f32 %v6534_v57 }
 0x988   : > { %5336 = vrcp.f32 %v1917_v52 }
 0x989   : > { %5338 = vpow2.f32 %v4557_v56 }
 0x98a   : > { %5340 = vpow2.f32 %v4559_v45 }
 0x98f   : > { %v5331_v28 = vpop.eup %5330 }
 0x990   : > { %2015 = vrot.lane.b32.xlu0 %v5331_v28, %s5724_s23  ;;  %v5333_v33 = vpop.eup %5332 }
 0x991   : > { %v1960_v9 = vpop.permute.xlu0 %1959  ;;  %v5335_v15 = vpop.eup %5334  ;;  %v1955_v40 = vmul.f32 %v5333_v33, %v6380_v43 }
 0x992   : > { %v1965_v34 = vmul.f32 %v5333_v33, %v1960_v9  ;;  %2017 = vrot.lane.b32.xlu1 %v5335_v15, %s5724_s23  ;;  %v5337_v39 = vpop.eup %5336  ;;  %v4553_v33 = vmul.f32 -1.442695, %v6517_v12 }
 0x993   : > { %v1962_v30 = vpop.permute.xlu1 %1961  ;;  %v5339_v46 = vpop.eup %5338  ;;  %v1956_v52 = vmul.f32 %v5337_v39, %v6390_v18 }
 0x994   : > { %1969 = vrot.lane.b32.xlu0 %v1965_v34, %s5724_s23  ;;  %v1966_v36 = vmul.f32 %v5337_v39, %v1962_v30  ;;  %v5341_v47 = vpop.eup %5340  ;;  %v1942_v7 = vadd.f32 1.0, %v5339_v46  ;;  %v4555_v34 = vmul.f32 -1.442695, %v6522_v42 }
 0x995   : > { %v1944_v32 = vadd.f32 1.0, %v5341_v47 }
 0x996   : > { %1971 = vrot.lane.b32.xlu1 %v1966_v36, %s5724_s23  ;;  %5342 = vrcp.f32 %v1942_v7 }
 0x997   : > { %5344 = vrcp.f32 %v1944_v32 }
 0x9a0   : > { %v5343_v6 = vpop.eup %5342 }
 0x9a1   : > { %v5345_v51 = vpop.eup %5344 }
 0xa02   : > { %v2016_v35 = vpop.permute.xlu0 %2015 }
 0xa03   : > { %v6546_v37 = vmul.f32 %v5343_v6, %v2016_v35 }
 0xa04   : > { %v2018_v61 = vpop.permute.xlu1 %2017 }
 0xa05   : > { %v6548_v49 = vmul.f32 %v5345_v51, %v2018_v61 }
 0xa06   : > { %v1970_v50 = vpop.permute.xlu0 %1969 }
 0xa07   : > { %v6544_v3 = vadd.f32 %v1970_v50, %v1955_v40  ;;  %v2082_v19 = vpack.c.bf16 %v6548_v49, %v6546_v37 }
 0xa08   : > { %v1972_v28 = vpop.permute.xlu1 %1971 }
 0xa09   : > { %5346 = vtanh.f32 %v6544_v3  ;;  %v6554_v9 = vadd.f32 %v1972_v28, %v1956_v52  ;;  %4561 = vmatmul.mubr.msk.bf16.vlgmr.msra.gmra.mrb[12].mxu1 %vm1064_vm2, %v2082_v19 }
 0xa0a   : > { %2317 = vmatpush1.bf16.msra.mxu1 %v6396_v2  ;;  %2348 = vmatprep.mubr.bf16.mxu1 %v5723_v16 }
 0xa0b   : > { %5348 = vtanh.f32 %v6554_v9  ;;  %2318 = vmatprep.subr.bf16.mxu1 %v6404_v48 }
 0xa0c   : > { %5350 = vpow2.f32 %v4553_v33 }
 0xa0d   : > { %5352 = vpow2.f32 %v4555_v34 }
 0xa0e   : > { %2319 = vmatpush1.bf16.msra.mxu1 %v6410_v55 }
 0xa0f   : > { %2320 = vmatprep.subr.bf16.mxu1 %v6416_v59 }
 0xa12   : > { %2321 = vmatpush1.bf16.msra.mxu1 %v6423_v62 }
 0xa13   : > { %v5347_v43 = vpop.eup %5346  ;;  %2322 = vmatprep.subr.bf16.mxu1 %v6429_v1 }
 0xa14   : > { %2003 = vrot.lane.b32.xlu0 %v5347_v43, %s5724_s23 }
 0xa15   : > { %v5349_v18 = vpop.eup %5348 }
 0xa16   : > { %2005 = vrot.lane.b32.xlu1 %v5349_v18, %s5724_s23  ;;  %2323 = vmatpush1.bf16.msra.mxu1 %v6436_v8  ;;  %v5351_v15 = vpop.eup %5350 }
 0xa17   : > { %2546 = vmatprep.subr.bf16.mxu1 %v6442_v4  ;;  %v5353_v39 = vpop.eup %5352  ;;  %v1916_v30 = vadd.f32 1.0, %v5351_v15 }
 0xa18   : > { %v1918_v36 = vadd.f32 1.0, %v5353_v39 }
 0xa19   : > { %5354 = vrcp.f32 %v1916_v30 }
 0xa1a   : > { %5356 = vrcp.f32 %v1918_v36 }
 0xa23   : > { %v5355_v45 = vpop.eup %5354 }
 0xa24   : > { %v5357_v46 = vpop.eup %5356 }
 0xa86   : > { %v2004_v56 = vpop.permute.xlu0 %2003 }
 0xa87   : > { %v6571_v7 = vmul.f32 %v5355_v45, %v2004_v56 }
 0xa88   : > { %v2006_v47 = vpop.permute.xlu1 %2005 }
 0xa89   : > { %v6573_v32 = vmul.f32 %v5357_v46, %v2006_v47 }
 0xa8b   : > { %v2027_v12 = vpack.c.bf16 %v6573_v32, %v6571_v7 }
 0xa8d   : > { %4560 = vmatmul.mubr.msk.bf16.vlgmr.msra.gmra.mrb[16].mxu0 %vm1064_vm2, %v2027_v12 }
 0xa8e   : > { %2262 = vmatpush1.bf16.msra.mxu0 %v6457_v63  ;;  %2293 = vmatprep.mubr.bf16.mxu0 %v5723_v16 }
 0xa8f   : > { %2263 = vmatprep.subr.bf16.mxu0 %v6464_v24 }
 0xa92   : > { %2264 = vmatpush1.bf16.msra.mxu0 %v6470_v22 }
 0xa93   : > { %2265 = vmatprep.subr.bf16.mxu0 %v6476_v60 }
 0xa96   : > { %2266 = vmatpush1.bf16.msra.mxu0 %v6482_v29 }
 0xa97   : > { %2267 = vmatprep.subr.bf16.mxu0 %v6488_v0 }
 0xa9a   : > { %2268 = vmatpush1.bf16.msra.mxu0 %v6494_v27 }
 0xa9b   : > { %2491 = vmatprep.subr.bf16.mxu0 %v6500_v31 }
 0xadc   : > { %v2120_v42 = vpop.f32.mrb[12].mxu1 }
 0xadd   : > { %v2122_v35 = vpop.f32.mrb[13].mxu1  ;;  %v4915_v52 = vadd.f32 %v2120_v42, %v6186_v25 }
 0xade   : > { %v6588_v40 = vadd.f32 %v2122_v35, %v6167_v5  ;;  %v2124_v6 = vpop.f32.mrb[14].mxu1 }
 0xadf   : > { %v2126_v50 = vpop.f32.mrb[15].mxu1  ;;  %v4566_v28 = vmul.f32 -1.442695, %v4915_v52  ;;  %v4917_v43 = vadd.f32 %v2124_v6, %v6186_v25 }
 0xae0   : > { %5358 = vtanh.f32 %v6588_v40  ;;  %v6592_v51 = vadd.f32 %v2126_v50, %v6167_v5 }
 0xae1   : > { %v4568_v18 = vmul.f32 -1.442695, %v4917_v43 }
 0xae2   : > { %5360 = vtanh.f32 %v6592_v51 }
 0xae3   : > { %5362 = vpow2.f32 %v4566_v28 }
 0xae4   : > { %5364 = vpow2.f32 %v4568_v18 }
 0xaea   : > { %v5359_v61 = vpop.eup %5358 }
 0xaeb   : > { %2211 = vrot.lane.b32.xlu0 %v5359_v61, %s5724_s23 }
 0xaec   : > { %v5361_v19 = vpop.eup %5360 }
 0xaed   : > { %2213 = vrot.lane.b32.xlu1 %v5361_v19, %s5724_s23  ;;  %v5363_v33 = vpop.eup %5362 }
 0xaee   : > { %v2171_v34 = vadd.f32 1.0, %v5363_v33  ;;  %v5365_v15 = vpop.eup %5364 }
 0xaef   : > { %v2173_v39 = vadd.f32 1.0, %v5365_v15 }
 0xaf0   : > { %5366 = vrcp.f32 %v2171_v34 }
 0xaf1   : > { %5368 = vrcp.f32 %v2173_v39 }
 0xafa   : > { %v5367_v30 = vpop.eup %5366 }
 0xafb   : > { %v5369_v47 = vpop.eup %5368  ;;  %v2207_v15 = vmul.f32 %v5367_v30, %v6530_v53 }
 0xb5d   : > { %v2212_v36 = vpop.permute.xlu0 %2211 }
 0xb5e   : > { %v2217_v56 = vmul.f32 %v5367_v30, %v2212_v36 }
 0xb5f   : > { %v2214_v12 = vpop.permute.xlu1 %2213 }
 0xb60   : > { %2221 = vrot.lane.b32.xlu0 %v2217_v56, %s5724_s23  ;;  %v2065_v45 = vpop.f32.mrb[16].mxu0  ;;  %v2218_v6 = vmul.f32 %v5369_v47, %v2214_v12  ;;  %v2208_v12 = vmul.f32 %v5369_v47, %v6534_v57 }
 0xb61   : > { %v2067_v46 = vpop.f32.mrb[17].mxu0  ;;  %v4887_v28 = vadd.f32 %v2065_v45, %v6197_v58 }
 0xb62   : > { %v6601_v42 = vadd.f32 %v2067_v46, %v6172_v17  ;;  %v2069_v35 = vpop.f32.mrb[18].mxu0  ;;  %2223 = vrot.lane.b32.xlu1 %v2218_v6, %s5724_s23 }
 0xb63   : > { %v2071_v50 = vpop.f32.mrb[19].mxu0  ;;  %v4562_v43 = vmul.f32 -1.442695, %v4887_v28  ;;  %v4889_v18 = vadd.f32 %v2069_v35, %v6197_v58 }
 0xb64   : > { %5370 = vtanh.f32 %v6601_v42  ;;  %v6606_v61 = vadd.f32 %v2071_v50, %v6172_v17 }
 0xb65   : > { %v4564_v33 = vmul.f32 -1.442695, %v4889_v18  ;;  %v4569_v18 = vmul.f32 -1.442695, %v6592_v51 }
 0xb66   : > { %5372 = vtanh.f32 %v6606_v61 }
 0xb67   : > { %5374 = vpow2.f32 %v4562_v43  ;;  %v4567_v43 = vmul.f32 -1.442695, %v6588_v40 }
 0xb68   : > { %5376 = vpow2.f32 %v4564_v33 }
 0xb6e   : > { %v5371_v19 = vpop.eup %5370 }
 0xb6f   : > { %2189 = vrot.lane.b32.xlu0 %v5371_v19, %s5724_s23 }
 0xb70   : > { %v5373_v52 = vpop.eup %5372 }
 0xb71   : > { %2191 = vrot.lane.b32.xlu1 %v5373_v52, %s5724_s23  ;;  %v5375_v34 = vpop.eup %5374 }
 0xb72   : > { %v2145_v36 = vadd.f32 1.0, %v5375_v34  ;;  %v5377_v46 = vpop.eup %5376 }
 0xb73   : > { %v2147_v6 = vadd.f32 1.0, %v5377_v46 }
 0xbd2   : > { %v2222_v39 = vpop.permute.xlu0 %2221 }
 0xbd3   : > { %v6614_v56 = vadd.f32 %v2222_v39, %v2207_v15 }
 0xbd4   : > { %v2224_v45 = vpop.permute.xlu1 %2223 }
 0xbd5   : > { %5378 = vtanh.f32 %v6614_v56  ;;  %v6618_v50 = vadd.f32 %v2224_v45, %v2208_v12 }
 0xbd6   : > { %5380 = vrcp.f32 %v2145_v36 }
 0xbd7   : > { %5382 = vtanh.f32 %v6618_v50 }
 0xbd8   : > { %5384 = vrcp.f32 %v2147_v6 }
 0xbd9   : > { %5386 = vpow2.f32 %v4567_v43 }
 0xbda   : > { %5388 = vpow2.f32 %v4569_v18 }
 0xbdf   : > { %v5379_v35 = vpop.eup %5378 }
 0xbe0   : > { %2245 = vrot.lane.b32.xlu0 %v5379_v35, %s5724_s23  ;;  %v5381_v53 = vpop.eup %5380 }
 0xbe1   : > { %v2190_v30 = vpop.permute.xlu0 %2189  ;;  %v5383_v52 = vpop.eup %5382  ;;  %v2185_v46 = vmul.f32 %v5381_v53, %v6544_v3 }
 0xbe2   : > { %v2195_v19 = vmul.f32 %v5381_v53, %v2190_v30  ;;  %2247 = vrot.lane.b32.xlu1 %v5383_v52, %s5724_s23  ;;  %v5385_v57 = vpop.eup %5384  ;;  %v4563_v53 = vmul.f32 -1.442695, %v6601_v42 }
 0xbe3   : > { %v2192_v47 = vpop.permute.xlu1 %2191  ;;  %v5387_v33 = vpop.eup %5386  ;;  %v2186_v52 = vmul.f32 %v5385_v57, %v6554_v9 }
 0xbe4   : > { %2199 = vrot.lane.b32.xlu0 %v2195_v19, %s5724_s23  ;;  %v2196_v28 = vmul.f32 %v5385_v57, %v2192_v47  ;;  %v5389_v34 = vpop.eup %5388  ;;  %v2172_v15 = vadd.f32 1.0, %v5387_v33  ;;  %v4565_v57 = vmul.f32 -1.442695, %v6606_v61 }
 0xbe5   : > { %v2174_v39 = vadd.f32 1.0, %v5389_v34 }
 0xbe6   : > { %2201 = vrot.lane.b32.xlu1 %v2196_v28, %s5724_s23  ;;  %5390 = vrcp.f32 %v2172_v15 }
 0xbe7   : > { %5392 = vrcp.f32 %v2174_v39 }
 0xbf0   : > { %v5391_v12 = vpop.eup %5390 }
 0xbf1   : > { %v5393_v6 = vpop.eup %5392 }
 0xc52   : > { %v2246_v36 = vpop.permute.xlu0 %2245 }
 0xc53   : > { %v6630_v40 = vmul.f32 %v5391_v12, %v2246_v36 }
 0xc54   : > { %v2248_v35 = vpop.permute.xlu1 %2247 }
 0xc55   : > { %v6632_v51 = vmul.f32 %v5393_v6, %v2248_v35 }
 0xc56   : > { %v2200_v45 = vpop.permute.xlu0 %2199 }
 0xc57   : > { %v6628_v30 = vadd.f32 %v2200_v45, %v2185_v46  ;;  %v2312_v19 = vpack.c.bf16 %v6632_v51, %v6630_v40 }
 0xc58   : > { %v2202_v47 = vpop.permute.xlu1 %2201 }
 0xc59   : > { %5394 = vtanh.f32 %v6628_v30  ;;  %v6638_v28 = vadd.f32 %v2202_v47, %v2186_v52  ;;  %4571 = vmatmul.mubr.msk.bf16.vlgmr.msra.gmra.mrb[8].mxu1 %vm1064_vm2, %v2312_v19 }
 0xc5a   : > { %2547 = vmatpush1.bf16.msra.mxu1 %v6396_v2  ;;  %2578 = vmatprep.mubr.bf16.mxu1 %v5723_v16 }
 0xc5b   : > { %5396 = vtanh.f32 %v6638_v28  ;;  %2548 = vmatprep.subr.bf16.mxu1 %v6404_v48 }
 0xc5c   : > { %5398 = vpow2.f32 %v4563_v53 }
 0xc5d   : > { %5400 = vpow2.f32 %v4565_v57 }
 0xc5e   : > { %2549 = vmatpush1.bf16.msra.mxu1 %v6410_v55 }
 0xc5f   : > { %2550 = vmatprep.subr.bf16.mxu1 %v6416_v59 }
 0xc62   : > { %2551 = vmatpush1.bf16.msra.mxu1 %v6423_v62 }
 0xc63   : > { %v5395_v3 = vpop.eup %5394  ;;  %2552 = vmatprep.subr.bf16.mxu1 %v6429_v1 }
 0xc64   : > { %2233 = vrot.lane.b32.xlu0 %v5395_v3, %s5724_s23 }
 0xc65   : > { %v5397_v9 = vpop.eup %5396 }
 0xc66   : > { %2235 = vrot.lane.b32.xlu1 %v5397_v9, %s5724_s23  ;;  %2553 = vmatpush1.bf16.msra.mxu1 %v6436_v8  ;;  %v5399_v43 = vpop.eup %5398 }
 0xc67   : > { %2776 = vmatprep.subr.bf16.mxu1 %v6442_v4  ;;  %v5401_v18 = vpop.eup %5400  ;;  %v2146_v33 = vadd.f32 1.0, %v5399_v43 }
 0xc68   : > { %v2148_v34 = vadd.f32 1.0, %v5401_v18 }
 0xc69   : > { %5402 = vrcp.f32 %v2146_v33 }
 0xc6a   : > { %5404 = vrcp.f32 %v2148_v34 }
 0xc73   : > { %v5403_v39 = vpop.eup %5402 }
 0xc74   : > { %v5405_v36 = vpop.eup %5404 }
 0xcd6   : > { %v2234_v15 = vpop.permute.xlu0 %2233 }
 0xcd7   : > { %v6655_v12 = vmul.f32 %v5403_v39, %v2234_v15 }
 0xcd8   : > { %v2236_v46 = vpop.permute.xlu1 %2235 }
 0xcd9   : > { %v6657_v45 = vmul.f32 %v5405_v36, %v2236_v46 }
 0xcdb   : > { %v2257_v4 = vpack.c.bf16 %v6657_v45, %v6655_v12 }
 0xcdd   : > { %4570 = vmatmul.mubr.msk.bf16.vlgmr.msra.gmra.mrb[20].mxu0 %vm1064_vm2, %v2257_v4 }
 0xcde   : > { %2492 = vmatpush1.bf16.msra.mxu0 %v6457_v63  ;;  %2523 = vmatprep.mubr.bf16.mxu0 %v5723_v16 }
 0xcdf   : > { %2493 = vmatprep.subr.bf16.mxu0 %v6464_v24 }
 0xce2   : > { %2494 = vmatpush1.bf16.msra.mxu0 %v6470_v22 }
 0xce3   : > { %2495 = vmatprep.subr.bf16.mxu0 %v6476_v60 }
 0xce6   : > { %2496 = vmatpush1.bf16.msra.mxu0 %v6482_v29 }
 0xce7   : > { %2497 = vmatprep.subr.bf16.mxu0 %v6488_v0 }
 0xcea   : > { %2498 = vmatpush1.bf16.msra.mxu0 %v6494_v27 }
 0xceb   : > { %2721 = vmatprep.subr.bf16.mxu0 %v6500_v31 }
 0xd2c   : > { %v2350_v42 = vpop.f32.mrb[8].mxu1 }
 0xd2d   : > { %v2352_v61 = vpop.f32.mrb[9].mxu1  ;;  %v4911_v31 = vadd.f32 %v2350_v42, %v6186_v25 }
 0xd2e   : > { %v6672_v6 = vadd.f32 %v2352_v61, %v6167_v5  ;;  %v2354_v35 = vpop.f32.mrb[10].mxu1 }
 0xd2f   : > { %v2356_v19 = vpop.f32.mrb[11].mxu1  ;;  %v4576_v9 = vmul.f32 -1.442695, %v4911_v31  ;;  %v4913_v53 = vadd.f32 %v2354_v35, %v6186_v25 }
 0xd30   : > { %5406 = vtanh.f32 %v6672_v6  ;;  %v6676_v52 = vadd.f32 %v2356_v19, %v6167_v5 }
 0xd31   : > { %v4578_v57 = vmul.f32 -1.442695, %v4913_v53 }
 0xd32   : > { %5408 = vtanh.f32 %v6676_v52 }
 0xd33   : > { %5410 = vpow2.f32 %v4576_v9 }
 0xd34   : > { %5412 = vpow2.f32 %v4578_v57 }
 0xd3a   : > { %v5407_v47 = vpop.eup %5406 }
 0xd3b   : > { %2441 = vrot.lane.b32.xlu0 %v5407_v47, %s5724_s23 }
 0xd3c   : > { %v5409_v3 = vpop.eup %5408 }
 0xd3d   : > { %2443 = vrot.lane.b32.xlu1 %v5409_v3, %s5724_s23  ;;  %v5411_v43 = vpop.eup %5410 }
 0xd3e   : > { %v2401_v18 = vadd.f32 1.0, %v5411_v43  ;;  %v5413_v33 = vpop.eup %5412 }
 0xd3f   : > { %v2403_v34 = vadd.f32 1.0, %v5413_v33 }
 0xd40   : > { %5414 = vrcp.f32 %v2401_v18 }
 0xd41   : > { %5416 = vrcp.f32 %v2403_v34 }
 0xd4a   : > { %v5415_v15 = vpop.eup %5414 }
 0xd4b   : > { %v5417_v42 = vpop.eup %5416 }
 0xdad   : > { %v2442_v39 = vpop.permute.xlu0 %2441 }
 0xdae   : > { %v2447_v36 = vmul.f32 %v5415_v15, %v2442_v39  ;;  %v2437_v39 = vmul.f32 %v5415_v15, %v6614_v56 }
 0xdaf   : > { %v2444_v61 = vpop.permute.xlu1 %2443 }
 0xdb0   : > { %2451 = vrot.lane.b32.xlu0 %v2447_v36, %s5724_s23  ;;  %v2295_v46 = vpop.f32.mrb[20].mxu0  ;;  %v2448_v47 = vmul.f32 %v5417_v42, %v2444_v61 }
 0xdb1   : > { %v2297_v4 = vpop.f32.mrb[21].mxu0  ;;  %v4891_v57 = vadd.f32 %v2295_v46, %v6197_v58 }
 0xdb2   : > { %v6685_v35 = vadd.f32 %v2297_v4, %v6172_v17  ;;  %v2299_v19 = vpop.f32.mrb[22].mxu0  ;;  %2453 = vrot.lane.b32.xlu1 %v2448_v47, %s5724_s23 }
 0xdb3   : > { %v2301_v3 = vpop.f32.mrb[23].mxu0  ;;  %v4572_v43 = vmul.f32 -1.442695, %v4891_v57  ;;  %v4893_v18 = vadd.f32 %v2299_v19, %v6197_v58 }
 0xdb4   : > { %5418 = vtanh.f32 %v6685_v35  ;;  %v6690_v31 = vadd.f32 %v2301_v3, %v6172_v17  ;;  %v2438_v3 = vmul.f32 %v5417_v42, %v6618_v50 }
 0xdb5   : > { %v4574_v33 = vmul.f32 -1.442695, %v4893_v18 }
 0xdb6   : > { %5420 = vtanh.f32 %v6690_v31 }
 0xdb7   : > { %5422 = vpow2.f32 %v4572_v43 }
 0xdb8   : > { %5424 = vpow2.f32 %v4574_v33  ;;  %v4577_v33 = vmul.f32 -1.442695, %v6672_v6 }
 0xdbe   : > { %v5419_v9 = vpop.eup %5418 }
 0xdbf   : > { %2419 = vrot.lane.b32.xlu0 %v5419_v9, %s5724_s23 }
 0xdc0   : > { %v5421_v53 = vpop.eup %5420 }
 0xdc1   : > { %2421 = vrot.lane.b32.xlu1 %v5421_v53, %s5724_s23  ;;  %v5423_v34 = vpop.eup %5422 }
 0xdc2   : > { %v2375_v4 = vadd.f32 1.0, %v5423_v34  ;;  %v5425_v47 = vpop.eup %5424  ;;  %v4579_v34 = vmul.f32 -1.442695, %v6676_v52 }
 0xdc3   : > { %v2377_v9 = vadd.f32 1.0, %v5425_v47 }
 0xe22   : > { %v2452_v36 = vpop.permute.xlu0 %2451 }
 0xe23   : > { %v6698_v61 = vadd.f32 %v2452_v36, %v2437_v39 }
 0xe24   : > { %v2454_v46 = vpop.permute.xlu1 %2453 }
 0xe25   : > { %5426 = vtanh.f32 %v6698_v61  ;;  %v6702_v53 = vadd.f32 %v2454_v46, %v2438_v3 }
 0xe26   : > { %5428 = vrcp.f32 %v2375_v4 }
 0xe27   : > { %5430 = vtanh.f32 %v6702_v53 }
 0xe28   : > { %5432 = vrcp.f32 %v2377_v9 }
 0xe29   : > { %5434 = vpow2.f32 %v4577_v33 }
 0xe2a   : > { %5436 = vpow2.f32 %v4579_v34 }
 0xe2f   : > { %v5427_v19 = vpop.eup %5426 }
 0xe30   : > { %2475 = vrot.lane.b32.xlu0 %v5427_v19, %s5724_s23  ;;  %v5429_v56 = vpop.eup %5428 }
 0xe31   : > { %v2420_v15 = vpop.permute.xlu0 %2419  ;;  %v5431_v43 = vpop.eup %5430  ;;  %v2415_v46 = vmul.f32 %v5429_v56, %v6628_v30 }
 0xe32   : > { %v2425_v57 = vmul.f32 %v5429_v56, %v2420_v15  ;;  %2477 = vrot.lane.b32.xlu1 %v5431_v43, %s5724_s23  ;;  %v5433_v50 = vpop.eup %5432 }
 0xe33   : > { %v2422_v42 = vpop.permute.xlu1 %2421  ;;  %v5435_v39 = vpop.eup %5434 }
 0xe34   : > { %2429 = vrot.lane.b32.xlu0 %v2425_v57, %s5724_s23  ;;  %v2426_v18 = vmul.f32 %v5433_v50, %v2422_v42  ;;  %v5437_v36 = vpop.eup %5436  ;;  %v2402_v4 = vadd.f32 1.0, %v5435_v39 }
 0xe35   : > { %v2404_v47 = vadd.f32 1.0, %v5437_v36 }
 0xe36   : > { %2431 = vrot.lane.b32.xlu1 %v2426_v18, %s5724_s23  ;;  %5438 = vrcp.f32 %v2402_v4  ;;  %v2416_v18 = vmul.f32 %v5433_v50, %v6638_v28 }
 0xe37   : > { %5440 = vrcp.f32 %v2404_v47 }
 0xe40   : > { %v5439_v9 = vpop.eup %5438 }
 0xe41   : > { %v5441_v15 = vpop.eup %5440 }
 0xea2   : > { %v2476_v3 = vpop.permute.xlu0 %2475 }
 0xea3   : > { %v6714_v6 = vmul.f32 %v5439_v9, %v2476_v3 }
 0xea4   : > { %v2478_v57 = vpop.permute.xlu1 %2477 }
 0xea5   : > { %v6716_v52 = vmul.f32 %v5441_v15, %v2478_v57 }
 0xea6   : > { %v2430_v19 = vpop.permute.xlu0 %2429 }
 0xea7   : > { %v6712_v43 = vadd.f32 %v2430_v19, %v2415_v46  ;;  %v2542_v42 = vpack.c.bf16 %v6716_v52, %v6714_v6 }
 0xea8   : > { %v2432_v33 = vpop.permute.xlu1 %2431 }
 0xea9   : > { %5442 = vtanh.f32 %v6712_v43  ;;  %v6722_v34 = vadd.f32 %v2432_v33, %v2416_v18  ;;  %4581 = vmatmul.mubr.msk.bf16.vlgmr.msra.gmra.mrb[4].mxu1 %vm1064_vm2, %v2542_v42 }
 0xeaa   : > { %2777 = vmatpush1.bf16.msra.mxu1 %v6396_v2  ;;  %2808 = vmatprep.mubr.bf16.mxu1 %v5723_v16  ;;  %v4573_v2 = vmul.f32 -1.442695, %v6685_v35 }
 0xeab   : > { %5444 = vtanh.f32 %v6722_v34  ;;  %2778 = vmatprep.subr.bf16.mxu1 %v6404_v48  ;;  %v4575_v48 = vmul.f32 -1.442695, %v6690_v31 }
 0xeac   : > { %5446 = vpow2.f32 %v4573_v2 }
 0xead   : > { %5448 = vpow2.f32 %v4575_v48 }
 0xeae   : > { %2779 = vmatpush1.bf16.msra.mxu1 %v6410_v55 }
 0xeaf   : > { %2780 = vmatprep.subr.bf16.mxu1 %v6416_v59 }
 0xeb2   : > { %2781 = vmatpush1.bf16.msra.mxu1 %v6423_v62 }
 0xeb3   : > { %v5443_v30 = vpop.eup %5442  ;;  %2782 = vmatprep.subr.bf16.mxu1 %v6429_v1 }
 0xeb4   : > { %2463 = vrot.lane.b32.xlu0 %v5443_v30, %s5724_s23 }
 0xeb5   : > { %v5445_v28 = vpop.eup %5444 }
 0xeb6   : > { %2465 = vrot.lane.b32.xlu1 %v5445_v28, %s5724_s23  ;;  %2783 = vmatpush1.bf16.msra.mxu1 %v6436_v8  ;;  %v5447_v55 = vpop.eup %5446 }
 0xeb7   : > { %v5449_v59 = vpop.eup %5448  ;;  %v2376_v56 = vadd.f32 1.0, %v5447_v55 }
 0xeb8   : > { %v2378_v50 = vadd.f32 1.0, %v5449_v59 }
 0xeb9   : > { %5450 = vrcp.f32 %v2376_v56 }
 0xeba   : > { %5452 = vrcp.f32 %v2378_v50 }
 0xec3   : > { %v5451_v39 = vpop.eup %5450 }
 0xec4   : > { %v5453_v1 = vpop.eup %5452 }
 0xf26   : > { %v2464_v62 = vpop.permute.xlu0 %2463 }
 0xf27   : > { %v6738_v4 = vmul.f32 %v5451_v39, %v2464_v62 }
 0xf28   : > { %v2466_v36 = vpop.permute.xlu1 %2465 }
 0xf29   : > { %v6740_v47 = vmul.f32 %v5453_v1, %v2466_v36 }
 0xf2b   : > { %v2487_v8 = vpack.c.bf16 %v6740_v47, %v6738_v4 }
 0xf2d   : > { %4580 = vmatmul.mubr.msk.bf16.vlgmr.msra.gmra.mrb[24].mxu0 %vm1064_vm2, %v2487_v8 }
 0xf2e   : > { %2722 = vmatpush1.bf16.msra.mxu0 %v6457_v63  ;;  %2753 = vmatprep.mubr.bf16.mxu0 %v5723_v16 }
 0xf2f   : > { %2723 = vmatprep.subr.bf16.mxu0 %v6464_v24 }
 0xf32   : > { %2724 = vmatpush1.bf16.msra.mxu0 %v6470_v22 }
 0xf33   : > { %2725 = vmatprep.subr.bf16.mxu0 %v6476_v60 }
 0xf36   : > { %2726 = vmatpush1.bf16.msra.mxu0 %v6482_v29 }
 0xf37   : > { %2727 = vmatprep.subr.bf16.mxu0 %v6488_v0 }
 0xf3a   : > { %2728 = vmatpush1.bf16.msra.mxu0 %v6494_v27 }
 0xf7c   : > { %v2580_v35 = vpop.f32.mrb[4].mxu1 }
 0xf7d   : > { %v2582_v31 = vpop.f32.mrb[5].mxu1  ;;  %v4907_v29 = vadd.f32 %v2580_v35, %v6186_v25 }
 0xf7e   : > { %v6754_v3 = vadd.f32 %v2582_v31, %v6167_v5  ;;  %v2584_v63 = vpop.f32.mrb[6].mxu1 }
 0xf7f   : > { %v2586_v46 = vpop.f32.mrb[7].mxu1  ;;  %v4586_v0 = vmul.f32 -1.442695, %v4907_v29  ;;  %v4909_v27 = vadd.f32 %v2584_v63, %v6186_v25 }
 0xf80   : > { %5454 = vtanh.f32 %v6754_v3  ;;  %v6758_v24 = vadd.f32 %v2586_v46, %v6167_v5 }
 0xf81   : > { %v4588_v9 = vmul.f32 -1.442695, %v4909_v27 }
 0xf82   : > { %5456 = vtanh.f32 %v6758_v24 }
 0xf83   : > { %5458 = vpow2.f32 %v4586_v0 }
 0xf84   : > { %5460 = vpow2.f32 %v4588_v9 }
 0xf8a   : > { %v5455_v22 = vpop.eup %5454 }
 0xf8b   : > { %2671 = vrot.lane.b32.xlu0 %v5455_v22, %s5724_s23 }
 0xf8c   : > { %v5457_v60 = vpop.eup %5456 }
 0xf8d   : > { %2673 = vrot.lane.b32.xlu1 %v5457_v60, %s5724_s23  ;;  %v5459_v19 = vpop.eup %5458 }
 0xf8e   : > { %v2631_v15 = vadd.f32 1.0, %v5459_v19  ;;  %v5461_v57 = vpop.eup %5460 }
 0xf8f   : > { %v2633_v42 = vadd.f32 1.0, %v5461_v57 }
 0xf90   : > { %5462 = vrcp.f32 %v2631_v15 }
 0xf91   : > { %5464 = vrcp.f32 %v2633_v42 }
 0xf9a   : > { %v5463_v18 = vpop.eup %5462 }
 0xf9b   : > { %v5465_v48 = vpop.eup %5464  ;;  %v2667_v22 = vmul.f32 %v5463_v18, %v6698_v61 }
 0xf9c   : > { %v2668_v9 = vmul.f32 %v5465_v48, %v6702_v53 }
 0xffd   : > { %v2672_v33 = vpop.permute.xlu0 %2671 }
 0xffe   : > { %v2677_v30 = vmul.f32 %v5463_v18, %v2672_v33 }
 0xfff   : > { %v2674_v55 = vpop.permute.xlu1 %2673 }
0x1000   : > { %2681 = vrot.lane.b32.xlu0 %v2677_v30, %s5724_s23  ;;  %v2525_v28 = vpop.f32.mrb[24].mxu0  ;;  %v2678_v50 = vmul.f32 %v5465_v48, %v2674_v55  ;;  %v4587_v48 = vmul.f32 -1.442695, %v6754_v3  ;;  %v4589_v55 = vmul.f32 -1.442695, %v6758_v24 }
0x1001   : > { %v2527_v2 = vpop.f32.mrb[25].mxu0  ;;  %v4895_v8 = vadd.f32 %v2525_v28, %v6197_v58 }
0x1002   : > { %v6767_v59 = vadd.f32 %v2527_v2, %v6172_v17  ;;  %v2529_v56 = vpop.f32.mrb[26].mxu0  ;;  %2683 = vrot.lane.b32.xlu1 %v2678_v50, %s5724_s23 }
0x1003   : > { %v2531_v62 = vpop.f32.mrb[27].mxu0  ;;  %v4582_v35 = vmul.f32 -1.442695, %v4895_v8  ;;  %v4897_v31 = vadd.f32 %v2529_v56, %v6197_v58 }
0x1004   : > { %5466 = vtanh.f32 %v6767_v59  ;;  %v6772_v39 = vadd.f32 %v2531_v62, %v6172_v17 }
0x1005   : > { %v4584_v63 = vmul.f32 -1.442695, %v4897_v31 }
0x1006   : > { %5468 = vtanh.f32 %v6772_v39 }
0x1007   : > { %5470 = vpow2.f32 %v4582_v35 }
0x1008   : > { %5472 = vpow2.f32 %v4584_v63 }
0x100e   : > { %v5467_v1 = vpop.eup %5466 }
0x100f   : > { %2649 = vrot.lane.b32.xlu0 %v5467_v1, %s5724_s23 }
0x1010   : > { %v5469_v36 = vpop.eup %5468 }
0x1011   : > { %2651 = vrot.lane.b32.xlu1 %v5469_v36, %s5724_s23  ;;  %v5471_v46 = vpop.eup %5470 }
0x1012   : > { %v2605_v29 = vadd.f32 1.0, %v5471_v46  ;;  %v5473_v27 = vpop.eup %5472 }
0x1013   : > { %v2607_v15 = vadd.f32 1.0, %v5473_v27 }
0x1072   : > { %v2682_v60 = vpop.permute.xlu0 %2681 }
0x1073   : > { %v6780_v0 = vadd.f32 %v2682_v60, %v2667_v22 }
0x1074   : > { %v2684_v19 = vpop.permute.xlu1 %2683 }
0x1075   : > { %5474 = vtanh.f32 %v6780_v0  ;;  %v6784_v57 = vadd.f32 %v2684_v19, %v2668_v9 }
0x1076   : > { %5476 = vrcp.f32 %v2605_v29 }
0x1077   : > { %5478 = vtanh.f32 %v6784_v57 }
0x1078   : > { %5480 = vrcp.f32 %v2607_v15  ;;  %v4583_v15 = vmul.f32 -1.442695, %v6767_v59 }
0x1079   : > { %5482 = vpow2.f32 %v4587_v48 }
0x107a   : > { %5484 = vpow2.f32 %v4589_v55 }
0x107f   : > { %v5475_v42 = vpop.eup %5474 }
0x1080   : > { %2705 = vrot.lane.b32.xlu0 %v5475_v42, %s5724_s23  ;;  %v5477_v61 = vpop.eup %5476  ;;  %v4585_v42 = vmul.f32 -1.442695, %v6772_v39 }
0x1081   : > { %v2650_v18 = vpop.permute.xlu0 %2649  ;;  %v5479_v30 = vpop.eup %5478  ;;  %v2645_v8 = vmul.f32 %v5477_v61, %v6712_v43 }
0x1082   : > { %v2655_v33 = vmul.f32 %v5477_v61, %v2650_v18  ;;  %2707 = vrot.lane.b32.xlu1 %v5479_v30, %s5724_s23  ;;  %v5481_v53 = vpop.eup %5480 }
0x1083   : > { %v2652_v28 = vpop.permute.xlu1 %2651  ;;  %v5483_v56 = vpop.eup %5482  ;;  %v2646_v29 = vmul.f32 %v5481_v53, %v6722_v34 }
0x1084   : > { %2659 = vrot.lane.b32.xlu0 %v2655_v33, %s5724_s23  ;;  %v2656_v2 = vmul.f32 %v5481_v53, %v2652_v28  ;;  %v5485_v50 = vpop.eup %5484  ;;  %v2632_v62 = vadd.f32 1.0, %v5483_v56 }
0x1085   : > { %v2634_v1 = vadd.f32 1.0, %v5485_v50 }
0x1086   : > { %2661 = vrot.lane.b32.xlu1 %v2656_v2, %s5724_s23  ;;  %5486 = vrcp.f32 %v2632_v62 }
0x1087   : > { %5488 = vrcp.f32 %v2634_v1 }
0x1090   : > { %v5487_v35 = vpop.eup %5486 }
0x1091   : > { %v5489_v63 = vpop.eup %5488 }
0x10f2   : > { %v2706_v36 = vpop.permute.xlu0 %2705 }
0x10f3   : > { %v6796_v3 = vmul.f32 %v5487_v35, %v2706_v36 }
0x10f4   : > { %v2708_v46 = vpop.permute.xlu1 %2707 }
0x10f5   : > { %v6798_v24 = vmul.f32 %v5489_v63, %v2708_v46 }
0x10f6   : > { %v2660_v31 = vpop.permute.xlu0 %2659 }
0x10f7   : > { %v6794_v22 = vadd.f32 %v2660_v31, %v2645_v8  ;;  %v2772_v60 = vpack.c.bf16 %v6798_v24, %v6796_v3 }
0x10f8   : > { %v2662_v27 = vpop.permute.xlu1 %2661 }
0x10f9   : > { %5490 = vtanh.f32 %v6794_v22  ;;  %v6804_v9 = vadd.f32 %v2662_v27, %v2646_v29  ;;  %4591 = vmatmul.mubr.msk.bf16.vlgmr.msra.gmra.mrb[0].mxu1 %vm1064_vm2, %v2772_v60 }
0x10fb   : > { %5492 = vtanh.f32 %v6804_v9 }
0x10fc   : > { %5494 = vpow2.f32 %v4583_v15 }
0x10fd   : > { %5496 = vpow2.f32 %v4585_v42 }
0x1103   : > { %v5491_v43 = vpop.eup %5490 }
0x1104   : > { %2693 = vrot.lane.b32.xlu0 %v5491_v43, %s5724_s23 }
0x1105   : > { %v5493_v19 = vpop.eup %5492 }
0x1106   : > { %2695 = vrot.lane.b32.xlu1 %v5493_v19, %s5724_s23  ;;  %v5495_v34 = vpop.eup %5494 }
0x1107   : > { %v5497_v61 = vpop.eup %5496  ;;  %v2606_v18 = vadd.f32 1.0, %v5495_v34 }
0x1108   : > { %v2608_v33 = vadd.f32 1.0, %v5497_v61 }
0x1109   : > { %5498 = vrcp.f32 %v2606_v18 }
0x110a   : > { %5500 = vrcp.f32 %v2608_v33 }
0x1113   : > { %v5499_v53 = vpop.eup %5498 }
0x1114   : > { %v5501_v28 = vpop.eup %5500 }
0x1176   : > { %v2694_v30 = vpop.permute.xlu0 %2693 }
0x1177   : > { %v6812_v48 = vmul.f32 %v5499_v53, %v2694_v30 }
0x1178   : > { %v2696_v2 = vpop.permute.xlu1 %2695 }
0x1179   : > { %v6814_v55 = vmul.f32 %v5501_v28, %v2696_v2 }
0x117b   : > { %v2717_v59 = vpack.c.bf16 %v6814_v55, %v6812_v48 }
0x117d   : > { %4590 = vmatmul.mubr.msk.bf16.vlgmr.msra.gmra.mrb[28].mxu0 %vm1064_vm2, %v2717_v59 }
0x11cc   : > { %v2810_v39 = vpop.f32.mrb[0].mxu1 }
0x11cd   : > { %v2812_v56 = vpop.f32.mrb[1].mxu1  ;;  %v4903_v31 = vadd.f32 %v2810_v39, %v6186_v25 }
0x11ce   : > { %v6820_v50 = vadd.f32 %v2812_v56, %v6167_v5  ;;  %v2814_v62 = vpop.f32.mrb[2].mxu1 }
0x11cf   : > { %v2816_v1 = vpop.f32.mrb[3].mxu1  ;;  %v4596_v63 = vmul.f32 -1.442695, %v4903_v31  ;;  %v4905_v46 = vadd.f32 %v2814_v62, %v6186_v25 }
0x11d0   : > { %5502 = vtanh.f32 %v6820_v50  ;;  %v6824_v36 = vadd.f32 %v2816_v1, %v6167_v5 }
0x11d1   : > { %v4598_v60 = vmul.f32 -1.442695, %v4905_v46 }
0x11d2   : > { %5504 = vtanh.f32 %v6824_v36 }
0x11d3   : > { %5506 = vpow2.f32 %v4596_v63 }
0x11d4   : > { %5508 = vpow2.f32 %v4598_v60 }
0x11da   : > { %v5503_v8 = vpop.eup %5502 }
0x11db   : > { %2901 = vrot.lane.b32.xlu0 %v5503_v8, %s5724_s23 }
0x11dc   : > { %v5505_v35 = vpop.eup %5504 }
0x11dd   : > { %2903 = vrot.lane.b32.xlu1 %v5505_v35, %s5724_s23  ;;  %v5507_v29 = vpop.eup %5506 }
0x11de   : > { %v2861_v27 = vadd.f32 1.0, %v5507_v29  ;;  %v5509_v5 = vpop.eup %5508 }
0x11df   : > { %v2863_v43 = vadd.f32 1.0, %v5509_v5 }
0x11e0   : > { %5510 = vrcp.f32 %v2861_v27 }
0x11e1   : > { %5512 = vrcp.f32 %v2863_v43 }
0x11ea   : > { %v5511_v19 = vpop.eup %5510 }
0x11eb   : > { %v5513_v18 = vpop.eup %5512 }
0x11ec   : > { %v2898_v29 = vmul.f32 %v5513_v18, %v6784_v57 }
0x124d   : > { %v2902_v15 = vpop.permute.xlu0 %2901 }
0x124e   : > { %v2907_v42 = vmul.f32 %v5511_v19, %v2902_v15 }
0x124f   : > { %v2904_v33 = vpop.permute.xlu1 %2903 }
0x1250   : > { %2911 = vrot.lane.b32.xlu0 %v2907_v42, %s5724_s23  ;;  %v2755_v34 = vpop.f32.mrb[28].mxu0  ;;  %v2908_v53 = vmul.f32 %v5513_v18, %v2904_v33  ;;  %v5118_v18 = vld [vmem:[#allocation4] sm:$0xff]   ;;  %v5119_v33 = vld [vmem:[#allocation4 + $0x8] sm:$0xff]  }
0x1251   : > { %v2757_v61 = vpop.f32.mrb[29].mxu0  ;;  %v4899_v56 = vadd.f32 %v2755_v34, %v6197_v58  ;;  %4727 = vmatprep.subr.bf16.mxu0 %v5118_v18 }
0x1252   : > { %v6833_v25 = vadd.f32 %v2757_v61, %v6172_v17  ;;  %v2759_v30 = vpop.f32.mrb[30].mxu0  ;;  %2913 = vrot.lane.b32.xlu1 %v2908_v53, %s5724_s23  ;;  %4728 = vmatpush3.bf16.msra.mxu0 %v5118_v18  ;;  %v5121_v53 = vld [vmem:[#allocation4 + $0x18] sm:$0xff]  }
0x1253   : > { %v2761_v28 = vpop.f32.mrb[31].mxu0  ;;  %v4592_v62 = vmul.f32 -1.442695, %v4899_v56  ;;  %v4901_v1 = vadd.f32 %v2759_v30, %v6197_v58  ;;  %4729 = vmatprep.subr.bf16.mxu0 %v5119_v33  ;;  %v5120_v30 = vld [vmem:[#allocation4 + $0x10] sm:$0xff]  }
0x1254   : > { %5514 = vtanh.f32 %v6833_v25  ;;  %v6838_v2 = vadd.f32 %v2761_v28, %v6172_v17  ;;  %v2897_v17 = vmul.f32 %v5511_v19, %v6780_v0  ;;  %v5122_v28 = vld [vmem:[#allocation4 + $0x20] sm:$0xff]  }
0x1255   : > { %v4594_v8 = vmul.f32 -1.442695, %v4901_v1 }
0x1256   : > { %5516 = vtanh.f32 %v6838_v2  ;;  %4730 = vmatpush3.bf16.msra.mxu0 %v5119_v33 }
0x1257   : > { %5518 = vpow2.f32 %v4592_v62  ;;  %4731 = vmatprep.subr.bf16.mxu0 %v5120_v30 }
0x1258   : > { %5520 = vpow2.f32 %v4594_v8 }
0x125a   : > { %4732 = vmatpush3.bf16.msra.mxu0 %v5120_v30 }
0x125b   : > { %4733 = vmatprep.subr.bf16.mxu0 %v5121_v53 }
0x125e   : > { %v5515_v59 = vpop.eup %5514  ;;  %4734 = vmatpush3.bf16.msra.mxu0 %v5121_v53 }
0x125f   : > { %2879 = vrot.lane.b32.xlu0 %v5515_v59, %s5724_s23  ;;  %4735 = vmatprep.subr.bf16.mxu0 %v5122_v28  ;;  %v5124_v59 = vld [vmem:[#allocation4 + $0x30] sm:$0xff]  }
0x1260   : > { %v5517_v39 = vpop.eup %5516 }
0x1261   : > { %2881 = vrot.lane.b32.xlu1 %v5517_v39, %s5724_s23  ;;  %v5519_v35 = vpop.eup %5518  ;;  %v4599_v39 = vmul.f32 -1.442695, %v6824_v36 }
0x1262   : > { %v2835_v63 = vadd.f32 1.0, %v5519_v35  ;;  %v5521_v60 = vpop.eup %5520  ;;  %4736 = vmatpush3.bf16.msra.mxu0 %v5122_v28  ;;  %v5125_v35 = vld [vmem:[#allocation4 + $0x38] sm:$0xff]  }
0x1263   : > { %v2837_v5 = vadd.f32 1.0, %v5521_v60 }
0x12c2   : > { %v2912_v31 = vpop.permute.xlu0 %2911 }
0x12c3   : > { %v2917_v46 = vadd.f32 %v2912_v31, %v2897_v17 }
0x12c4   : > { %v2914_v27 = vpop.permute.xlu1 %2913 }
0x12c5   : > { %5522 = vtanh.f32 %v2917_v46  ;;  %v2918_v43 = vadd.f32 %v2914_v27, %v2898_v29 }
0x12c6   : > { %5524 = vrcp.f32 %v2835_v63 }
0x12c7   : > { %5526 = vtanh.f32 %v2918_v43 }
0x12c8   : > { %5528 = vrcp.f32 %v2837_v5 }
0x12cf   : > { %v5523_v58 = vpop.eup %5522 }
0x12d0   : > { %2935 = vrot.lane.b32.xlu0 %v5523_v58, %s5724_s23  ;;  %v5525_v15 = vpop.eup %5524 }
0x12d1   : > { %v2880_v42 = vpop.permute.xlu0 %2879  ;;  %v5527_v0 = vpop.eup %5526  ;;  %v2875_v36 = vmul.f32 %v5525_v15, %v6794_v22 }
0x12d2   : > { %v2885_v34 = vmul.f32 %v5525_v15, %v2880_v42  ;;  %2937 = vrot.lane.b32.xlu1 %v5527_v0, %s5724_s23  ;;  %v5529_v19 = vpop.eup %5528 }
0x12d3   : > { %v2882_v61 = vpop.permute.xlu1 %2881  ;;  %v2876_v43 = vmul.f32 %v5529_v19, %v6804_v9 }
0x12d4   : > { %2889 = vrot.lane.b32.xlu0 %v2885_v34, %s5724_s23  ;;  %v2886_v57 = vmul.f32 %v5529_v19, %v2882_v61 }
0x12d6   : > { %2891 = vrot.lane.b32.xlu1 %v2886_v57, %s5724_s23 }
0x12d8   : > { %2955 = vrot.lane.b32.xlu0 %v6796_v3, %s5724_s23  ;;  %v5123_v3 = vld [vmem:[#allocation4 + $0x28] sm:$0xff]  }
0x12d9   : > { %4737 = vmatprep.subr.bf16.mxu0 %v5123_v3 }
0x12da   : > { %2957 = vrot.lane.b32.xlu1 %v6798_v24, %s5724_s23  ;;  %4738 = vmatpush3.bf16.msra.mxu0 %v5123_v3  ;;  %v4597_v24 = vmul.f32 -1.442695, %v6820_v50 }
0x12db   : > { %4739 = vmatprep.subr.bf16.mxu0 %v5124_v59 }
0x12dc   : > { %5530 = vpow2.f32 %v4597_v24 }
0x12dd   : > { %5532 = vpow2.f32 %v4599_v39 }
0x12de   : > { %4740 = vmatpush3.bf16.msra.mxu0 %v5124_v59 }
0x12df   : > { %4741 = vmatprep.subr.bf16.mxu0 %v5125_v35 }
0x12e2   : > { %4742 = vmatpush3.bf16.msra.mxu0 %v5125_v35 }
0x12e6   : > { %v5531_v56 = vpop.eup %5530 }
0x12e7   : > { %v2862_v62 = vadd.f32 1.0, %v5531_v56  ;;  %v5533_v1 = vpop.eup %5532 }
0x12e8   : > { %v2864_v8 = vadd.f32 1.0, %v5533_v1 }
0x12e9   : > { %5534 = vrcp.f32 %v2862_v62 }
0x12ea   : > { %5536 = vrcp.f32 %v2864_v8 }
0x12f3   : > { %v5535_v17 = vpop.eup %5534 }
0x12f4   : > { %v5537_v46 = vpop.eup %5536 }
0x1342   : > { %v2936_v31 = vpop.permute.xlu0 %2935 }
0x1343   : > { %v2941_v63 = vmul.f32 %v5535_v17, %v2936_v31 }
0x1344   : > { %v2938_v50 = vpop.permute.xlu1 %2937 }
0x1345   : > { %2945 = vrot.lane.b32.xlu0 %v2941_v63, %s5724_s23  ;;  %v2942_v29 = vmul.f32 %v5537_v46, %v2938_v50 }
0x1346   : > { %v2890_v60 = vpop.permute.xlu0 %2889 }
0x1347   : > { %v2895_v27 = vadd.f32 %v2890_v60, %v2875_v36  ;;  %2947 = vrot.lane.b32.xlu1 %v2942_v29, %s5724_s23 }
0x1348   : > { %v2892_v5 = vpop.permute.xlu1 %2891 }
0x1349   : > { %2965 = vrot.lane.b32.xlu0 %v6714_v6, %s5724_s23  ;;  %5538 = vtanh.f32 %v2895_v27  ;;  %v2896_v58 = vadd.f32 %v2892_v5, %v2876_v43  ;;  %v5133_v43 = vld [vmem:[#allocation6 + $0x38] sm:$0xff]  }
0x134b   : > { %2967 = vrot.lane.b32.xlu1 %v6716_v52, %s5724_s23  ;;  %5540 = vtanh.f32 %v2896_v58  ;;  %v5127_v52 = vld [vmem:[#allocation6 + $0x8] sm:$0xff]   ;;  %v4600_v58 = vld [vmem:[%s7350_s6] ss:$0 sm:$0xff] }
0x134c   : > { %v2958_v9 = vpop.permute.xlu1 %2957 }
0x134d   : > { %2975 = vrot.lane.b32.xlu0 %v6630_v40, %s5724_s23  ;;  %v5126_v40 = vld [vmem:[#allocation6] sm:$0xff]  }
0x134e   : > { %4759 = vmatprep.subr.bf16.mxu1 %v5126_v40 }
0x134f   : > { %2977 = vrot.lane.b32.xlu1 %v6632_v51, %s5724_s23  ;;  %4760 = vmatpush3.bf16.msra.mxu1 %v5126_v40 }
0x1350   : > { %4761 = vmatprep.subr.bf16.mxu1 %v5127_v52 }
0x1351   : > { %2985 = vrot.lane.b32.xlu0 %v6546_v37, %s5724_s23  ;;  %v5131_v37 = vld [vmem:[#allocation6 + $0x28] sm:$0xff]  }
0x1353   : > { %2987 = vrot.lane.b32.xlu1 %v6548_v49, %s5724_s23  ;;  %v5539_v6 = vpop.eup %5538  ;;  %4762 = vmatpush3.bf16.msra.mxu1 %v5127_v52  ;;  %v2956_v49 = vpop.permute.xlu0 %2955 }
0x1355   : > { %2995 = vrot.lane.b32.xlu0 %v6382_v38, %s5724_s23  ;;  %v5541_v22 = vpop.eup %5540  ;;  %v5128_v38 = vld [vmem:[#allocation6 + $0x10] sm:$0xff]  }
0x1356   : > { %4763 = vmatprep.subr.bf16.mxu1 %v5128_v38 }
0x1357   : > { %2997 = vrot.lane.b32.xlu1 %v6384_v41, %s5724_s23  ;;  %v5129_v41 = vld [vmem:[#allocation6 + $0x18] sm:$0xff]   ;;  %4764 = vmatpush3.bf16.msra.mxu1 %v5128_v38 }
0x1358   : > { %4765 = vmatprep.subr.bf16.mxu1 %v5129_v41 }
0x1359   : > { %2923 = vrot.lane.b32.xlu0 %v5539_v6, %s5724_s23 }
0x135b   : > { %2925 = vrot.lane.b32.xlu1 %v5541_v22, %s5724_s23  ;;  %4766 = vmatpush3.bf16.msra.mxu1 %v5129_v41 }
0x135d   : > { %3005 = vrot.lane.b32.xlu0 %v6298_v14, %s5724_s23  ;;  %v5130_v14 = vld [vmem:[#allocation6 + $0x20] sm:$0xff]  }
0x135e   : > { %4767 = vmatprep.subr.bf16.mxu1 %v5130_v14 }
0x135f   : > { %3007 = vrot.lane.b32.xlu1 %v6300_v21, %s5724_s23  ;;  %4768 = vmatpush3.bf16.msra.mxu1 %v5130_v14  ;;  %v4595_v21 = vmul.f32 -1.442695, %v6838_v2 }
0x1360   : > { %4769 = vmatprep.subr.bf16.mxu1 %v5131_v37 }
0x1361   : > { %3015 = vrot.lane.b32.xlu0 %v6215_v54, %s5724_s23  ;;  %v4593_v54 = vmul.f32 -1.442695, %v6833_v25  ;;  %v6903_v25 = vsel %vm1064_vm2, %v6323_v26, %v2956_v49 }
0x1363   : > { %3017 = vrot.lane.b32.xlu1 %v6217_v13, %s5724_s23  ;;  %4770 = vmatpush3.bf16.msra.mxu1 %v5131_v37  ;;  %5542 = vpow2.f32 %v4593_v54  ;;  %v6891_v13 = vsel %vm1064_vm2, %v6325_v44, %v2958_v9 }
0x1364   : > { %5544 = vpow2.f32 %v4595_v21  ;;  %v3024_v44 = vpack.c.bf16 %v6891_v13, %v6903_v25 }
0x136d   : > { %v5543_v18 = vpop.eup %5542 }
0x136e   : > { %v5545_v30 = vpop.eup %5544  ;;  %v2836_v28 = vadd.f32 1.0, %v5543_v18 }
0x136f   : > { %v2838_v59 = vadd.f32 1.0, %v5545_v30 }
0x1370   : > { %5546 = vrcp.f32 %v2836_v28 }
0x1371   : > { %5548 = vrcp.f32 %v2838_v59 }
0x137a   : > { %v5547_v31 = vpop.eup %5546 }
0x137b   : > { %v5549_v46 = vpop.eup %5548 }
0x13b7   : > { %v2946_v51 = vpop.permute.xlu0 %2945 }
0x13b8   : > { %v6895_v34 = vsel %vm1064_vm2, %v6239_v10, %v2946_v51 }
0x13b9   : > { %v2948_v42 = vpop.permute.xlu1 %2947 }
0x13ba   : > { %v6899_v0 = vsel %vm1064_vm2, %v6241_v11, %v2948_v42 }
0x13bb   : > { %v2966_v15 = vpop.permute.xlu0 %2965  ;;  %v3023_v2 = vpack.c.bf16 %v6899_v0, %v6895_v34 }
0x13bc   : > { %v6911_v10 = vsel %vm1064_vm2, %v6447_v23, %v2966_v15 }
0x13bd   : > { %4743 = vmatprep.mubr.bf16.mxu0 %v3023_v2  ;;  %v2968_v61 = vpop.permute.xlu1 %2967 }
0x13be   : > { %v6915_v11 = vsel %vm1064_vm2, %v6449_v20, %v2968_v61  ;;  %4744 = vmatmul.mubr.bf16.vlgmr.msra.gmra.mrb[32].mxu0 %v3024_v44 }
0x13bf   : > { %v2976_v19 = vpop.permute.xlu0 %2975  ;;  %v3025_v26 = vpack.c.bf16 %v6915_v11, %v6911_v10 }
0x13c0   : > { %v6921_v53 = vsel %vm1064_vm2, %v6571_v7, %v2976_v19 }
0x13c1   : > { %4747 = vmatprep.mubr.bf16.mxu0 %v3025_v26  ;;  %v2978_v33 = vpop.permute.xlu1 %2977 }
0x13c2   : > { %v6925_v23 = vsel %vm1064_vm2, %v6573_v32, %v2978_v33 }
0x13c3   : > { %v2986_v57 = vpop.permute.xlu0 %2985  ;;  %v3026_v20 = vpack.c.bf16 %v6925_v23, %v6921_v53 }
0x13c4   : > { %v6931_v39 = vsel %vm1064_vm2, %v6655_v12, %v2986_v57 }
0x13c5   : > { %v2988_v24 = vpop.permute.xlu1 %2987 }
0x13c6   : > { %v6935_v56 = vsel %vm1064_vm2, %v6657_v45, %v2988_v24  ;;  %4748 = vmatmul.mubr.bf16.gmra.mrb[36].mxu0 %v3026_v20 }
0x13c7   : > { %v2996_v3 = vpop.permute.xlu0 %2995  ;;  %v3027_v7 = vpack.c.bf16 %v6935_v56, %v6931_v39 }
0x13c8   : > { %v6941_v1 = vsel %vm1064_vm2, %v6738_v4, %v2996_v3 }
0x13c9   : > { %4751 = vmatprep.mubr.bf16.mxu0 %v3027_v7  ;;  %v2998_v62 = vpop.permute.xlu1 %2997 }
0x13ca   : > { %v6945_v12 = vsel %vm1064_vm2, %v6740_v47, %v2998_v62 }
0x13cb   : > { %v2924_v32 = vpop.permute.xlu0 %2923  ;;  %v3028_v45 = vpack.c.bf16 %v6945_v12, %v6941_v1 }
0x13cc   : > { %v2929_v60 = vmul.f32 %v5547_v31, %v2924_v32 }
0x13cd   : > { %v2926_v8 = vpop.permute.xlu1 %2925 }
0x13ce   : > { %4752 = vmatmul.mubr.bf16.gmra.mrb[40].mxu0 %v3028_v45  ;;  %v2930_v29 = vmul.f32 %v5549_v46, %v2926_v8 }
0x13cf   : > { %v3006_v35 = vpop.permute.xlu0 %3005 }
0x13d0   : > { %v6951_v63 = vsel %vm1064_vm2, %v6812_v48, %v3006_v35 }
0x13d1   : > { %v3008_v17 = vpop.permute.xlu1 %3007 }
0x13d2   : > { %v6955_v4 = vsel %vm1064_vm2, %v6814_v55, %v3008_v17  ;;  %v5132_v55 = vld [vmem:[#allocation6 + $0x30] sm:$0xff]  }
0x13d3   : > { %v3016_v50 = vpop.permute.xlu0 %3015  ;;  %v3029_v47 = vpack.c.bf16 %v6955_v4, %v6951_v63  ;;  %4771 = vmatprep.subr.bf16.mxu1 %v5132_v55 }
0x13d4   : > { %v6960_v27 = vsel %vm1064_vm2, %v2929_v60, %v3016_v50  ;;  %4772 = vmatpush3.bf16.msra.mxu1 %v5132_v55 }
0x13d5   : > { %4755 = vmatprep.mubr.bf16.mxu0 %v3029_v47  ;;  %v3018_v36 = vpop.permute.xlu1 %3017  ;;  %4773 = vmatprep.subr.bf16.mxu1 %v5133_v43 }
0x13d6   : > { %v6963_v5 = vsel %vm1064_vm2, %v2930_v29, %v3018_v36 }
0x13d7   : > { %v3030_v48 = vpack.c.bf16 %v6963_v5, %v6960_v27 }
0x13d8   : > { %4774 = vmatpush3.bf16.msra.mxu1 %v5133_v43 }
0x13d9   : > { %4756 = vmatmul.mubr.bf16.gmra.mrb[44].mxu0 %v3030_v48 }
0x1491   : > { %v4745_v6 = vpop.f32.mrb[32].mxu0 }
0x1492   : > { %v3145_v40 = vadd.f32 %v4745_v6, %v4600_v58  ;;  %v3136_v52 = vpop.f32.mrb[33].mxu0 }
0x1493   : > { %v3137_v22 = vadd.f32 %v4600_v58, %v3136_v52  ;;  %v4746_v38 = vpop.f32.mrb[34].mxu0 }
0x1494   : > { %v3148_v41 = vadd.f32 %v4746_v38, %v4600_v58  ;;  %v3139_v14 = vpop.f32.mrb[35].mxu0  ;;  %v3201_v49 = vmax.f32 %v3145_v40, 0.0 }
0x1495   : > { %v3140_v37 = vadd.f32 %v4600_v58, %v3139_v14  ;;  %v3199_v21 = vmax.f32 %v3137_v22, 0.0 }
0x1496   : > { %v3202_v54 = vmax.f32 %v3148_v41, 0.0 }
0x1497   : > { %v3200_v51 = vmax.f32 %v3140_v37, 0.0 }
0x1498   : > { %v3216_v9 = vpack.c.bf16 %v3202_v54, %v3201_v49 }
0x1499   : > { %v3215_v15 = vpack.c.bf16 %v3200_v51, %v3199_v21  ;;  %v4749_v42 = vpop.f32.mrb[36].mxu0  ;;  %v5725_v21 = vmov 1  }
0x149a   : > { %v3161_v2 = vadd.f32 %v4749_v42, %v4600_v58  ;;  %v3152_v44 = vpop.f32.mrb[37].mxu0  ;;  %5063 = vset.pattern.permute.xlu1 %v5725_v21  ;;  %5062 = vset.pattern.permute.xlu0 %v5725_v21 }
0x149b   : > { %v3153_v19 = vadd.f32 %v4600_v58, %v3152_v44  ;;  %v4750_v61 = vpop.f32.mrb[38].mxu0  ;;  %4775 = vmatprep.mubr.bf16.mxu1 %v3215_v15 }
0x149c   : > { %v3164_v26 = vadd.f32 %v4750_v61, %v4600_v58  ;;  %v3155_v57 = vpop.f32.mrb[39].mxu0  ;;  %4776 = vmatmul.mubr.bf16.vlgmr.msra.gmra.mrb[32].mxu1 %v3216_v9  ;;  %v3205_v33 = vmax.f32 %v3161_v2, 0.0 }
0x149d   : > { %v3156_v18 = vadd.f32 %v4600_v58, %v3155_v57  ;;  %v3203_v20 = vmax.f32 %v3153_v19, 0.0 }
0x149e   : > { %v3206_v30 = vmax.f32 %v3164_v26, 0.0 }
0x149f   : > { %v3204_v28 = vmax.f32 %v3156_v18, 0.0 }
0x14a0   : > { %v3218_v3 = vpack.c.bf16 %v3206_v30, %v3205_v33 }
0x14a1   : > { %v3217_v59 = vpack.c.bf16 %v3204_v28, %v3203_v20  ;;  %v4753_v24 = vpop.f32.mrb[40].mxu0 }
0x14a2   : > { %v3177_v7 = vadd.f32 %v4753_v24, %v4600_v58  ;;  %v3168_v32 = vpop.f32.mrb[41].mxu0 }
0x14a3   : > { %v3169_v62 = vadd.f32 %v4600_v58, %v3168_v32  ;;  %v4754_v45 = vpop.f32.mrb[42].mxu0  ;;  %4779 = vmatprep.mubr.bf16.mxu1 %v3217_v59 }
0x14a4   : > { %v3180_v8 = vadd.f32 %v4754_v45, %v4600_v58  ;;  %v3171_v35 = vpop.f32.mrb[43].mxu0  ;;  %4780 = vmatmul.mubr.bf16.gmra.mrb[36].mxu1 %v3218_v3  ;;  %v3209_v31 = vmax.f32 %v3177_v7, 0.0 }
0x14a5   : > { %v3172_v17 = vadd.f32 %v4600_v58, %v3171_v35  ;;  %v3207_v50 = vmax.f32 %v3169_v62, 0.0 }
0x14a6   : > { %v3210_v46 = vmax.f32 %v3180_v8, 0.0 }
0x14a7   : > { %v3208_v47 = vmax.f32 %v3172_v17, 0.0 }
0x14a8   : > { %v3220_v60 = vpack.c.bf16 %v3210_v46, %v3209_v31 }
0x14a9   : > { %v3219_v29 = vpack.c.bf16 %v3208_v47, %v3207_v50 }
0x14ab   : > { %4783 = vmatprep.mubr.bf16.mxu1 %v3219_v29 }
0x14ac   : > { %v4757_v36 = vpop.f32.mrb[44].mxu0  ;;  %4784 = vmatmul.mubr.bf16.gmra.mrb[40].mxu1 %v3220_v60 }
0x14ad   : > { %v3193_v48 = vadd.f32 %v4757_v36, %v4600_v58  ;;  %v3184_v55 = vpop.f32.mrb[45].mxu0 }
0x14ae   : > { %v3185_v43 = vadd.f32 %v4600_v58, %v3184_v55  ;;  %v4758_v6 = vpop.f32.mrb[46].mxu0 }
0x14af   : > { %v3196_v40 = vadd.f32 %v4758_v6, %v4600_v58  ;;  %v3187_v52 = vpop.f32.mrb[47].mxu0  ;;  %v3213_v38 = vmax.f32 %v3193_v48, 0.0 }
0x14b0   : > { %v3188_v22 = vadd.f32 %v4600_v58, %v3187_v52  ;;  %v3211_v14 = vmax.f32 %v3185_v43, 0.0  ;;  %v4609_v58 = vld [vmem:[%s7385_s29] ss:$0 sm:$0xff] }
0x14b1   : > { %v3214_v41 = vmax.f32 %v3196_v40, 0.0 }
0x14b2   : > { %v3212_v37 = vmax.f32 %v3188_v22, 0.0 }
0x14b3   : > { %v3222_v49 = vpack.c.bf16 %v3214_v41, %v3213_v38 }
0x14b4   : > { %v3221_v54 = vpack.c.bf16 %v3212_v37, %v3211_v14 }
0x14b6   : > { %4787 = vmatprep.mubr.bf16.mxu1 %v3221_v54 }
0x14b7   : > { %4788 = vmatmul.mubr.bf16.gmra.mrb[44].mxu1 %v3222_v49 }
0x156f   : > { %v4777_v51 = vpop.f32.mrb[32].mxu1 }
0x1570   : > { %v3328_v9 = vpop.f32.mrb[33].mxu1  ;;  %v3337_v44 = vadd.f32 %v4777_v51, %v4609_v58 }
0x1571   : > { %v4778_v15 = vpop.f32.mrb[34].mxu1  ;;  %v3329_v26 = vadd.f32 %v4609_v58, %v3328_v9 }
0x1572   : > { %v3331_v42 = vpop.f32.mrb[35].mxu1  ;;  %v3340_v33 = vadd.f32 %v4778_v15, %v4609_v58 }
0x1573   : > { %v3332_v3 = vadd.f32 %v4609_v58, %v3331_v42 }
0x1577   : > { %v4781_v2 = vpop.f32.mrb[36].mxu1 }
0x1578   : > { %v3353_v19 = vadd.f32 %v4781_v2, %v4609_v58  ;;  %v3344_v61 = vpop.f32.mrb[37].mxu1 }
0x1579   : > { %v3345_v57 = vadd.f32 %v4609_v58, %v3344_v61  ;;  %v4782_v18 = vpop.f32.mrb[38].mxu1 }
0x157a   : > { %v3392_v30 = vmax.f32 %v3337_v44, %v3353_v19  ;;  %v6975_v20 = vadd.f32 %v4782_v18, %v4609_v58  ;;  %v3347_v28 = vpop.f32.mrb[39].mxu1 }
0x157b   : > { %v3391_v59 = vmax.f32 %v3329_v26, %v3345_v57  ;;  %v3348_v24 = vadd.f32 %v4609_v58, %v3347_v28 }
0x157c   : > { %v3399_v7 = vmax.f32 %v3340_v33, %v6975_v20 }
0x157d   : > { %v3398_v32 = vmax.f32 %v3332_v3, %v3348_v24 }
0x157f   : > { %v4785_v62 = vpop.f32.mrb[40].mxu1 }
0x1580   : > { %v3369_v45 = vadd.f32 %v4785_v62, %v4609_v58  ;;  %v3360_v8 = vpop.f32.mrb[41].mxu1 }
0x1581   : > { %v3361_v35 = vadd.f32 %v4609_v58, %v3360_v8  ;;  %v4786_v17 = vpop.f32.mrb[42].mxu1 }
0x1582   : > { %v3394_v31 = vmax.f32 %v3392_v30, %v3369_v45  ;;  %v6978_v46 = vadd.f32 %v4786_v17, %v4609_v58  ;;  %v3363_v50 = vpop.f32.mrb[43].mxu1 }
0x1583   : > { %v3393_v47 = vmax.f32 %v3391_v59, %v3361_v35  ;;  %v3364_v60 = vadd.f32 %v4609_v58, %v3363_v50 }
0x1584   : > { %v3401_v29 = vmax.f32 %v3399_v7, %v6978_v46 }
0x1585   : > { %v3400_v36 = vmax.f32 %v3398_v32, %v3364_v60 }
0x158a   : > { %v4789_v48 = vpop.f32.mrb[44].mxu1 }
0x158b   : > { %v3385_v55 = vadd.f32 %v4789_v48, %v4609_v58  ;;  %v3376_v43 = vpop.f32.mrb[45].mxu1 }
0x158c   : > { %v3377_v6 = vadd.f32 %v4609_v58, %v3376_v43  ;;  %v4790_v40 = vpop.f32.mrb[46].mxu1 }
0x158d   : > { %v3396_v52 = vmax.f32 %v3394_v31, %v3385_v55  ;;  %v3388_v22 = vadd.f32 %v4790_v40, %v4609_v58  ;;  %v3379_v38 = vpop.f32.mrb[47].mxu1 }
0x158e   : > { %v3395_v41 = vmax.f32 %v3393_v47, %v3377_v6  ;;  %v3380_v14 = vadd.f32 %v4609_v58, %v3379_v38 }
0x158f   : > { %v3403_v37 = vmax.f32 %v3401_v29, %v3388_v22 }
0x1590   : > { %v3397_v49 = vmax.f32 %v3395_v41, %v3396_v52  ;;  %v3402_v54 = vmax.f32 %v3400_v36, %v3380_v14 }
0x1592   : > { %v3405_v51 = vsub.f32 %v3329_v26, %v3397_v49  ;;  %v3407_v9 = vsub.f32 %v3337_v44, %v3397_v49  ;;  %v3409_v15 = vsub.f32 %v3345_v57, %v3397_v49  ;;  %v3411_v42 = vsub.f32 %v3353_v19, %v3397_v49 }
0x1593   : > { %v3413_v2 = vsub.f32 %v3361_v35, %v3397_v49  ;;  %v3415_v61 = vsub.f32 %v3369_v45, %v3397_v49  ;;  %v3417_v18 = vsub.f32 %v3377_v6, %v3397_v49  ;;  %v3419_v30 = vsub.f32 %v3385_v55, %v3397_v49 }
0x1594   : > { %v3421_v28 = vmul.f32 1.442695, %v3405_v51  ;;  %v3425_v59 = vmul.f32 1.442695, %v3407_v9  ;;  %v3404_v7 = vmax.f32 %v3402_v54, %v3403_v37  ;;  %v3429_v32 = vmul.f32 1.442695, %v3409_v15 }
0x1595   : > { %v3433_v62 = vmul.f32 1.442695, %v3411_v42  ;;  %v3437_v26 = vmul.f32 1.442695, %v3413_v2  ;;  %v3441_v45 = vmul.f32 1.442695, %v3415_v61 }
0x1596   : > { %5550 = vpow2.f32 %v3421_v28  ;;  %v3406_v8 = vsub.f32 %v3332_v3, %v3404_v7  ;;  %v3408_v58 = vsub.f32 %v3340_v33, %v3404_v7  ;;  %v3410_v17 = vsub.f32 %v3348_v24, %v3404_v7 }
0x1597   : > { %5552 = vpow2.f32 %v3425_v59  ;;  %v3412_v31 = vsub.f32 %v6975_v20, %v3404_v7  ;;  %v3414_v44 = vsub.f32 %v3364_v60, %v3404_v7  ;;  %v3416_v19 = vsub.f32 %v6978_v46, %v3404_v7 }
0x1598   : > { %v3418_v57 = vsub.f32 %v3380_v14, %v3404_v7  ;;  %5554 = vpow2.f32 %v3429_v32  ;;  %v3420_v35 = vsub.f32 %v3388_v22, %v3404_v7  ;;  %v3423_v50 = vmul.f32 1.442695, %v3406_v8 }
0x1599   : > { %5556 = vpow2.f32 %v3433_v62  ;;  %v3427_v47 = vmul.f32 1.442695, %v3408_v58  ;;  %v3445_v29 = vmul.f32 1.442695, %v3417_v18  ;;  %v3431_v3 = vmul.f32 1.442695, %v3410_v17 }
0x159a   : > { %5558 = vpow2.f32 %v3437_v26  ;;  %v3449_v36 = vmul.f32 1.442695, %v3419_v30  ;;  %v3435_v33 = vmul.f32 1.442695, %v3412_v31  ;;  %v3439_v46 = vmul.f32 1.442695, %v3414_v44 }
0x159b   : > { %5560 = vpow2.f32 %v3441_v45  ;;  %v3443_v55 = vmul.f32 1.442695, %v3416_v19  ;;  %v3447_v40 = vmul.f32 1.442695, %v3418_v57  ;;  %v3451_v41 = vmul.f32 1.442695, %v3420_v35 }
0x159c   : > { %5562 = vpow2.f32 %v3423_v50 }
0x159d   : > { %5564 = vpow2.f32 %v3427_v47 }
0x159e   : > { %5566 = vpow2.f32 %v3445_v29 }
0x159f   : > { %5568 = vpow2.f32 %v3431_v3 }
0x15a0   : > { %v5551_v20 = vpop.eup %5550  ;;  %5570 = vpow2.f32 %v3449_v36 }
0x15a1   : > { %v5553_v24 = vpop.eup %5552  ;;  %5572 = vpow2.f32 %v3435_v33 }
0x15a2   : > { %v3453_v60 = vadd.f32 %v5553_v24, %v5551_v20  ;;  %v5555_v48 = vpop.eup %5554  ;;  %5574 = vpow2.f32 %v3439_v46 }
0x15a3   : > { %v5557_v6 = vpop.eup %5556  ;;  %5576 = vpow2.f32 %v3443_v55 }
0x15a4   : > { %v3454_v43 = vadd.f32 %v5555_v48, %v3453_v60  ;;  %v5559_v52 = vpop.eup %5558  ;;  %5578 = vpow2.f32 %v3447_v40  ;;  %v5727_v40 = vmov 0.0  }
0x15a5   : > { %v5561_v38 = vpop.eup %5560  ;;  %5580 = vpow2.f32 %v3451_v41  ;;  %4791 = vmatprep.subr.bf16.mxu0 %v5727_v40  ;;  %4811 = vmatprep.subr.bf16.mxu1 %v5727_v40  ;;  %v5139_v41 = vld [vmem:[%s7386_s27 + $0x68] sm:$0xff]  }
0x15a6   : > { %v3455_v22 = vadd.f32 %v5557_v6, %v3454_v43  ;;  %v5563_v14 = vpop.eup %5562  ;;  %v5726_v43 = vmov 2   ;;  %4807 = vmatprep.mubr.msk.bf16.mxu0 %vm5728_vm3, %v5727_v40  ;;  %4827 = vmatprep.mubr.msk.bf16.mxu1 %vm5728_vm3, %v5727_v40 }
0x15a7   : > { %v5565_v49 = vpop.eup %5564 }
0x15a8   : > { %v3456_v37 = vadd.f32 %v5559_v52, %v3455_v22  ;;  %v5567_v54 = vpop.eup %5566  ;;  %v3460_v9 = vadd.f32 %v5565_v49, %v5563_v14  ;;  %v5136_v22 = vld [vmem:[%s7386_s27 + $0x50] sm:$0xff]  }
0x15a9   : > { %v5569_v15 = vpop.eup %5568 }
0x15aa   : > { %v3457_v51 = vadd.f32 %v5561_v38, %v3456_v37  ;;  %v5571_v42 = vpop.eup %5570  ;;  %v3461_v61 = vadd.f32 %v5569_v15, %v3460_v9  ;;  %v5140_v37 = vld [vmem:[%s7386_s27 + $0x70] sm:$0xff]   ;;  %v5146_v9 = vld [vmem:[%s7386_s27 + $0x18] sm:$0xff]  }
0x15ab   : > { %v5573_v18 = vpop.eup %5572 }
0x15ac   : > { %v3458_v2 = vadd.f32 %v5567_v54, %v3457_v51  ;;  %v3462_v28 = vadd.f32 %v5573_v18, %v3461_v61  ;;  %v5575_v59 = vpop.eup %5574  ;;  %v5142_v51 = vld [vmem:[%s7386_s27 + $0x78] sm:$0xff]  }
0x15ad   : > { %v5577_v32 = vpop.eup %5576  ;;  %v5154_v61 = vld [vmem:[%s7386_s27 + $0x38] sm:$0xff]  }
0x15ae   : > { %v3459_v30 = vadd.f32 %v5571_v42, %v3458_v2  ;;  %v3463_v7 = vadd.f32 %v5575_v59, %v3462_v28  ;;  %v5579_v8 = vpop.eup %5578  ;;  %v5152_v2 = vld [vmem:[%s7386_s27 + $0x30] sm:$0xff]  }
0x15af   : > { %v5581_v17 = vpop.eup %5580 }
0x15b0   : > { %5582 = vrcp.f32 %v3459_v30  ;;  %v3464_v62 = vadd.f32 %v5577_v32, %v3463_v7 }
0x15b2   : > { %v3465_v58 = vadd.f32 %v5579_v8, %v3464_v62 }
0x15b4   : > { %v3466_v31 = vadd.f32 %v5581_v17, %v3465_v58 }
0x15b6   : > { %5584 = vrcp.f32 %v3466_v31 }
0x15ba   : > { %v5583_v26 = vpop.eup %5582 }
0x15bb   : > { %v3471_v44 = vmul.f32 %v5583_v26, %v5553_v24  ;;  %v3468_v19 = vmul.f32 %v5583_v26, %v5551_v20  ;;  %v6983_v57 = vmul.f32 %v5583_v26, %v5555_v48  ;;  %v3475_v45 = vmul.f32 %v5583_v26, %v5557_v6  ;;  %v5134_v6 = vld [vmem:[%s7386_s27 + $0x40] sm:$0xff]  }
0x15bc   : > { %v6985_v35 = vmul.f32 %v5583_v26, %v5559_v52  ;;  %v6987_v50 = vmul.f32 %v5583_v26, %v5561_v38  ;;  %v6989_v47 = vmul.f32 %v5583_v26, %v5567_v54  ;;  %v6991_v29 = vmul.f32 %v5583_v26, %v5571_v42  ;;  %4792 = vmatpush3.bf16.msra.mxu0 %v5134_v6  ;;  %v5135_v52 = vld [vmem:[%s7386_s27 + $0x48] sm:$0xff]   ;;  %v5137_v38 = vld [vmem:[%s7386_s27 + $0x58] sm:$0xff]   ;;  %v5144_v54 = vld [vmem:[%s7386_s27 + $0x10] sm:$0xff]  }
0x15bd   : > { %3621 = vperm.xlu1 %5063, %v3471_v44   ;;  %3487 = vst [vmem:[%s6994_s14 + $0x10] sm:$0xff] %v3471_v44  ;;  %3613 = vperm.xlu0 %5062, %v3468_v19   ;;  %3485 = vst [vmem:[%s6994_s14] sm:$0xff] %v3468_v19  ;;  %v5150_v42 = vld [vmem:[%s7386_s27 + $0x28] sm:$0xff]  }
0x15be   : > { %3489 = vst [vmem:[%s6994_s14 + $0x20] sm:$0xff] %v6983_v57  ;;  %3491 = vst [vmem:[%s6994_s14 + $0x30] sm:$0xff] %v3475_v45  ;;  %4793 = vmatprep.subr.bf16.mxu0 %v5727_v40 }
0x15bf   : > { %3493 = vst [vmem:[%s6994_s14 + $0x40] sm:$0xff] %v6985_v35  ;;  %3495 = vst [vmem:[%s6994_s14 + $0x50] sm:$0xff] %v6987_v50 }
0x15c0   : > { %3497 = vst [vmem:[%s6994_s14 + $0x60] sm:$0xff] %v6989_v47  ;;  %3499 = vst [vmem:[%s6994_s14 + $0x70] sm:$0xff] %v6991_v29  ;;  %v5585_v3 = vpop.eup %5584  ;;  %4794 = vmatpush3.bf16.msra.mxu0 %v5135_v52 }
0x15c1   : > { %3629 = vperm.xlu1 %5063, %v6983_v57   ;;  %5065 = vset.pattern.permute.xlu0 %v5723_v16  ;;  %v7012_v36 = vmul.f32 %v5585_v3, %v5565_v49  ;;  %v7014_v33 = vmul.f32 %v5585_v3, %v5569_v15  ;;  %v7016_v20 = vmul.f32 %v5585_v3, %v5573_v18  ;;  %v5143_v49 = vld [vmem:[%s7386_s27 + $0x8] sm:$0xff]   ;;  %v5148_v15 = vld [vmem:[%s7386_s27 + $0x20] sm:$0xff]  }
0x15c2   : > { %3523 = vperm.xlu0 %5065, %v6983_v57   ;;  %v7018_v24 = vmul.f32 %v5585_v3, %v5575_v59  ;;  %v7020_v46 = vmul.f32 %v5585_v3, %v5577_v32  ;;  %v7022_v60 = vmul.f32 %v5585_v3, %v5579_v8  ;;  %v7024_v48 = vmul.f32 %v5585_v3, %v5581_v17 }
0x15c3   : > { %v7026_v55 = vmul.f32 %v5585_v3, %v5563_v14  ;;  %3488 = vst [vmem:[%s6994_s14 + $0x18] sm:$0xff] %v7012_v36  ;;  %3490 = vst [vmem:[%s6994_s14 + $0x28] sm:$0xff] %v7014_v33  ;;  %4795 = vmatprep.subr.bf16.mxu0 %v5727_v40  ;;  %v5141_v14 = vld [vmem:[%s7386_s27] sm:$0xff]  }
0x15c4   : > { %3492 = vst [vmem:[%s6994_s14 + $0x38] sm:$0xff] %v7016_v20  ;;  %3494 = vst [vmem:[%s6994_s14 + $0x48] sm:$0xff] %v7018_v24  ;;  %4796 = vmatpush3.bf16.msra.mxu0 %v5136_v22  ;;  %4812 = vmatpush3.bf16.msra.mxu1 %v5141_v14 }
0x15c5   : > { %3637 = vperm.xlu1 %5063, %v3475_v45   ;;  %3496 = vst [vmem:[%s6994_s14 + $0x58] sm:$0xff] %v7020_v46  ;;  %3498 = vst [vmem:[%s6994_s14 + $0x68] sm:$0xff] %v7022_v60  ;;  %4797 = vmatprep.subr.bf16.mxu0 %v5727_v40 }
0x15c6   : > { %5066 = vset.pattern.permute.xlu0 %v5726_v43  ;;  %3500 = vst [vmem:[%s6994_s14 + $0x78] sm:$0xff] %v7024_v48  ;;  %3486 = vst [vmem:[%s6994_s14 + $0x8] sm:$0xff] %v7026_v55  ;;  %4813 = vmatprep.subr.bf16.mxu1 %v5727_v40 }
0x15c7   : > { %3708 = vperm.xlu0 %5066, %v3468_v19  }
0x15c8   : > { %4798 = vmatpush3.bf16.msra.mxu0 %v5137_v38  ;;  %4814 = vmatpush3.bf16.msra.mxu1 %v5143_v49 }
0x15c9   : > { %3645 = vperm.xlu1 %5063, %v6985_v35   ;;  %4799 = vmatprep.subr.bf16.mxu0 %v5727_v40 }
0x15ca   : > { %4815 = vmatprep.subr.bf16.mxu1 %v5727_v40 }
0x15cb   : > { %5070 = vset.pattern.permute.xlu0 %v5723_v16 }
0x15cc   : > { %3543 = vperm.xlu0 %5070, %v6985_v35   ;;  %4816 = vmatpush3.bf16.msra.mxu1 %v5144_v54 }
0x15cd   : > { %3653 = vperm.xlu1 %5063, %v6987_v50   ;;  %4817 = vmatprep.subr.bf16.mxu1 %v5727_v40 }
0x15d0   : > { %5071 = vset.pattern.permute.xlu0 %v5726_v43  ;;  %4818 = vmatpush3.bf16.msra.mxu1 %v5146_v9 }
0x15d1   : > { %3661 = vperm.xlu1 %5063, %v6989_v47   ;;  %3732 = vperm.xlu0 %5071, %v3475_v45  }
0x15d2   : > { %4819 = vmatprep.subr.bf16.mxu1 %v5727_v40 }
0x15d4   : > { %4820 = vmatpush3.bf16.msra.mxu1 %v5148_v15 }
0x15d5   : > { %3669 = vperm.xlu1 %5063, %v6991_v29   ;;  %5074 = vset.pattern.permute.xlu0 %v5723_v16 }
0x15d6   : > { %3563 = vperm.xlu0 %5074, %v6989_v47   ;;  %4821 = vmatprep.subr.bf16.mxu1 %v5727_v40 }
0x15d8   : > { %4822 = vmatpush3.bf16.msra.mxu1 %v5150_v42 }
0x15d9   : > { %5064 = vset.pattern.permute.xlu1 %v5723_v16  ;;  %4823 = vmatprep.subr.bf16.mxu1 %v5727_v40 }
0x15da   : > { %3503 = vperm.xlu1 %5064, %v3468_v19   ;;  %5075 = vset.pattern.permute.xlu0 %v5726_v43 }
0x15db   : > { %3748 = vperm.xlu0 %5075, %v6987_v50  }
0x15dc   : > { %4824 = vmatpush3.bf16.msra.mxu1 %v5152_v2 }
0x15dd   : > { %4825 = vmatprep.subr.bf16.mxu1 %v5727_v40 }
0x15de   : > { %3513 = vperm.xlu1 %5064, %v3471_v44  }
0x15df   : > { %5079 = vset.pattern.permute.xlu0 %v5725_v21 }
0x15e0   : > { %3625 = vperm.xlu0 %5079, %v7012_v36   ;;  %4826 = vmatpush3.bf16.msra.mxu1 %v5154_v61 }
0x15e1   : > { %4851 = vmatprep.subr.bf16.mxu1 %v5727_v40 }
0x15e2   : > { %5067 = vset.pattern.permute.xlu1 %v5726_v43 }
0x15e3   : > { %3716 = vperm.xlu1 %5067, %v3471_v44  }
0x15e4   : > { %3633 = vperm.xlu0 %5079, %v7014_v33  }
0x15e7   : > { %5068 = vset.pattern.permute.xlu1 %v5723_v16 }
0x15e8   : > { %3533 = vperm.xlu1 %5068, %v3475_v45   ;;  %3641 = vperm.xlu0 %5079, %v7016_v20  }
0x15ec   : > { %5069 = vset.pattern.permute.xlu1 %v5726_v43  ;;  %3649 = vperm.xlu0 %5079, %v7018_v24  }
0x15ed   : > { %3724 = vperm.xlu1 %5069, %v6983_v57  }
0x15f0   : > { %3657 = vperm.xlu0 %5079, %v7020_v46  }
0x15f1   : > { %5072 = vset.pattern.permute.xlu1 %v5723_v16 }
0x15f2   : > { %3553 = vperm.xlu1 %5072, %v6987_v50  }
0x15f4   : > { %3665 = vperm.xlu0 %5079, %v7022_v60  }
0x15f6   : > { %5073 = vset.pattern.permute.xlu1 %v5726_v43 }
0x15f7   : > { %3740 = vperm.xlu1 %5073, %v6985_v35  }
0x15f8   : > { %3673 = vperm.xlu0 %5079, %v7024_v48  }
0x15fb   : > { %5076 = vset.pattern.permute.xlu1 %v5723_v16 }
0x15fc   : > { %3573 = vperm.xlu1 %5076, %v6991_v29   ;;  %5080 = vset.pattern.permute.xlu0 %v5723_v16 }
0x15fd   : > { %3508 = vperm.xlu0 %5080, %v7026_v55  }
0x1600   : > { %5077 = vset.pattern.permute.xlu1 %v5726_v43 }
0x1601   : > { %3756 = vperm.xlu1 %5077, %v6989_v47   ;;  %5083 = vset.pattern.permute.xlu0 %v5726_v43 }
0x1602   : > { %3720 = vperm.xlu0 %5083, %v7012_v36  }
0x1605   : > { %5078 = vset.pattern.permute.xlu1 %v5725_v21  ;;  %v5138_v21 = vld [vmem:[%s7386_s27 + $0x60] sm:$0xff]  }
0x1606   : > { %3617 = vperm.xlu1 %5078, %v7026_v55   ;;  %5084 = vset.pattern.permute.xlu0 %v5723_v16 }
0x1607   : > { %3538 = vperm.xlu0 %5084, %v7016_v20   ;;  %4800 = vmatpush3.bf16.msra.mxu0 %v5138_v21 }
0x1608   : > { %4801 = vmatprep.subr.bf16.mxu0 %v5727_v40 }
0x160a   : > { %5081 = vset.pattern.permute.xlu1 %v5723_v16 }
0x160b   : > { %3518 = vperm.xlu1 %5081, %v7012_v36   ;;  %3558 = vperm.xlu0 %5084, %v7020_v46  }
0x160c   : > { %4802 = vmatpush3.bf16.msra.mxu0 %v5139_v41 }
0x160d   : > { %4803 = vmatprep.subr.bf16.mxu0 %v5727_v40 }
0x160f   : > { %3528 = vperm.xlu1 %5081, %v7014_v33   ;;  %3578 = vperm.xlu0 %5084, %v7024_v48  }
0x1610   : > { %4804 = vmatpush3.bf16.msra.mxu0 %v5140_v37 }
0x1611   : > { %4805 = vmatprep.subr.bf16.mxu0 %v5727_v40 }
0x1613   : > { %5082 = vset.pattern.permute.xlu1 %v5726_v43  ;;  %5089 = vset.pattern.permute.xlu0 %v5726_v43 }
0x1614   : > { %3712 = vperm.xlu1 %5082, %v7026_v55   ;;  %3764 = vperm.xlu0 %5089, %v6991_v29  }
0x1615   : > { %4806 = vmatpush3.bf16.msra.mxu0 %v5142_v51 }
0x1616   : > { %4831 = vmatprep.subr.bf16.mxu0 %v5727_v40 }
0x1618   : > { %3728 = vperm.xlu1 %5082, %v7014_v33  }
0x161c   : > { %5085 = vset.pattern.permute.xlu1 %v5723_v16 }
0x161d   : > { %3548 = vperm.xlu1 %5085, %v7018_v24  }
0x1621   : > { %5086 = vset.pattern.permute.xlu1 %v5726_v43 }
0x1622   : > { %3736 = vperm.xlu1 %5086, %v7016_v20  }
0x1626   : > { %3744 = vperm.xlu1 %5086, %v7018_v24  }
0x162a   : > { %5087 = vset.pattern.permute.xlu1 %v5723_v16 }
0x162b   : > { %3568 = vperm.xlu1 %5087, %v7022_v60  }
0x162f   : > { %5088 = vset.pattern.permute.xlu1 %v5726_v43 }
0x1630   : > { %3752 = vperm.xlu1 %5088, %v7020_v46  }
0x1634   : > { %3760 = vperm.xlu1 %5088, %v7022_v60  }
0x1638   : > { %3768 = vperm.xlu1 %5088, %v7024_v48  }
0x163c   : > { %v3622_v16 = vpop.permute.xlu1 %3621  ;;  %v3614_v18 = vpop.permute.xlu0 %3613 }
0x163d   : > { %v3678_v21 = vmul.f32 %v3622_v16, %v6903_v25  ;;  %v3676_v41 = vmul.f32 %v3614_v18, %v6895_v34 }
0x163f   : > { %v3692_v9 = vadd.f32 %v3678_v21, %v3676_v41 }
0x1640   : > { %v3630_v30 = vpop.permute.xlu1 %3629 }
0x1641   : > { %v7176_v28 = vpop.permute.xlu0 %3523  ;;  %v3680_v37 = vmul.f32 %v3630_v30, %v6911_v10 }
0x1643   : > { %v3693_v61 = vadd.f32 %v3692_v9, %v3680_v37 }
0x1644   : > { %v3638_v59 = vpop.permute.xlu1 %3637 }
0x1645   : > { %v3682_v15 = vmul.f32 %v3638_v59, %v6921_v53 }
0x1646   : > { %v3709_v32 = vpop.permute.xlu0 %3708 }
0x1647   : > { %v3771_v35 = vmul.f32 %v3709_v32, %v6895_v34 }
0x1648   : > { %v3646_v7 = vpop.permute.xlu1 %3645 }
0x1649   : > { %v3684_v32 = vmul.f32 %v3646_v7, %v6931_v39 }
0x164b   : > { %v7178_v8 = vpop.permute.xlu0 %3543 }
0x164c   : > { %v3654_v62 = vpop.permute.xlu1 %3653 }
0x164d   : > { %v3686_v30 = vmul.f32 %v3654_v62, %v6941_v1 }
0x1650   : > { %v3662_v58 = vpop.permute.xlu1 %3661  ;;  %v3733_v31 = vpop.permute.xlu0 %3732 }
0x1651   : > { %v3777_v24 = vmul.f32 %v3733_v31, %v6921_v53  ;;  %v3688_v59 = vmul.f32 %v3662_v58, %v6951_v63  ;;  %v5145_v58 = vld [vmem:[%s7386_s27 + $0x80] sm:$0xff]  }
0x1654   : > { %v3670_v17 = vpop.permute.xlu1 %3669 }
0x1655   : > { %v7182_v44 = vpop.permute.xlu0 %3563  ;;  %v3690_v7 = vmul.f32 %v3670_v17, %v6960_v27 }
0x1659   : > { %v7180_v26 = vpop.permute.xlu1 %3503 }
0x165a   : > { %v7186_v57 = vpop.permute.xlu0 %3748 }
0x165d   : > { %v7184_v19 = vpop.permute.xlu1 %3513 }
0x165e   : > { %v3583_v17 = vmul.f32 %v7184_v19, %v6903_v25  ;;  %v5149_v19 = vld [vmem:[%s7386_s27 + $0x90] sm:$0xff]  }
0x165f   : > { %v3626_v3 = vpop.permute.xlu0 %3625 }
0x1660   : > { %v3679_v49 = vmul.f32 %v3626_v3, %v6891_v13 }
0x1662   : > { %v3717_v45 = vpop.permute.xlu1 %3716 }
0x1663   : > { %v3773_v50 = vmul.f32 %v3717_v45, %v6903_v25  ;;  %v3634_v20 = vpop.permute.xlu0 %3633  ;;  %v3694_v45 = vadd.f32 %v3693_v61, %v3682_v15  ;;  %v3581_v15 = vmul.f32 %v7180_v26, %v6895_v34 }
0x1664   : > { %v3681_v42 = vmul.f32 %v3634_v20, %v6915_v11 }
0x1665   : > { %v3787_v47 = vadd.f32 %v3773_v50, %v3771_v35  ;;  %v3695_v3 = vadd.f32 %v3694_v45, %v3684_v32  ;;  %v3597_v61 = vadd.f32 %v3583_v17, %v3581_v15 }
0x1667   : > { %v7190_v29 = vpop.permute.xlu1 %3533  ;;  %v3642_v55 = vpop.permute.xlu0 %3641 }
0x1668   : > { %v3683_v16 = vmul.f32 %v3642_v55, %v6925_v23  ;;  %v3587_v34 = vmul.f32 %v7190_v29, %v6921_v53  ;;  %v3589_v53 = vmul.f32 %v7178_v8, %v6931_v39  ;;  %v5155_v8 = vld [vmem:[%s7386_s27 + $0xa8] sm:$0xff]  }
0x166b   : > { %v3650_v6 = vpop.permute.xlu0 %3649 }
0x166c   : > { %v3725_v36 = vpop.permute.xlu1 %3724  ;;  %v3685_v35 = vmul.f32 %v3650_v6, %v6935_v56 }
0x166d   : > { %v3775_v33 = vmul.f32 %v3725_v36, %v6911_v10 }
0x166f   : > { %v3788_v46 = vadd.f32 %v3787_v47, %v3775_v33  ;;  %v3658_v22 = vpop.permute.xlu0 %3657 }
0x1670   : > { %v3687_v36 = vmul.f32 %v3658_v22, %v6945_v12 }
0x1671   : > { %v7194_v60 = vpop.permute.xlu1 %3553  ;;  %v7196_v48 = vadd.f32 %v3788_v46, %v3777_v24  ;;  %v3696_v24 = vadd.f32 %v3695_v3, %v3686_v30 }
0x1673   : > { %v3666_v54 = vpop.permute.xlu0 %3665  ;;  %v3697_v21 = vadd.f32 %v3696_v24, %v3688_v59 }
0x1674   : > { %v3689_v46 = vmul.f32 %v3666_v54, %v6955_v4  ;;  %v5147_v54 = vld [vmem:[%s7386_s27 + $0x88] sm:$0xff]  }
0x1675   : > { %v3698_v37 = vadd.f32 %v3697_v21, %v3690_v7  ;;  %v3593_v21 = vmul.f32 %v7182_v44, %v6951_v63 }
0x1676   : > { %v7198_v43 = vpop.permute.xlu1 %3740 }
0x1677   : > { %v3674_v50 = vpop.permute.xlu0 %3673  ;;  %v3779_v44 = vmul.f32 %v7198_v43, %v6931_v39 }
0x1678   : > { %v3691_v62 = vmul.f32 %v3674_v50, %v6963_v5 }
0x167b   : > { %v7200_v52 = vpop.permute.xlu1 %3573 }
0x167c   : > { %v3509_v41 = vpop.permute.xlu0 %3508 }
0x167d   : > { %v3582_v32 = vmul.f32 %v3509_v41, %v6899_v0 }
0x1680   : > { %v7202_v38 = vpop.permute.xlu1 %3756 }
0x1681   : > { %v3721_v9 = vpop.permute.xlu0 %3720 }
0x1685   : > { %v3618_v14 = vpop.permute.xlu1 %3617 }
0x1686   : > { %v3677_v51 = vmul.f32 %v3618_v14, %v6899_v0 }
0x1688   : > { %v3699_v2 = vadd.f32 %v3679_v49, %v3677_v51 }
0x168a   : > { %v3700_v18 = vadd.f32 %v3699_v2, %v3681_v42  ;;  %v3519_v31 = vpop.permute.xlu1 %3518 }
0x168b   : > { %v3584_v42 = vmul.f32 %v3519_v31, %v6891_v13 }
0x168c   : > { %v3701_v47 = vadd.f32 %v3700_v18, %v3683_v16  ;;  %v3539_v16 = vpop.permute.xlu0 %3538  ;;  %v3585_v18 = vmul.f32 %v7176_v28, %v6911_v10  ;;  %v3591_v28 = vmul.f32 %v7194_v60, %v6941_v1 }
0x168d   : > { %v3604_v26 = vadd.f32 %v3584_v42, %v3582_v32  ;;  %v5157_v42 = vld [vmem:[%s7386_s27 + $0xb8] sm:$0xff]   ;;  %v3781_v32 = vmul.f32 %v7186_v57, %v6941_v1 }
0x168e   : > { %v3702_v33 = vadd.f32 %v3701_v47, %v3685_v35  ;;  %v3529_v20 = vpop.permute.xlu1 %3528  ;;  %v3598_v31 = vadd.f32 %v3597_v61, %v3585_v18  ;;  %v5151_v35 = vld [vmem:[%s7386_s27 + $0x98] sm:$0xff]   ;;  %v3588_v47 = vmul.f32 %v3539_v16, %v6925_v23 }
0x168f   : > { %v3586_v25 = vmul.f32 %v3529_v20, %v6915_v11 }
0x1690   : > { %v3703_v55 = vadd.f32 %v3702_v33, %v3687_v36  ;;  %v3599_v50 = vadd.f32 %v3598_v31, %v3587_v34  ;;  %v3559_v10 = vpop.permute.xlu0 %3558  ;;  %v5153_v36 = vld [vmem:[%s7386_s27 + $0xa0] sm:$0xff]  }
0x1691   : > { %v3605_v45 = vadd.f32 %v3604_v26, %v3586_v25  ;;  %v3592_v7 = vmul.f32 %v3559_v10, %v6945_v12 }
0x1692   : > { %v3704_v6 = vadd.f32 %v3703_v55, %v3689_v46  ;;  %v3600_v33 = vadd.f32 %v3599_v50, %v3589_v53  ;;  %v5165_v50 = vld [vmem:[#allocation8 + $0x38] sm:$0xff]  }
0x1693   : > { %v3713_v14 = vpop.permute.xlu1 %3712  ;;  %v3606_v29 = vadd.f32 %v3605_v45, %v3588_v47 }
0x1694   : > { %v3705_v49 = vadd.f32 %v3704_v6, %v3691_v62  ;;  %v3601_v24 = vadd.f32 %v3600_v33, %v3591_v28  ;;  %v3579_v60 = vpop.permute.xlu0 %3578  ;;  %v3772_v46 = vmul.f32 %v3713_v14, %v6899_v0  ;;  %v3595_v62 = vmul.f32 %v7200_v52, %v6960_v27  ;;  %v5156_v14 = vld [vmem:[%s7386_s27 + $0xb0] sm:$0xff]  }
0x1696   : > { %v3706_v22 = vpack.c.bf16 %v3705_v49, %v3698_v37  ;;  %v3774_v37 = vmul.f32 %v3721_v9, %v6891_v13 }
0x1697   : > { %v3729_v51 = vpop.permute.xlu1 %3728 }
0x1698   : > { %4808 = vmatmul.mubr.bf16.vlgmr.msra.gmra.mrb[48].mxu0 %v3706_v22  ;;  %v3776_v49 = vmul.f32 %v3729_v51, %v6915_v11  ;;  %v3596_v22 = vmul.f32 %v3579_v60, %v6963_v5  ;;  %v3794_v52 = vadd.f32 %v3774_v37, %v3772_v46  ;;  %v4642_v60 = vld [vmem:[%s7387_s21] ss:$0 sm:$0xff] }
0x1699   : > { %4832 = vmatpush3.bf16.msra.mxu0 %v5145_v58  ;;  %4847 = vmatprep.mubr.msk.bf16.mxu0 %vm5728_vm3, %v5727_v40  ;;  %v3602_v58 = vadd.f32 %v3601_v24, %v3593_v21 }
0x169a   : > { %4833 = vmatprep.subr.bf16.mxu0 %v5727_v40  ;;  %v3795_v51 = vadd.f32 %v3794_v52, %v3776_v49  ;;  %v4321_v52 = vld [vmem:[%s6994_s14 + $0x8] sm:$0xff] (%p7391_p7) }
0x169b   : > { %v3603_v13 = vadd.f32 %v3602_v58, %v3595_v62  ;;  %4322 = vst [vmem:[%s4261_s26 + $0x8] sm:$0xff] (%p7391_p7), %v4321_v52 }
0x169c   : > { %v3549_v2 = vpop.permute.xlu1 %3548 }
0x169d   : > { %4834 = vmatpush3.bf16.msra.mxu0 %v5147_v54  ;;  %v3590_v3 = vmul.f32 %v3549_v2, %v6935_v56  ;;  %v3790_v2 = vadd.f32 %v7196_v48, %v3779_v44  ;;  %v4319_v44 = vld [vmem:[%s6994_s14] sm:$0xff] (%p7391_p7) }
0x169e   : > { %4835 = vmatprep.subr.bf16.mxu0 %v5727_v40  ;;  %4320 = vst [vmem:[%s4261_s26] sm:$0xff] (%p7391_p7), %v4319_v44 }
0x169f   : > { %v3607_v20 = vadd.f32 %v3606_v29, %v3590_v3  ;;  %v3791_v48 = vadd.f32 %v3790_v2, %v3781_v32  ;;  %v4339_v2 = vld [vmem:[%s6994_s14 + $0x50] sm:$0xff] (%p7391_p7)  ;;  %v4349_v32 = vld [vmem:[%s6994_s14 + $0x78] sm:$0xff] (%p7391_p7) }
0x16a0   : > { %4340 = vst [vmem:[%s4261_s26 + $0xa0] sm:$0xff] (%p7391_p7), %v4339_v2  ;;  %4350 = vst [vmem:[%s4261_s26 + $0xe8] sm:$0xff] (%p7391_p7), %v4349_v32 }
0x16a1   : > { %v3737_v30 = vpop.permute.xlu1 %3736  ;;  %4836 = vmatpush3.bf16.msra.mxu0 %v5149_v19  ;;  %v3608_v6 = vadd.f32 %v3607_v20, %v3592_v7 }
0x16a2   : > { %4837 = vmatprep.subr.bf16.mxu0 %v5727_v40  ;;  %v3778_v17 = vmul.f32 %v3737_v30, %v6925_v23  ;;  %v3765_v23 = vpop.permute.xlu0 %3764  ;;  %v5162_v30 = vld [vmem:[#allocation8 + $0x20] sm:$0xff]  }
0x16a4   : > { %v3796_v39 = vadd.f32 %v3795_v51, %v3778_v17  ;;  %v4323_v17 = vld [vmem:[%s6994_s14 + $0x10] sm:$0xff] (%p7391_p7) }
0x16a5   : > { %v3745_v59 = vpop.permute.xlu1 %3744  ;;  %4838 = vmatpush3.bf16.msra.mxu0 %v5151_v35  ;;  %v5164_v35 = vld [vmem:[#allocation8 + $0x30] sm:$0xff]   ;;  %4324 = vst [vmem:[%s4261_s26 + $0x20] sm:$0xff] (%p7391_p7), %v4323_v17 }
0x16a6   : > { %4839 = vmatprep.subr.bf16.mxu0 %v5727_v40  ;;  %v3780_v54 = vmul.f32 %v3745_v59, %v6935_v56  ;;  %v3783_v56 = vmul.f32 %v7202_v38, %v6951_v63  ;;  %v5158_v63 = vld [vmem:[#allocation8] sm:$0xff]   ;;  %v5160_v38 = vld [vmem:[#allocation8 + $0x10] sm:$0xff]  }
0x16a7   : > { %v4331_v51 = vld [vmem:[%s6994_s14 + $0x30] sm:$0xff] (%p7391_p7) }
0x16a8   : > { %v3797_v25 = vadd.f32 %v3796_v39, %v3780_v54  ;;  %v3792_v34 = vadd.f32 %v3791_v48, %v3783_v56  ;;  %v4333_v54 = vld [vmem:[%s6994_s14 + $0x38] sm:$0xff] (%p7391_p7)  ;;  %4332 = vst [vmem:[%s4261_s26 + $0x60] sm:$0xff] (%p7391_p7), %v4331_v51 }
0x16a9   : > { %4840 = vmatpush3.bf16.msra.mxu0 %v5153_v36  ;;  %4334 = vst [vmem:[%s4261_s26 + $0x68] sm:$0xff] (%p7391_p7), %v4333_v54  ;;  %v4341_v39 = vld [vmem:[%s6994_s14 + $0x58] sm:$0xff] (%p7391_p7) }
0x16aa   : > { %v3569_v55 = vpop.permute.xlu1 %3568  ;;  %4841 = vmatprep.subr.bf16.mxu0 %v5727_v40  ;;  %4342 = vst [vmem:[%s4261_s26 + $0xa8] sm:$0xff] (%p7391_p7), %v4341_v39 }
0x16ab   : > { %v3594_v41 = vmul.f32 %v3569_v55, %v6955_v4 }
0x16ad   : > { %v3609_v0 = vadd.f32 %v3608_v6, %v3594_v41  ;;  %4842 = vmatpush3.bf16.msra.mxu0 %v5155_v8  ;;  %v4643_v6 = vld [vmem:[%s7388_s24] ss:$0 sm:$0xff] }
0x16ae   : > { %4843 = vmatprep.subr.bf16.mxu0 %v5727_v40 }
0x16af   : > { %v3610_v9 = vadd.f32 %v3609_v0, %v3596_v22  ;;  %v3753_v11 = vpop.permute.xlu1 %3752 }
0x16b0   : > { %v3782_v43 = vmul.f32 %v3753_v11, %v6945_v12  ;;  %v3785_v12 = vmul.f32 %v3765_v23, %v6960_v27  ;;  %v5161_v27 = vld [vmem:[#allocation8 + $0x18] sm:$0xff]   ;;  %v4329_v11 = vld [vmem:[%s6994_s14 + $0x28] sm:$0xff] (%p7391_p7) }
0x16b1   : > { %v3611_v15 = vpack.c.bf16 %v3610_v9, %v3603_v13  ;;  %4844 = vmatpush3.bf16.msra.mxu0 %v5156_v14  ;;  %v4325_v13 = vld [vmem:[%s6994_s14 + $0x18] sm:$0xff] (%p7391_p7)  ;;  %v4327_v9 = vld [vmem:[%s6994_s14 + $0x20] sm:$0xff] (%p7391_p7)  ;;  %4330 = vst [vmem:[%s4261_s26 + $0x48] sm:$0xff] (%p7391_p7), %v4329_v11  ;;  %v4345_v23 = vld [vmem:[%s6994_s14 + $0x68] sm:$0xff] (%p7391_p7) }
0x16b2   : > { %4845 = vmatprep.subr.bf16.mxu0 %v5727_v40  ;;  %v3798_v16 = vadd.f32 %v3797_v25, %v3782_v43  ;;  %v3793_v1 = vadd.f32 %v3792_v34, %v3785_v12  ;;  %4326 = vst [vmem:[%s4261_s26 + $0x28] sm:$0xff] (%p7391_p7), %v4325_v13  ;;  %4328 = vst [vmem:[%s4261_s26 + $0x40] sm:$0xff] (%p7391_p7), %v4327_v9  ;;  %v4343_v43 = vld [vmem:[%s6994_s14 + $0x60] sm:$0xff] (%p7391_p7) }
0x16b3   : > { %v3761_v61 = vpop.permute.xlu1 %3760  ;;  %4828 = vmatmul.mubr.bf16.vlgmr.msra.gmra.mrb[48].mxu1 %v3611_v15  ;;  %v4335_v15 = vld [vmem:[%s6994_s14 + $0x40] sm:$0xff] (%p7391_p7)  ;;  %4344 = vst [vmem:[%s4261_s26 + $0xc0] sm:$0xff] (%p7391_p7), %v4343_v43  ;;  %4346 = vst [vmem:[%s4261_s26 + $0xc8] sm:$0xff] (%p7391_p7), %v4345_v23 }
0x16b4   : > { %v3784_v19 = vmul.f32 %v3761_v61, %v6955_v4  ;;  %4867 = vmatprep.mubr.msk.bf16.mxu1 %vm5728_vm3, %v5727_v40  ;;  %4852 = vmatpush3.bf16.msra.mxu1 %v5158_v63  ;;  %v5159_v4 = vld [vmem:[#allocation8 + $0x8] sm:$0xff]   ;;  %4336 = vst [vmem:[%s4261_s26 + $0x80] sm:$0xff] (%p7391_p7), %v4335_v15  ;;  %v4347_v61 = vld [vmem:[%s6994_s14 + $0x70] sm:$0xff] (%p7391_p7) }
0x16b5   : > { %4846 = vmatpush3.bf16.msra.mxu0 %v5157_v42  ;;  %4853 = vmatprep.subr.bf16.mxu1 %v5727_v40  ;;  %v4337_v42 = vld [vmem:[%s6994_s14 + $0x48] sm:$0xff] (%p7391_p7)  ;;  %4348 = vst [vmem:[%s4261_s26 + $0xe0] sm:$0xff] (%p7391_p7), %v4347_v61 }
0x16b6   : > { %v3799_v26 = vadd.f32 %v3798_v16, %v3784_v19  ;;  %4338 = vst [vmem:[%s4261_s26 + $0x88] sm:$0xff] (%p7391_p7), %v4337_v42 }
0x16b7   : > { %v3769_v18 = vpop.permute.xlu1 %3768 }
0x16b8   : > { %v3786_v31 = vmul.f32 %v3769_v18, %v6963_v5  ;;  %4854 = vmatpush3.bf16.msra.mxu1 %v5159_v4  ;;  %v5163_v5 = vld [vmem:[#allocation8 + $0x28] sm:$0xff]  }
0x16b9   : > { %4855 = vmatprep.subr.bf16.mxu1 %v5727_v40 }
0x16ba   : > { %v3800_v57 = vadd.f32 %v3799_v26, %v3786_v31 }
0x16bc   : > { %v3801_v45 = vpack.c.bf16 %v3800_v57, %v3793_v1  ;;  %4856 = vmatpush3.bf16.msra.mxu1 %v5160_v38 }
0x16bd   : > { %4857 = vmatprep.subr.bf16.mxu1 %v5727_v40 }
0x16be   : > { %4848 = vmatmul.mubr.bf16.vlgmr.msra.gmra.mrb[52].mxu0 %v3801_v45 }
0x16c0   : > { %4858 = vmatpush3.bf16.msra.mxu1 %v5161_v27 }
0x16c1   : > { %4859 = vmatprep.subr.bf16.mxu1 %v5727_v40 }
0x16c4   : > { %4860 = vmatpush3.bf16.msra.mxu1 %v5162_v30 }
0x16c5   : > { %4861 = vmatprep.subr.bf16.mxu1 %v5727_v40 }
0x16c8   : > { %4862 = vmatpush3.bf16.msra.mxu1 %v5163_v5 }
0x16c9   : > { %4863 = vmatprep.subr.bf16.mxu1 %v5727_v40 }
0x16cc   : > { %4864 = vmatpush3.bf16.msra.mxu1 %v5164_v35 }
0x16cd   : > { %4865 = vmatprep.subr.bf16.mxu1 %v5727_v40 }
0x16d0   : > { %4866 = vmatpush3.bf16.msra.mxu1 %v5165_v50 }
0x176b   : > { %v3916_v47 = vpop.f32.mrb[48].mxu0 }
0x176c   : > { %v4809_v3 = vpop.f32.mrb[49].mxu0 }
0x176d   : > { %v3919_v10 = vpop.f32.mrb[50].mxu0 }
0x176e   : > { %v4810_v53 = vpop.f32.mrb[51].mxu0 }
0x1786   : > { %v4005_v28 = vpop.f32.mrb[48].mxu1 }
0x1787   : > { %v4006_v29 = vadd.f32 %v4005_v28, %v3916_v47  ;;  %v4829_v59 = vpop.f32.mrb[49].mxu1 }
0x1788   : > { %v4008_v36 = vpop.f32.mrb[50].mxu1 }
0x1789   : > { %v4009_v33 = vadd.f32 %v4008_v36, %v3919_v10  ;;  %v4830_v20 = vpop.f32.mrb[51].mxu1 }
0x1791   : > { %v4110_v24 = vpop.f32.mrb[52].mxu0 }
0x1792   : > { %v4117_v7 = vadd.f32 %v4110_v24, %v4006_v29  ;;  %v4849_v8 = vpop.f32.mrb[53].mxu0 }
0x1793   : > { %v4113_v40 = vpop.f32.mrb[54].mxu0 }
0x1794   : > { %v4118_v46 = vadd.f32 %v4113_v40, %v4009_v33  ;;  %v4850_v55 = vpop.f32.mrb[55].mxu0  ;;  %v4126_v21 = vadd.f32 %v4642_v60, %v4117_v7 }
0x1796   : > { %v4127_v62 = vadd.f32 %v4642_v60, %v4118_v46 }
0x1798   : > { %v4128_v41 = vpack.c.bf16 %v4127_v62, %v4126_v21 }
0x179a   : > { %4868 = vmatmul.mubr.bf16.vlgmr.msra.gmra.mrb[52].mxu1 %v4128_v41 }
0x186c   : > { %4258 = sbr.rel (!%p7391_p7) target bundleno = 6259 (0x1873), region = 130 }
0x186d   : > { %v4234_v37 = vpop.f32.mrb[52].mxu1 }
0x186e   : > { %v4235_v49 = vadd.f32 %v4643_v6, %v4234_v37  ;;  %v4869_v58 = vpop.f32.mrb[53].mxu1 }
0x186f   : > { %v4237_v22 = vpop.f32.mrb[54].mxu1 }
0x1870   : > { %4241 = vst [vmem:[%s614_s28] sm:$0xff] %v4235_v49  ;;  %v4238_v0 = vadd.f32 %v4643_v6, %v4237_v22  ;;  %v4870_v14 = vpop.f32.mrb[55].mxu1 }
0x1872   : > { %4242 = vst [vmem:[%s614_s28 + $0x8] sm:$0xff] %v4238_v0 }
0x1873 PF: > { %s7393_s15 = sld [smem:[#allocation12_spill]]  ;;  %s7394_s16 = sld [smem:[#allocation13_spill]] }
0x1874   : > { %s7395_s29 = smov %s5712_s30 }
0x1879   : > { %p24_p10 = scmp.ge.s32.totalorder %s7393_s15, 4   ;;  %s7396_s30 = smov %s7394_s16 }
0x187b   :  { %26 = sbr.rel (!%p24_p10) target bundleno = 10 (0xa), region = 215 }
0x1882   :  { %4374 = vsyncpa [#allocation5], 1 }
0x1883   :  { %4376 = vsyncpa [#allocation5 + $0x1], 1 }
0x1884   :  { %4377 = vsyncpa [#allocation7], 1 }

</bundles_post_ra>
